<compile_context>
chip_gen: v7x
topology: tpu7x:2x2x1
jax: 0.10.0
libtpu: 0.0.40
codegen_flags: <defaults>
</compile_context>

<pallas_src>
import functools

import jax
import jax.numpy as jnp
import numpy as np
from jax import lax
from jax.experimental import pallas as pl
from jax.experimental.pallas import tpu as pltpu


def _round_up(x, m):
  return ((x + m - 1) // m) * m


# -----------------------------------------------------------------------------
# Kernel
# -----------------------------------------------------------------------------
def _gru_encoder_kernel(x_ref,                        # (Tc*Bp, Din) chunk, reversed time-major
                        wi0_ref,                      # (Din, 3Hp)
                        wh0_ref, bh0_ref,             # (Hp, 3Hp), (1, 3Hp)  [bi0_r/z folded in]
                        bi0n_ref,                     # (1, Hp)   n-gate input bias
                        w1_ref, b1f_ref,              # fused (2Hp,6Hp) or split (2Hp,3Hp); (1,6Hp)
                        wout_ref, bout_ref,           # (Hp, Lp), (1, Lp)
                        out_ref,                      # (Bp, Lp)
                        gi0_scr,                      # VMEM (Tc*Bp, 3Hp) hoisted layer-0 gates
                        h12_scr,                      # VMEM (Bp, 2Hp) persistent [h1 | h2]
                        *, t_total, chunk_steps, fuse_layer1):
  Bp, Lp = out_ref.shape
  Hp = wh0_ref.shape[0]
  Tc = chunk_steps
  c = pl.program_id(0)
  mxu_dtype = wi0_ref.dtype

  # --- Init persistent hidden state on the first chunk. ---
  @pl.when(c == 0)
  def _():
    h12_scr[...] = jnp.zeros_like(h12_scr)

  # --- Hoisted layer-0 input projection for this whole chunk: one MXU matmul.
  gi0_scr[...] = jnp.dot(
      x_ref[...], wi0_ref[...],
      preferred_element_type=jnp.float32).astype(gi0_scr.dtype)

  # --- Hoisted bias broadcasts & weight loads (per chunk, not per step). ---
  bh0_b = jnp.broadcast_to(bh0_ref[...], (Bp, 3 * Hp))   # r/z input biases folded in
  bi0n_b = jnp.broadcast_to(bi0n_ref[...], (Bp, Hp))
  b1f_b = jnp.broadcast_to(b1f_ref[...], (Bp, 6 * Hp))
  wh0 = wh0_ref[...]
  if fuse_layer1:
    w1_full = w1_ref[...]                               # (2Hp, 6Hp)
  else:
    w1_in = w1_ref[:Hp, :]                              # (Hp, 3Hp)
    w1_hid = w1_ref[Hp:, :]                             # (Hp, 3Hp)

  def step(t, carry):
    # Skip padded timesteps of the (possibly ragged) last chunk.
    @pl.when(c * Tc + t < t_total)
    def _():
      row = pl.multiple_of(t * Bp, Bp)
      gi0 = gi0_scr[pl.ds(row, Bp), :].astype(jnp.float32)   # (Bp, 3Hp), precomputed
      h1 = h12_scr[:, :Hp]
      h2 = h12_scr[:, Hp:]

      # Layer 0: only the hidden->gates matmul remains on the serial chain.
      gh0 = jnp.dot(h1.astype(mxu_dtype), wh0,
                    preferred_element_type=jnp.float32) + bh0_b
      r0 = jax.nn.sigmoid(gi0[:, :Hp] + gh0[:, :Hp])
      z0 = jax.nn.sigmoid(gi0[:, Hp:2 * Hp] + gh0[:, Hp:2 * Hp])
      n0 = jnp.tanh(gi0[:, 2 * Hp:] + bi0n_b + r0 * gh0[:, 2 * Hp:])
      h1_new = (1.0 - z0) * n0 + z0 * h1
      h12_scr[:, :Hp] = h1_new                          # state now holds [h1_new | h2_old]

      # Layer 1: fused block-diag (v6e/v7x, K=2Hp matches 256-wide MXU) or
      # two K=Hp matmuls (v5e 128x128 MXU).
      if fuse_layer1:
        g1 = jnp.dot(h12_scr[...].astype(mxu_dtype), w1_full,
                     preferred_element_type=jnp.float32) + b1f_b
        gi1 = g1[:, :3 * Hp]
        gh1 = g1[:, 3 * Hp:]
      else:
        gi1 = jnp.dot(h1_new.astype(mxu_dtype), w1_in,
                      preferred_element_type=jnp.float32) + b1f_b[:, :3 * Hp]
        gh1 = jnp.dot(h2.astype(mxu_dtype), w1_hid,
                      preferred_element_type=jnp.float32) + b1f_b[:, 3 * Hp:]

      r1 = jax.nn.sigmoid(gi1[:, :Hp] + gh1[:, :Hp])
      z1 = jax.nn.sigmoid(gi1[:, Hp:2 * Hp] + gh1[:, Hp:2 * Hp])
      n1 = jnp.tanh(gi1[:, 2 * Hp:] + r1 * gh1[:, 2 * Hp:])
      h12_scr[:, Hp:] = (1.0 - z1) * n1 + z1 * h2
    return carry

  # Bounded unroll: enough for layer-1(t) / layer-0(t+1) overlap without
  # scaling program size with T.
  lax.fori_loop(0, Tc, step, 0, unroll=max(1, min(Tc, 8)))

  # --- Finalize: output projection on the last chunk only. ---
  @pl.when(c == pl.num_programs(0) - 1)
  def _():
    bout_b = jnp.broadcast_to(bout_ref[...], (Bp, Lp))
    h2 = h12_scr[:, Hp:]
    out_ref[...] = jnp.dot(h2.astype(mxu_dtype), wout_ref[...],
                           preferred_element_type=jnp.float32) + bout_b


# -----------------------------------------------------------------------------
# Parameter packing: gate-block padding to 128 lanes, bias folding, optional
# bf16 MXU operands, fused or split layer-1 weight. Done once, off the hot path.
# -----------------------------------------------------------------------------
def _pad_gate_cols(w, H, Hp):
  """(K, 3H) -> (K, 3Hp): each gate block placed at a 128-lane-aligned offset."""
  K = w.shape[0]
  out = jnp.zeros((K, 3 * Hp), jnp.float32)
  for g in range(3):
    out = out.at[:, g * Hp:g * Hp + H].set(w[:, g * H:(g + 1) * H])
  return out


def default_fuse_layer1():
  """Fused block-diag layer-1 weight for 256-wide MXUs (v6e/v7x); split on v5e."""
  try:
    kind = jax.devices()[0].device_kind.lower()
  except Exception:
    return True
  return not any(t in kind for t in ("v5 lite", "v5lite", "v5e"))


def pack_params(params, hidden_units, latent_dim, *,
                mxu_dtype=jnp.float32, fuse_layer1=True):
  H, L = hidden_units, latent_dim
  Hp = _round_up(H, 128)
  Lp = _round_up(L, 128)

  wi0 = _pad_gate_cols(params["wi0"], H, Hp).astype(mxu_dtype)       # (Din, 3Hp)
  wh0 = jnp.zeros((Hp, 3 * Hp), jnp.float32).at[:H].set(
      _pad_gate_cols(params["wh0"], H, Hp)).astype(mxu_dtype)        # (Hp, 3Hp)

  # Bias fold: r/z input biases merge into the per-step hidden bias; only the
  # n-gate input bias stays on the gi side (n = tanh(gi_n + bi_n + r*(gh_n + bh_n))).
  bh0_fold = params["bh0"].at[:, :2 * H].add(params["bi0"][:, :2 * H])
  bh0 = _pad_gate_cols(bh0_fold, H, Hp)                              # (1, 3Hp) f32
  bi0n = jnp.zeros((1, Hp), jnp.float32).at[:, :H].set(params["bi0"][:, 2 * H:])

  wi1 = jnp.zeros((Hp, 3 * Hp), jnp.float32).at[:H].set(
      _pad_gate_cols(params["wi1"], H, Hp))
  wh1 = jnp.zeros((Hp, 3 * Hp), jnp.float32).at[:H].set(
      _pad_gate_cols(params["wh1"], H, Hp))
  if fuse_layer1:
    # Block-diag fused weight: one (Bp,2Hp)x(2Hp,6Hp) matmul yields [gi1 | gh1]
    # side by side (kept in separate columns — required for the n gate).
    w1 = jnp.zeros((2 * Hp, 6 * Hp), jnp.float32)
    w1 = w1.at[:Hp, :3 * Hp].set(wi1)
    w1 = w1.at[Hp:, 3 * Hp:].set(wh1)
  else:
    # v5e: two K=128 matmuls map exactly onto the 128x128 MXU; half the VMEM.
    w1 = jnp.concatenate([wi1, wh1], axis=0)                         # (2Hp, 3Hp)
  w1 = w1.astype(mxu_dtype)
  b1f = jnp.concatenate([_pad_gate_cols(params["bi1"], H, Hp),
                         _pad_gate_cols(params["bh1"], H, Hp)], axis=1)

  wout = jnp.zeros((Hp, Lp), jnp.float32).at[:H, :L].set(
      params["wout"]).astype(mxu_dtype)
  bout = jnp.zeros((1, Lp), jnp.float32).at[:, :L].set(params["bout"])

  return dict(wi0=wi0, wh0=wh0, bh0=bh0, bi0n=bi0n,
              w1=w1, b1f=b1f, wout=wout, bout=bout)


# -----------------------------------------------------------------------------
# Wrapper
# -----------------------------------------------------------------------------
def reverse_gru_encoder(observed_data, observed_tp, packed, *,
                        latent_dim, encode_obs_time=True, chunk_steps=None):
  B, T, _ = observed_data.shape

  if encode_obs_time:
    tp = jnp.broadcast_to(observed_tp.reshape(1, T, 1),
                          (B, T, 1)).astype(observed_data.dtype)
    trajs = jnp.concatenate([observed_data, tp], axis=-1)
  else:
    trajs = observed_data
  d_in = trajs.shape[-1]

  Hp = packed["wh0"].shape[0]
  Lp = packed["wout"].shape[1]
  fuse_layer1 = packed["w1"].shape[1] == 6 * Hp
  mxu_dtype = packed["wi0"].dtype
  itemsize = jnp.dtype(mxu_dtype).itemsize

  # Batch tile: pad to full sublanes; grows with B toward MXU height before any
  # batch splitting (a "parallel" batch grid axis for v7x dual-TC goes here
  # once B yields >= 2 tiles).
  Bp = _round_up(max(B, 8), 8)

  # Pick the time-chunk from a VMEM budget (gi0 scratch + double-buffered x),
  # sized to stay well under v7x's 64 MiB ceiling.
  if chunk_steps is None:
    budget = 20 << 20
    per_step = Bp * 3 * Hp * itemsize + 2 * Bp * d_in * itemsize
    chunk_steps = int(max(1, min(T, budget // max(per_step, 1))))
  Tc = int(chunk_steps)
  num_chunks = pl.cdiv(T, Tc)
  Tp = num_chunks * Tc

  # Reverse in time, go time-major, pad batch & time, flatten to (Tp*Bp, Din):
  # the kernel's hoisted per-chunk input projection is one well-shaped matmul.
  x = jnp.transpose(jnp.flip(trajs, axis=1), (1, 0, 2)).astype(mxu_dtype)  # (T, B, Din)
  x = jnp.pad(x, ((0, Tp - T), (0, Bp - B), (0, 0)))                       # (Tp, Bp, Din)
  x = x.reshape(Tp * Bp, d_in)

  weight_args = (packed["wi0"], packed["wh0"], packed["bh0"], packed["bi0n"],
                 packed["w1"], packed["b1f"], packed["wout"], packed["bout"])

  in_specs = [pl.BlockSpec((Tc * Bp, d_in), lambda c: (c, 0))]   # streamed chunks
  in_specs += [pl.BlockSpec(w.shape, lambda c: (0, 0)) for w in weight_args]  # resident
  out_spec = pl.BlockSpec((Bp, Lp), lambda c: (0, 0))

  # Explicit scoped-VMEM limit sized from the real footprint (default 16/32 MiB
  # limits reject moderate T long before physical VMEM is exhausted).
  weights_bytes = sum(int(np.prod(w.shape)) * jnp.dtype(w.dtype).itemsize
                      for w in weight_args)
  x_chunk_bytes = Tc * Bp * d_in * itemsize
  gi0_bytes = Tc * Bp * 3 * Hp * itemsize
  misc_bytes = Bp * 2 * Hp * 4 + 2 * Bp * Lp * 4
  needed = 2 * (weights_bytes + x_chunk_bytes) + gi0_bytes + misc_bytes
  vmem_limit = int(min(max(2 * needed, 16 << 20), 56 << 20))

  kernel = functools.partial(_gru_encoder_kernel, t_total=T, chunk_steps=Tc,
                             fuse_layer1=fuse_layer1)

  out_padded = pl.pallas_call(
      kernel,
      out_shape=jax.ShapeDtypeStruct((Bp, Lp), jnp.float32),
      grid_spec=pltpu.PrefetchScalarGridSpec(
          num_scalar_prefetch=0,
          grid=(num_chunks,),
          in_specs=in_specs,
          out_specs=out_spec,
          scratch_shapes=[
              pltpu.VMEM((Tc * Bp, 3 * Hp), mxu_dtype),   # hoisted layer-0 gates (per chunk)
              pltpu.VMEM((Bp, 2 * Hp), jnp.float32),      # persistent [h1 | h2] state
          ]),
      compiler_params=pltpu.CompilerParams(
          dimension_semantics=("arbitrary",),
          vmem_limit_bytes=vmem_limit),
  )(x, *weight_args)

  return out_padded[:B, :latent_dim]


# -----------------------------------------------------------------------------
# Init (synthetic, mimicking nn.GRU / nn.Linear defaults) + pure-JAX reference
# -----------------------------------------------------------------------------
def init_params(key, dimension_in, latent_dim, hidden_units,
                encode_obs_time=True):
  d_in = dimension_in + (1 if encode_obs_time else 0)
  H = hidden_units
  keys = jax.random.split(key, 12)
  s = 1.0 / np.sqrt(H)

  def u(k, shape, bound):
    return jax.random.uniform(k, shape, jnp.float32, -bound, bound)

  return {
      "wi0": u(keys[0], (d_in, 3 * H), s), "wh0": u(keys[1], (H, 3 * H), s),
      "bi0": u(keys[2], (1, 3 * H), s),    "bh0": u(keys[3], (1, 3 * H), s),
      "wi1": u(keys[4], (H, 3 * H), s),    "wh1": u(keys[5], (H, 3 * H), s),
      "bi1": u(keys[6], (1, 3 * H), s),    "bh1": u(keys[7], (1, 3 * H), s),
      "wout": u(keys[8], (H, latent_dim), np.sqrt(6.0 / (H + latent_dim))),
      "bout": u(keys[9], (1, latent_dim), s),
  }


def reverse_gru_encoder_ref(observed_data, observed_tp, params,
                            encode_obs_time=True):
  B, T, _ = observed_data.shape
  if encode_obs_time:
    tp = jnp.broadcast_to(observed_tp.reshape(1, T, 1), (B, T, 1))
    trajs = jnp.concatenate(
        [observed_data, tp.astype(observed_data.dtype)], axis=-1)
  else:
    trajs = observed_data
  x = jnp.flip(trajs, axis=1)
  H = params["wh0"].shape[0]

  def cell(x_t, h, wi, wh, bi, bh):
    gi = x_t @ wi + bi
    gh = h @ wh + bh
    r = jax.nn.sigmoid(gi[:, :H] + gh[:, :H])
    z = jax.nn.sigmoid(gi[:, H:2 * H] + gh[:, H:2 * H])
    n = jnp.tanh(gi[:, 2 * H:] + r * gh[:, 2 * H:])
    return (1.0 - z) * n + z * h

  h1 = jnp.zeros((B, H), jnp.float32)
  h2 = jnp.zeros((B, H), jnp.float32)
  for t in range(T):
    x_t = x[:, t, :]
    h1 = cell(x_t, h1, params["wi0"], params["wh0"],
              params["bi0"], params["bh0"])
    h2 = cell(h1, h2, params["wi1"], params["wh1"],
              params["bi1"], params["bh1"])
  return h2 @ params["wout"] + params["bout"]


if __name__ == "__main__":
  B, T = 2, 8
  dimension_in = 4
  hidden_units = 32
  latent_dim = 8
  encode_obs_time = True

  key = jax.random.PRNGKey(0)
  k_data, k_tp, k_params = jax.random.split(key, 3)

  observed_data = jax.random.normal(k_data, (B, T, dimension_in), jnp.float32)
  observed_tp = jnp.linspace(0.0, 1.0, T, dtype=jnp.float32)

  params = init_params(k_params, dimension_in, latent_dim, hidden_units,
                       encode_obs_time)
  ref = reverse_gru_encoder_ref(observed_data, observed_tp, params,
                                encode_obs_time)

  # 1) Exact f32 path, fused layer-1 (v6e/v7x MXU shape), forced multi-chunk
  #    grid with a ragged last chunk to exercise pipelining + step masking.
  packed_f32 = pack_params(params, hidden_units, latent_dim,
                           mxu_dtype=jnp.float32, fuse_layer1=True)
  run_f32 = jax.jit(functools.partial(reverse_gru_encoder,
                                      latent_dim=latent_dim,
                                      encode_obs_time=encode_obs_time,
                                      chunk_steps=3))
  lat_f32 = jax.block_until_ready(run_f32(observed_data, observed_tp, packed_f32))
  assert lat_f32.shape == (B, latent_dim), lat_f32.shape
  np.testing.assert_allclose(np.asarray(lat_f32), np.asarray(ref),
                             rtol=1e-5, atol=1e-5)

  # 2) Exact f32 path, split layer-1 (v5e 128x128 MXU shape), auto chunking.
  packed_split = pack_params(params, hidden_units, latent_dim,
                             mxu_dtype=jnp.float32, fuse_layer1=False)
  run_split = jax.jit(functools.partial(reverse_gru_encoder,
                                        latent_dim=latent_dim,
                                        encode_obs_time=encode_obs_time))
  lat_split = jax.block_until_ready(
      run_split(observed_data, observed_tp, packed_split))
  np.testing.assert_allclose(np.asarray(lat_split), np.asarray(ref),
                             rtol=1e-5, atol=1e-5)

  # 3) bf16 MXU operands with f32 accumulation (v6e/v7x throughput path);
  #    tolerance relaxed accordingly.
  packed_bf16 = pack_params(params, hidden_units, latent_dim,
                            mxu_dtype=jnp.bfloat16,
                            fuse_layer1=default_fuse_layer1())
  run_bf16 = jax.jit(functools.partial(reverse_gru_encoder,
                                       latent_dim=latent_dim,
                                       encode_obs_time=encode_obs_time))
  lat_bf16 = jax.block_until_ready(
      run_bf16(observed_data, observed_tp, packed_bf16))
  np.testing.assert_allclose(np.asarray(lat_bf16), np.asarray(ref),
                             rtol=5e-2, atol=5e-2)

  print("KERNEL_OK")
</pallas_src>

<mosaic_0001>
module attributes {stable_mosaic.version = 11 : i64} {
  func.func @_gru_encoder_kernel(%arg0: i32, %arg1: memref<24x5xf32, #tpu.memory_space<vmem>>, %arg2: memref<5x384xf32, #tpu.memory_space<vmem>>, %arg3: memref<128x384xf32, #tpu.memory_space<vmem>>, %arg4: memref<1x384xf32, #tpu.memory_space<vmem>>, %arg5: memref<1x128xf32, #tpu.memory_space<vmem>>, %arg6: memref<256x768xf32, #tpu.memory_space<vmem>>, %arg7: memref<1x768xf32, #tpu.memory_space<vmem>>, %arg8: memref<128x128xf32, #tpu.memory_space<vmem>>, %arg9: memref<1x128xf32, #tpu.memory_space<vmem>>, %arg10: memref<8x128xf32, #tpu.memory_space<vmem>>, %arg11: memref<24x384xf32, #tpu.memory_space<vmem>>, %arg12: memref<8x256xf32, #tpu.memory_space<vmem>>) attributes {dimension_semantics = [#tpu.dimension_semantics<arbitrary>], iteration_bounds = array<i64: 3>, scalar_prefetch = 0 : i64, scratch_operands = 2 : i64, tpu.core_type = #tpu.core_type<tc>, window_params = [{transform_indices = @transform_0, window_bounds = array<i64: 24, 5>}, {pipeline_mode = #tpu.pipeline_mode<synchronous>, transform_indices = @transform_1, window_bounds = array<i64: 5, 384>}, {pipeline_mode = #tpu.pipeline_mode<synchronous>, transform_indices = @transform_2, window_bounds = array<i64: 128, 384>}, {pipeline_mode = #tpu.pipeline_mode<synchronous>, transform_indices = @transform_3, window_bounds = array<i64: 1, 384>}, {pipeline_mode = #tpu.pipeline_mode<synchronous>, transform_indices = @transform_4, window_bounds = array<i64: 1, 128>}, {pipeline_mode = #tpu.pipeline_mode<synchronous>, transform_indices = @transform_5, window_bounds = array<i64: 256, 768>}, {pipeline_mode = #tpu.pipeline_mode<synchronous>, transform_indices = @transform_6, window_bounds = array<i64: 1, 768>}, {pipeline_mode = #tpu.pipeline_mode<synchronous>, transform_indices = @transform_7, window_bounds = array<i64: 128, 128>}, {pipeline_mode = #tpu.pipeline_mode<synchronous>, transform_indices = @transform_8, window_bounds = array<i64: 1, 128>}, {pipeline_mode = #tpu.pipeline_mode<synchronous>, transform_indices = @transform_9, window_bounds = array<i64: 8, 128>}]} {
    %c0_i32 = arith.constant 0 : i32
    %0 = arith.cmpi eq, %arg0, %c0_i32 : i32
    %1 = arith.extui %0 : i1 to i32
    %c0_i32_0 = arith.constant 0 : i32
    %2 = arith.cmpi ne, %1, %c0_i32_0 : i32
    scf.if %2 {
      %cst_27 = arith.constant 0.000000e+00 : f32
      %36 = vector.broadcast %cst_27 : f32 to vector<8x256xf32>
      %c0_28 = arith.constant 0 : index
      %c0_29 = arith.constant 0 : index
      %37 = vector.load %arg12[%c0_28, %c0_29] : memref<8x256xf32, #tpu.memory_space<vmem>>, vector<8x256xf32>
      tpu.vector_store %arg12[%c0_28, %c0_29], %36 {strides = array<i32>} : memref<8x256xf32, #tpu.memory_space<vmem>>, vector<8x256xf32>,
    } else {
    }
    %c0 = arith.constant 0 : index
    %c0_1 = arith.constant 0 : index
    %3 = vector.load %arg1[%c0, %c0_1] : memref<24x5xf32, #tpu.memory_space<vmem>>, vector<24x5xf32>
    %c0_2 = arith.constant 0 : index
    %c0_3 = arith.constant 0 : index
    %4 = vector.load %arg2[%c0_2, %c0_3] : memref<5x384xf32, #tpu.memory_space<vmem>>, vector<5x384xf32>
    %cst = arith.constant dense<0.000000e+00> : vector<24x384xf32>
    %5 = tpu.matmul %3, %4, %cst {dimension_numbers = #tpu.dot_dimension_numbers<[1], [0], [0], [1], [0, 0, 1, 1], [], []>} : vector<24x5xf32>, vector<5x384xf32>, vector<24x384xf32> -> vector<24x384xf32>
    %c0_4 = arith.constant 0 : index
    %c0_5 = arith.constant 0 : index
    %6 = vector.load %arg11[%c0_4, %c0_5] : memref<24x384xf32, #tpu.memory_space<vmem>>, vector<24x384xf32>
    tpu.vector_store %arg11[%c0_4, %c0_5], %5 {strides = array<i32>} : memref<24x384xf32, #tpu.memory_space<vmem>>, vector<24x384xf32>,
    %c0_6 = arith.constant 0 : index
    %c0_7 = arith.constant 0 : index
    %7 = vector.load %arg4[%c0_6, %c0_7] : memref<1x384xf32, #tpu.memory_space<vmem>>, vector<1x384xf32>
    %8 = vector.shape_cast %7 : vector<1x384xf32> to vector<1x384xf32>
    %9 = vector.broadcast %8 : vector<1x384xf32> to vector<8x384xf32>
    %c0_8 = arith.constant 0 : index
    %c0_9 = arith.constant 0 : index
    %10 = vector.load %arg5[%c0_8, %c0_9] : memref<1x128xf32, #tpu.memory_space<vmem>>, vector<1x128xf32>
    %11 = vector.shape_cast %10 : vector<1x128xf32> to vector<1x128xf32>
    %12 = vector.broadcast %11 : vector<1x128xf32> to vector<8x128xf32>
    %c0_10 = arith.constant 0 : index
    %c0_11 = arith.constant 0 : index
    %13 = vector.load %arg7[%c0_10, %c0_11] : memref<1x768xf32, #tpu.memory_space<vmem>>, vector<1x768xf32>
    %14 = vector.shape_cast %13 : vector<1x768xf32> to vector<1x768xf32>
    %15 = vector.broadcast %14 : vector<1x768xf32> to vector<8x768xf32>
    %c0_12 = arith.constant 0 : index
    %c0_13 = arith.constant 0 : index
    %16 = vector.load %arg3[%c0_12, %c0_13] : memref<128x384xf32, #tpu.memory_space<vmem>>, vector<128x384xf32>
    %c0_14 = arith.constant 0 : index
    %c0_15 = arith.constant 0 : index
    %17 = vector.load %arg6[%c0_14, %c0_15] : memref<256x768xf32, #tpu.memory_space<vmem>>, vector<256x768xf32>
    %c0_i32_16 = arith.constant 0 : i32
    %c3_i32 = arith.constant 3 : i32
    %18 = arith.muli %arg0, %c3_i32 : i32
    %19 = arith.addi %18, %c0_i32_16 : i32
    %c8_i32 = arith.constant 8 : i32
    %20 = arith.cmpi slt, %19, %c8_i32 : i32
    %21 = arith.extui %20 : i1 to i32
    %c0_i32_17 = arith.constant 0 : i32
    %22 = arith.cmpi ne, %21, %c0_i32_17 : i32
    scf.if %22 {
      %c8_i32_27 = arith.constant 8 : i32
      %36 = arith.muli %c0_i32_16, %c8_i32_27 : i32
      %37 = tpu.assume_multiple %36, 8 : i32
      %38 = arith.index_cast %37 : i32 to index
      %c0_28 = arith.constant 0 : index
      %39 = vector.load %arg11[%38, %c0_28] : memref<24x384xf32, #tpu.memory_space<vmem>>, vector<8x384xf32>
      %c0_29 = arith.constant 0 : index
      %c0_30 = arith.constant 0 : index
      %40 = vector.load %arg12[%c0_29, %c0_30] : memref<8x256xf32, #tpu.memory_space<vmem>>, vector<8x128xf32>
      %c0_31 = arith.constant 0 : index
      %c128 = arith.constant 128 : index
      %41 = vector.load %arg12[%c0_31, %c128] : memref<8x256xf32, #tpu.memory_space<vmem>>, vector<8x128xf32>
      %cst_32 = arith.constant dense<0.000000e+00> : vector<8x384xf32>
      %42 = tpu.matmul %40, %16, %cst_32 {dimension_numbers = #tpu.dot_dimension_numbers<[1], [0], [0], [1], [0, 0, 1, 1], [], []>} : vector<8x128xf32>, vector<128x384xf32>, vector<8x384xf32> -> vector<8x384xf32>
      %43 = arith.addf %42, %9 : vector<8x384xf32>
      %44 = vector.extract_strided_slice %39 {offsets = [0, 0], sizes = [8, 128], strides = [1, 1]} : vector<8x384xf32> to vector<8x128xf32>
      %45 = vector.extract_strided_slice %43 {offsets = [0, 0], sizes = [8, 128], strides = [1, 1]} : vector<8x384xf32> to vector<8x128xf32>
      %46 = arith.addf %44, %45 : vector<8x128xf32>
      %47 = arith.negf %46 : vector<8x128xf32>
      %48 = math.exp %47 : vector<8x128xf32>
      %cst_33 = arith.constant 1.000000e+00 : f32
      %49 = vector.broadcast %cst_33 : f32 to vector<8x128xf32>
      %50 = arith.addf %49, %48 : vector<8x128xf32>
      %51 = arith.divf %49, %50 : vector<8x128xf32>
      %52 = vector.extract_strided_slice %39 {offsets = [0, 128], sizes = [8, 128], strides = [1, 1]} : vector<8x384xf32> to vector<8x128xf32>
      %53 = vector.extract_strided_slice %43 {offsets = [0, 128], sizes = [8, 128], strides = [1, 1]} : vector<8x384xf32> to vector<8x128xf32>
      %54 = arith.addf %52, %53 : vector<8x128xf32>
      %55 = arith.negf %54 : vector<8x128xf32>
      %56 = math.exp %55 : vector<8x128xf32>
      %cst_34 = arith.constant 1.000000e+00 : f32
      %57 = vector.broadcast %cst_34 : f32 to vector<8x128xf32>
      %58 = arith.addf %57, %56 : vector<8x128xf32>
      %59 = arith.divf %57, %58 : vector<8x128xf32>
      %60 = vector.extract_strided_slice %39 {offsets = [0, 256], sizes = [8, 128], strides = [1, 1]} : vector<8x384xf32> to vector<8x128xf32>
      %61 = arith.addf %60, %12 : vector<8x128xf32>
      %62 = vector.extract_strided_slice %43 {offsets = [0, 256], sizes = [8, 128], strides = [1, 1]} : vector<8x384xf32> to vector<8x128xf32>
      %63 = arith.mulf %51, %62 : vector<8x128xf32>
      %64 = arith.addf %61, %63 : vector<8x128xf32>
      %65 = math.tanh %64 : vector<8x128xf32>
      %cst_35 = arith.constant 1.000000e+00 : f32
      %66 = vector.broadcast %cst_35 : f32 to vector<8x128xf32>
      %67 = arith.subf %66, %59 : vector<8x128xf32>
      %68 = arith.mulf %67, %65 : vector<8x128xf32>
      %69 = arith.mulf %59, %40 : vector<8x128xf32>
      %70 = arith.addf %68, %69 : vector<8x128xf32>
      %c0_36 = arith.constant 0 : index
      %c0_37 = arith.constant 0 : index
      %71 = vector.load %arg12[%c0_36, %c0_37] : memref<8x256xf32, #tpu.memory_space<vmem>>, vector<8x128xf32>
      tpu.vector_store %arg12[%c0_36, %c0_37], %70 {strides = array<i32>} : memref<8x256xf32, #tpu.memory_space<vmem>>, vector<8x128xf32>,
      %c0_38 = arith.constant 0 : index
      %c0_39 = arith.constant 0 : index
      %72 = vector.load %arg12[%c0_38, %c0_39] : memref<8x256xf32, #tpu.memory_space<vmem>>, vector<8x256xf32>
      %cst_40 = arith.constant dense<0.000000e+00> : vector<8x768xf32>
      %73 = tpu.matmul %72, %17, %cst_40 {dimension_numbers = #tpu.dot_dimension_numbers<[1], [0], [0], [1], [0, 0, 1, 1], [], []>} : vector<8x256xf32>, vector<256x768xf32>, vector<8x768xf32> -> vector<8x768xf32>
      %74 = arith.addf %73, %15 : vector<8x768xf32>
      %75 = vector.extract_strided_slice %74 {offsets = [0, 0], sizes = [8, 384], strides = [1, 1]} : vector<8x768xf32> to vector<8x384xf32>
      %76 = vector.extract_strided_slice %74 {offsets = [0, 384], sizes = [8, 384], strides = [1, 1]} : vector<8x768xf32> to vector<8x384xf32>
      %77 = vector.extract_strided_slice %75 {offsets = [0, 0], sizes = [8, 128], strides = [1, 1]} : vector<8x384xf32> to vector<8x128xf32>
      %78 = vector.extract_strided_slice %76 {offsets = [0, 0], sizes = [8, 128], strides = [1, 1]} : vector<8x384xf32> to vector<8x128xf32>
      %79 = arith.addf %77, %78 : vector<8x128xf32>
      %80 = arith.negf %79 : vector<8x128xf32>
      %81 = math.exp %80 : vector<8x128xf32>
      %cst_41 = arith.constant 1.000000e+00 : f32
      %82 = vector.broadcast %cst_41 : f32 to vector<8x128xf32>
      %83 = arith.addf %82, %81 : vector<8x128xf32>
      %84 = arith.divf %82, %83 : vector<8x128xf32>
      %85 = vector.extract_strided_slice %75 {offsets = [0, 128], sizes = [8, 128], strides = [1, 1]} : vector<8x384xf32> to vector<8x128xf32>
      %86 = vector.extract_strided_slice %76 {offsets = [0, 128], sizes = [8, 128], strides = [1, 1]} : vector<8x384xf32> to vector<8x128xf32>
      %87 = arith.addf %85, %86 : vector<8x128xf32>
      %88 = arith.negf %87 : vector<8x128xf32>
      %89 = math.exp %88 : vector<8x128xf32>
      %cst_42 = arith.constant 1.000000e+00 : f32
      %90 = vector.broadcast %cst_42 : f32 to vector<8x128xf32>
      %91 = arith.addf %90, %89 : vector<8x128xf32>
      %92 = arith.divf %90, %91 : vector<8x128xf32>
      %93 = vector.extract_strided_slice %75 {offsets = [0, 256], sizes = [8, 128], strides = [1, 1]} : vector<8x384xf32> to vector<8x128xf32>
      %94 = vector.extract_strided_slice %76 {offsets = [0, 256], sizes = [8, 128], strides = [1, 1]} : vector<8x384xf32> to vector<8x128xf32>
      %95 = arith.mulf %84, %94 : vector<8x128xf32>
      %96 = arith.addf %93, %95 : vector<8x128xf32>
      %97 = math.tanh %96 : vector<8x128xf32>
      %cst_43 = arith.constant 1.000000e+00 : f32
      %98 = vector.broadcast %cst_43 : f32 to vector<8x128xf32>
      %99 = arith.subf %98, %92 : vector<8x128xf32>
      %100 = arith.mulf %99, %97 : vector<8x128xf32>
      %101 = arith.mulf %92, %41 : vector<8x128xf32>
      %102 = arith.addf %100, %101 : vector<8x128xf32>
      %c0_44 = arith.constant 0 : index
      %c128_45 = arith.constant 128 : index
      %103 = vector.load %arg12[%c0_44, %c128_45] : memref<8x256xf32, #tpu.memory_space<vmem>>, vector<8x128xf32>
      tpu.vector_store %arg12[%c0_44, %c128_45], %102 {strides = array<i32>} : memref<8x256xf32, #tpu.memory_space<vmem>>, vector<8x128xf32>,
    } else {
    }
    %c1_i32 = arith.constant 1 : i32
    %c3_i32_18 = arith.constant 3 : i32
    %23 = arith.muli %arg0, %c3_i32_18 : i32
    %24 = arith.addi %23, %c1_i32 : i32
    %c8_i32_19 = arith.constant 8 : i32
    %25 = arith.cmpi slt, %24, %c8_i32_19 : i32
    %26 = arith.extui %25 : i1 to i32
    %c0_i32_20 = arith.constant 0 : i32
    %27 = arith.cmpi ne, %26, %c0_i32_20 : i32
    scf.if %27 {
      %c8_i32_27 = arith.constant 8 : i32
      %36 = arith.muli %c1_i32, %c8_i32_27 : i32
      %37 = tpu.assume_multiple %36, 8 : i32
      %38 = arith.index_cast %37 : i32 to index
      %c0_28 = arith.constant 0 : index
      %39 = vector.load %arg11[%38, %c0_28] : memref<24x384xf32, #tpu.memory_space<vmem>>, vector<8x384xf32>
      %c0_29 = arith.constant 0 : index
      %c0_30 = arith.constant 0 : index
      %40 = vector.load %arg12[%c0_29, %c0_30] : memref<8x256xf32, #tpu.memory_space<vmem>>, vector<8x128xf32>
      %c0_31 = arith.constant 0 : index
      %c128 = arith.constant 128 : index
      %41 = vector.load %arg12[%c0_31, %c128] : memref<8x256xf32, #tpu.memory_space<vmem>>, vector<8x128xf32>
      %cst_32 = arith.constant dense<0.000000e+00> : vector<8x384xf32>
      %42 = tpu.matmul %40, %16, %cst_32 {dimension_numbers = #tpu.dot_dimension_numbers<[1], [0], [0], [1], [0, 0, 1, 1], [], []>} : vector<8x128xf32>, vector<128x384xf32>, vector<8x384xf32> -> vector<8x384xf32>
      %43 = arith.addf %42, %9 : vector<8x384xf32>
      %44 = vector.extract_strided_slice %39 {offsets = [0, 0], sizes = [8, 128], strides = [1, 1]} : vector<8x384xf32> to vector<8x128xf32>
      %45 = vector.extract_strided_slice %43 {offsets = [0, 0], sizes = [8, 128], strides = [1, 1]} : vector<8x384xf32> to vector<8x128xf32>
      %46 = arith.addf %44, %45 : vector<8x128xf32>
      %47 = arith.negf %46 : vector<8x128xf32>
      %48 = math.exp %47 : vector<8x128xf32>
      %cst_33 = arith.constant 1.000000e+00 : f32
      %49 = vector.broadcast %cst_33 : f32 to vector<8x128xf32>
      %50 = arith.addf %49, %48 : vector<8x128xf32>
      %51 = arith.divf %49, %50 : vector<8x128xf32>
      %52 = vector.extract_strided_slice %39 {offsets = [0, 128], sizes = [8, 128], strides = [1, 1]} : vector<8x384xf32> to vector<8x128xf32>
      %53 = vector.extract_strided_slice %43 {offsets = [0, 128], sizes = [8, 128], strides = [1, 1]} : vector<8x384xf32> to vector<8x128xf32>
      %54 = arith.addf %52, %53 : vector<8x128xf32>
      %55 = arith.negf %54 : vector<8x128xf32>
      %56 = math.exp %55 : vector<8x128xf32>
      %cst_34 = arith.constant 1.000000e+00 : f32
      %57 = vector.broadcast %cst_34 : f32 to vector<8x128xf32>
      %58 = arith.addf %57, %56 : vector<8x128xf32>
      %59 = arith.divf %57, %58 : vector<8x128xf32>
      %60 = vector.extract_strided_slice %39 {offsets = [0, 256], sizes = [8, 128], strides = [1, 1]} : vector<8x384xf32> to vector<8x128xf32>
      %61 = arith.addf %60, %12 : vector<8x128xf32>
      %62 = vector.extract_strided_slice %43 {offsets = [0, 256], sizes = [8, 128], strides = [1, 1]} : vector<8x384xf32> to vector<8x128xf32>
      %63 = arith.mulf %51, %62 : vector<8x128xf32>
      %64 = arith.addf %61, %63 : vector<8x128xf32>
      %65 = math.tanh %64 : vector<8x128xf32>
      %cst_35 = arith.constant 1.000000e+00 : f32
      %66 = vector.broadcast %cst_35 : f32 to vector<8x128xf32>
      %67 = arith.subf %66, %59 : vector<8x128xf32>
      %68 = arith.mulf %67, %65 : vector<8x128xf32>
      %69 = arith.mulf %59, %40 : vector<8x128xf32>
      %70 = arith.addf %68, %69 : vector<8x128xf32>
      %c0_36 = arith.constant 0 : index
      %c0_37 = arith.constant 0 : index
      %71 = vector.load %arg12[%c0_36, %c0_37] : memref<8x256xf32, #tpu.memory_space<vmem>>, vector<8x128xf32>
      tpu.vector_store %arg12[%c0_36, %c0_37], %70 {strides = array<i32>} : memref<8x256xf32, #tpu.memory_space<vmem>>, vector<8x128xf32>,
      %c0_38 = arith.constant 0 : index
      %c0_39 = arith.constant 0 : index
      %72 = vector.load %arg12[%c0_38, %c0_39] : memref<8x256xf32, #tpu.memory_space<vmem>>, vector<8x256xf32>
      %cst_40 = arith.constant dense<0.000000e+00> : vector<8x768xf32>
      %73 = tpu.matmul %72, %17, %cst_40 {dimension_numbers = #tpu.dot_dimension_numbers<[1], [0], [0], [1], [0, 0, 1, 1], [], []>} : vector<8x256xf32>, vector<256x768xf32>, vector<8x768xf32> -> vector<8x768xf32>
      %74 = arith.addf %73, %15 : vector<8x768xf32>
      %75 = vector.extract_strided_slice %74 {offsets = [0, 0], sizes = [8, 384], strides = [1, 1]} : vector<8x768xf32> to vector<8x384xf32>
      %76 = vector.extract_strided_slice %74 {offsets = [0, 384], sizes = [8, 384], strides = [1, 1]} : vector<8x768xf32> to vector<8x384xf32>
      %77 = vector.extract_strided_slice %75 {offsets = [0, 0], sizes = [8, 128], strides = [1, 1]} : vector<8x384xf32> to vector<8x128xf32>
      %78 = vector.extract_strided_slice %76 {offsets = [0, 0], sizes = [8, 128], strides = [1, 1]} : vector<8x384xf32> to vector<8x128xf32>
      %79 = arith.addf %77, %78 : vector<8x128xf32>
      %80 = arith.negf %79 : vector<8x128xf32>
      %81 = math.exp %80 : vector<8x128xf32>
      %cst_41 = arith.constant 1.000000e+00 : f32
      %82 = vector.broadcast %cst_41 : f32 to vector<8x128xf32>
      %83 = arith.addf %82, %81 : vector<8x128xf32>
      %84 = arith.divf %82, %83 : vector<8x128xf32>
      %85 = vector.extract_strided_slice %75 {offsets = [0, 128], sizes = [8, 128], strides = [1, 1]} : vector<8x384xf32> to vector<8x128xf32>
      %86 = vector.extract_strided_slice %76 {offsets = [0, 128], sizes = [8, 128], strides = [1, 1]} : vector<8x384xf32> to vector<8x128xf32>
      %87 = arith.addf %85, %86 : vector<8x128xf32>
      %88 = arith.negf %87 : vector<8x128xf32>
      %89 = math.exp %88 : vector<8x128xf32>
      %cst_42 = arith.constant 1.000000e+00 : f32
      %90 = vector.broadcast %cst_42 : f32 to vector<8x128xf32>
      %91 = arith.addf %90, %89 : vector<8x128xf32>
      %92 = arith.divf %90, %91 : vector<8x128xf32>
      %93 = vector.extract_strided_slice %75 {offsets = [0, 256], sizes = [8, 128], strides = [1, 1]} : vector<8x384xf32> to vector<8x128xf32>
      %94 = vector.extract_strided_slice %76 {offsets = [0, 256], sizes = [8, 128], strides = [1, 1]} : vector<8x384xf32> to vector<8x128xf32>
      %95 = arith.mulf %84, %94 : vector<8x128xf32>
      %96 = arith.addf %93, %95 : vector<8x128xf32>
      %97 = math.tanh %96 : vector<8x128xf32>
      %cst_43 = arith.constant 1.000000e+00 : f32
      %98 = vector.broadcast %cst_43 : f32 to vector<8x128xf32>
      %99 = arith.subf %98, %92 : vector<8x128xf32>
      %100 = arith.mulf %99, %97 : vector<8x128xf32>
      %101 = arith.mulf %92, %41 : vector<8x128xf32>
      %102 = arith.addf %100, %101 : vector<8x128xf32>
      %c0_44 = arith.constant 0 : index
      %c128_45 = arith.constant 128 : index
      %103 = vector.load %arg12[%c0_44, %c128_45] : memref<8x256xf32, #tpu.memory_space<vmem>>, vector<8x128xf32>
      tpu.vector_store %arg12[%c0_44, %c128_45], %102 {strides = array<i32>} : memref<8x256xf32, #tpu.memory_space<vmem>>, vector<8x128xf32>,
    } else {
    }
    %c2_i32 = arith.constant 2 : i32
    %c3_i32_21 = arith.constant 3 : i32
    %28 = arith.muli %arg0, %c3_i32_21 : i32
    %29 = arith.addi %28, %c2_i32 : i32
    %c8_i32_22 = arith.constant 8 : i32
    %30 = arith.cmpi slt, %29, %c8_i32_22 : i32
    %31 = arith.extui %30 : i1 to i32
    %c0_i32_23 = arith.constant 0 : i32
    %32 = arith.cmpi ne, %31, %c0_i32_23 : i32
    scf.if %32 {
      %c8_i32_27 = arith.constant 8 : i32
      %36 = arith.muli %c2_i32, %c8_i32_27 : i32
      %37 = tpu.assume_multiple %36, 8 : i32
      %38 = arith.index_cast %37 : i32 to index
      %c0_28 = arith.constant 0 : index
      %39 = vector.load %arg11[%38, %c0_28] : memref<24x384xf32, #tpu.memory_space<vmem>>, vector<8x384xf32>
      %c0_29 = arith.constant 0 : index
      %c0_30 = arith.constant 0 : index
      %40 = vector.load %arg12[%c0_29, %c0_30] : memref<8x256xf32, #tpu.memory_space<vmem>>, vector<8x128xf32>
      %c0_31 = arith.constant 0 : index
      %c128 = arith.constant 128 : index
      %41 = vector.load %arg12[%c0_31, %c128] : memref<8x256xf32, #tpu.memory_space<vmem>>, vector<8x128xf32>
      %cst_32 = arith.constant dense<0.000000e+00> : vector<8x384xf32>
      %42 = tpu.matmul %40, %16, %cst_32 {dimension_numbers = #tpu.dot_dimension_numbers<[1], [0], [0], [1], [0, 0, 1, 1], [], []>} : vector<8x128xf32>, vector<128x384xf32>, vector<8x384xf32> -> vector<8x384xf32>
      %43 = arith.addf %42, %9 : vector<8x384xf32>
      %44 = vector.extract_strided_slice %39 {offsets = [0, 0], sizes = [8, 128], strides = [1, 1]} : vector<8x384xf32> to vector<8x128xf32>
      %45 = vector.extract_strided_slice %43 {offsets = [0, 0], sizes = [8, 128], strides = [1, 1]} : vector<8x384xf32> to vector<8x128xf32>
      %46 = arith.addf %44, %45 : vector<8x128xf32>
      %47 = arith.negf %46 : vector<8x128xf32>
      %48 = math.exp %47 : vector<8x128xf32>
      %cst_33 = arith.constant 1.000000e+00 : f32
      %49 = vector.broadcast %cst_33 : f32 to vector<8x128xf32>
      %50 = arith.addf %49, %48 : vector<8x128xf32>
      %51 = arith.divf %49, %50 : vector<8x128xf32>
      %52 = vector.extract_strided_slice %39 {offsets = [0, 128], sizes = [8, 128], strides = [1, 1]} : vector<8x384xf32> to vector<8x128xf32>
      %53 = vector.extract_strided_slice %43 {offsets = [0, 128], sizes = [8, 128], strides = [1, 1]} : vector<8x384xf32> to vector<8x128xf32>
      %54 = arith.addf %52, %53 : vector<8x128xf32>
      %55 = arith.negf %54 : vector<8x128xf32>
      %56 = math.exp %55 : vector<8x128xf32>
      %cst_34 = arith.constant 1.000000e+00 : f32
      %57 = vector.broadcast %cst_34 : f32 to vector<8x128xf32>
      %58 = arith.addf %57, %56 : vector<8x128xf32>
      %59 = arith.divf %57, %58 : vector<8x128xf32>
      %60 = vector.extract_strided_slice %39 {offsets = [0, 256], sizes = [8, 128], strides = [1, 1]} : vector<8x384xf32> to vector<8x128xf32>
      %61 = arith.addf %60, %12 : vector<8x128xf32>
      %62 = vector.extract_strided_slice %43 {offsets = [0, 256], sizes = [8, 128], strides = [1, 1]} : vector<8x384xf32> to vector<8x128xf32>
      %63 = arith.mulf %51, %62 : vector<8x128xf32>
      %64 = arith.addf %61, %63 : vector<8x128xf32>
      %65 = math.tanh %64 : vector<8x128xf32>
      %cst_35 = arith.constant 1.000000e+00 : f32
      %66 = vector.broadcast %cst_35 : f32 to vector<8x128xf32>
      %67 = arith.subf %66, %59 : vector<8x128xf32>
      %68 = arith.mulf %67, %65 : vector<8x128xf32>
      %69 = arith.mulf %59, %40 : vector<8x128xf32>
      %70 = arith.addf %68, %69 : vector<8x128xf32>
      %c0_36 = arith.constant 0 : index
      %c0_37 = arith.constant 0 : index
      %71 = vector.load %arg12[%c0_36, %c0_37] : memref<8x256xf32, #tpu.memory_space<vmem>>, vector<8x128xf32>
      tpu.vector_store %arg12[%c0_36, %c0_37], %70 {strides = array<i32>} : memref<8x256xf32, #tpu.memory_space<vmem>>, vector<8x128xf32>,
      %c0_38 = arith.constant 0 : index
      %c0_39 = arith.constant 0 : index
      %72 = vector.load %arg12[%c0_38, %c0_39] : memref<8x256xf32, #tpu.memory_space<vmem>>, vector<8x256xf32>
      %cst_40 = arith.constant dense<0.000000e+00> : vector<8x768xf32>
      %73 = tpu.matmul %72, %17, %cst_40 {dimension_numbers = #tpu.dot_dimension_numbers<[1], [0], [0], [1], [0, 0, 1, 1], [], []>} : vector<8x256xf32>, vector<256x768xf32>, vector<8x768xf32> -> vector<8x768xf32>
      %74 = arith.addf %73, %15 : vector<8x768xf32>
      %75 = vector.extract_strided_slice %74 {offsets = [0, 0], sizes = [8, 384], strides = [1, 1]} : vector<8x768xf32> to vector<8x384xf32>
      %76 = vector.extract_strided_slice %74 {offsets = [0, 384], sizes = [8, 384], strides = [1, 1]} : vector<8x768xf32> to vector<8x384xf32>
      %77 = vector.extract_strided_slice %75 {offsets = [0, 0], sizes = [8, 128], strides = [1, 1]} : vector<8x384xf32> to vector<8x128xf32>
      %78 = vector.extract_strided_slice %76 {offsets = [0, 0], sizes = [8, 128], strides = [1, 1]} : vector<8x384xf32> to vector<8x128xf32>
      %79 = arith.addf %77, %78 : vector<8x128xf32>
      %80 = arith.negf %79 : vector<8x128xf32>
      %81 = math.exp %80 : vector<8x128xf32>
      %cst_41 = arith.constant 1.000000e+00 : f32
      %82 = vector.broadcast %cst_41 : f32 to vector<8x128xf32>
      %83 = arith.addf %82, %81 : vector<8x128xf32>
      %84 = arith.divf %82, %83 : vector<8x128xf32>
      %85 = vector.extract_strided_slice %75 {offsets = [0, 128], sizes = [8, 128], strides = [1, 1]} : vector<8x384xf32> to vector<8x128xf32>
      %86 = vector.extract_strided_slice %76 {offsets = [0, 128], sizes = [8, 128], strides = [1, 1]} : vector<8x384xf32> to vector<8x128xf32>
      %87 = arith.addf %85, %86 : vector<8x128xf32>
      %88 = arith.negf %87 : vector<8x128xf32>
      %89 = math.exp %88 : vector<8x128xf32>
      %cst_42 = arith.constant 1.000000e+00 : f32
      %90 = vector.broadcast %cst_42 : f32 to vector<8x128xf32>
      %91 = arith.addf %90, %89 : vector<8x128xf32>
      %92 = arith.divf %90, %91 : vector<8x128xf32>
      %93 = vector.extract_strided_slice %75 {offsets = [0, 256], sizes = [8, 128], strides = [1, 1]} : vector<8x384xf32> to vector<8x128xf32>
      %94 = vector.extract_strided_slice %76 {offsets = [0, 256], sizes = [8, 128], strides = [1, 1]} : vector<8x384xf32> to vector<8x128xf32>
      %95 = arith.mulf %84, %94 : vector<8x128xf32>
      %96 = arith.addf %93, %95 : vector<8x128xf32>
      %97 = math.tanh %96 : vector<8x128xf32>
      %cst_43 = arith.constant 1.000000e+00 : f32
      %98 = vector.broadcast %cst_43 : f32 to vector<8x128xf32>
      %99 = arith.subf %98, %92 : vector<8x128xf32>
      %100 = arith.mulf %99, %97 : vector<8x128xf32>
      %101 = arith.mulf %92, %41 : vector<8x128xf32>
      %102 = arith.addf %100, %101 : vector<8x128xf32>
      %c0_44 = arith.constant 0 : index
      %c128_45 = arith.constant 128 : index
      %103 = vector.load %arg12[%c0_44, %c128_45] : memref<8x256xf32, #tpu.memory_space<vmem>>, vector<8x128xf32>
      tpu.vector_store %arg12[%c0_44, %c128_45], %102 {strides = array<i32>} : memref<8x256xf32, #tpu.memory_space<vmem>>, vector<8x128xf32>,
    } else {
    }
    %c3_i32_24 = arith.constant 3 : i32
    %c2_i32_25 = arith.constant 2 : i32
    %33 = arith.cmpi eq, %arg0, %c2_i32_25 : i32
    %34 = arith.extui %33 : i1 to i32
    %c0_i32_26 = arith.constant 0 : i32
    %35 = arith.cmpi ne, %34, %c0_i32_26 : i32
    scf.if %35 {
      %c0_27 = arith.constant 0 : index
      %c0_28 = arith.constant 0 : index
      %36 = vector.load %arg9[%c0_27, %c0_28] : memref<1x128xf32, #tpu.memory_space<vmem>>, vector<1x128xf32>
      %37 = vector.shape_cast %36 : vector<1x128xf32> to vector<1x128xf32>
      %38 = vector.broadcast %37 : vector<1x128xf32> to vector<8x128xf32>
      %c0_29 = arith.constant 0 : index
      %c128 = arith.constant 128 : index
      %39 = vector.load %arg12[%c0_29, %c128] : memref<8x256xf32, #tpu.memory_space<vmem>>, vector<8x128xf32>
      %c0_30 = arith.constant 0 : index
      %c0_31 = arith.constant 0 : index
      %40 = vector.load %arg8[%c0_30, %c0_31] : memref<128x128xf32, #tpu.memory_space<vmem>>, vector<128x128xf32>
      %cst_32 = arith.constant dense<0.000000e+00> : vector<8x128xf32>
      %41 = tpu.matmul %39, %40, %cst_32 {dimension_numbers = #tpu.dot_dimension_numbers<[1], [0], [0], [1], [0, 0, 1, 1], [], []>} : vector<8x128xf32>, vector<128x128xf32>, vector<8x128xf32> -> vector<8x128xf32>
      %42 = arith.addf %41, %38 : vector<8x128xf32>
      %c0_33 = arith.constant 0 : index
      %c0_34 = arith.constant 0 : index
      %43 = vector.load %arg10[%c0_33, %c0_34] : memref<8x128xf32, #tpu.memory_space<vmem>>, vector<8x128xf32>
      tpu.vector_store %arg10[%c0_33, %c0_34], %42 {strides = array<i32>} : memref<8x128xf32, #tpu.memory_space<vmem>>, vector<8x128xf32>,
    } else {
    }
    return
  }
  func.func @transform_0(%arg0: i32) -> (i32, i32) {
    %c0_i32 = arith.constant 0 : i32
    %c0_i32_0 = arith.constant 0 : i32
    return %arg0, %c0_i32 : i32, i32
  }
  func.func @transform_1(%arg0: i32) -> (i32, i32) {
    %c0_i32 = arith.constant 0 : i32
    %c0_i32_0 = arith.constant 0 : i32
    %c0_i32_1 = arith.constant 0 : i32
    return %c0_i32, %c0_i32_0 : i32, i32
  }
  func.func @transform_2(%arg0: i32) -> (i32, i32) {
    %c0_i32 = arith.constant 0 : i32
    %c0_i32_0 = arith.constant 0 : i32
    %c0_i32_1 = arith.constant 0 : i32
    return %c0_i32, %c0_i32_0 : i32, i32
  }
  func.func @transform_3(%arg0: i32) -> (i32, i32) {
    %c0_i32 = arith.constant 0 : i32
    %c0_i32_0 = arith.constant 0 : i32
    %c0_i32_1 = arith.constant 0 : i32
    return %c0_i32, %c0_i32_0 : i32, i32
  }
  func.func @transform_4(%arg0: i32) -> (i32, i32) {
    %c0_i32 = arith.constant 0 : i32
    %c0_i32_0 = arith.constant 0 : i32
    %c0_i32_1 = arith.constant 0 : i32
    return %c0_i32, %c0_i32_0 : i32, i32
  }
  func.func @transform_5(%arg0: i32) -> (i32, i32) {
    %c0_i32 = arith.constant 0 : i32
    %c0_i32_0 = arith.constant 0 : i32
    %c0_i32_1 = arith.constant 0 : i32
    return %c0_i32, %c0_i32_0 : i32, i32
  }
  func.func @transform_6(%arg0: i32) -> (i32, i32) {
    %c0_i32 = arith.constant 0 : i32
    %c0_i32_0 = arith.constant 0 : i32
    %c0_i32_1 = arith.constant 0 : i32
    return %c0_i32, %c0_i32_0 : i32, i32
  }
  func.func @transform_7(%arg0: i32) -> (i32, i32) {
    %c0_i32 = arith.constant 0 : i32
    %c0_i32_0 = arith.constant 0 : i32
    %c0_i32_1 = arith.constant 0 : i32
    return %c0_i32, %c0_i32_0 : i32, i32
  }
  func.func @transform_8(%arg0: i32) -> (i32, i32) {
    %c0_i32 = arith.constant 0 : i32
    %c0_i32_0 = arith.constant 0 : i32
    %c0_i32_1 = arith.constant 0 : i32
    return %c0_i32, %c0_i32_0 : i32, i32
  }
  func.func @transform_9(%arg0: i32) -> (i32, i32) {
    %c0_i32 = arith.constant 0 : i32
    %c0_i32_0 = arith.constant 0 : i32
    %c0_i32_1 = arith.constant 0 : i32
    return %c0_i32, %c0_i32_0 : i32, i32
  }
}

</mosaic_0001>

<bundles_post_ra>
// kernel: reverse_gru_encoder.1
= control target key start
LH: loop header
LB: loop body
LE: loop exit
PB: predicated region body
PF: predicated region fallthrough
CT: control target
= control target key end

     0   :  { %14 = vsyncpa [#allocation5], 0  ;;  %s5003_s0 = inlined_call_operand.vmem [shape: f32[72,5], index: 0, kind: input, shape index: {}]   ;;  %s5004_s1 = inlined_call_operand.vmem [shape: f32[5,384], index: 1, kind: input, shape index: {}]   ;;  %s5005_s2 = inlined_call_operand.hbm [shape: f32[128,384], index: 2, kind: input, shape index: {}]   ;;  %s5006_s3 = inlined_call_operand.vmem [shape: f32[1,384], index: 3, kind: input, shape index: {}]   ;;  %s5007_s4 = inlined_call_operand.vmem [shape: f32[1,128], index: 4, kind: input, shape index: {}]   ;;  %s5008_s5 = inlined_call_operand.hbm [shape: f32[256,768], index: 5, kind: input, shape index: {}]   ;;  %s5009_s6 = inlined_call_operand.vmem [shape: f32[1,768], index: 6, kind: input, shape index: {}]   ;;  %s5010_s7 = inlined_call_operand.vmem [shape: f32[128,128], index: 7, kind: input, shape index: {}]   ;;  %s5011_s8 = inlined_call_operand.vmem [shape: f32[1,128], index: 8, kind: input, shape index: {}]   ;;  %s5012_s9 = inlined_call_operand.vmem [shape: f32[8,128], index: 9, kind: output, shape index: {}]  }
   0x1   :  { %15 = vsyncpa [#allocation7], 0  ;;  %s3524_s30 = smov 0  }
   0x2 LB: > { %s3453_s10 = smov [#allocation4]   ;;  %s3530_s12 = sadd.s32 4294967295, %s3451_s30   ;;  %s3451_s30 = sphi %s3524_s30, %s21_s30  }
   0x3   : > { %s256_s11 = sshll.u32 %s3453_s10, 4  ;;  %p2244_p0 = scmp.ge.s32.totalorder %s3451_s30, 1  ;;  %s257_s11 = int_to_ptr.vmem [resolvable:$true] %s256_s11 }
   0x4   : > { %p241_p1 = scmp.lt.s32.totalorder %s3451_s30, 4  ;;  %p5013_p4 = scmp.eq.s32.totalorder %s3530_s12, 0 }
   0x5   : > { %s3454_s14 = smov [#allocation6]   ;;  %s3381_s19 = scalar_lea.hbm %s5005_s2, 6144 }
   0x6   : > { %p3535_p3 = pnand %p2244_p0, %p241_p1  ;;  %s275_s15 = sshll.u32 %s3454_s14, 4  ;;  %s3548_s15 = int_to_ptr.vmem [resolvable:$true] %s275_s15 }
   0x7   : > { %p3382_p7 = scmp.ne.s32.totalorder %s5005_s2, %s3381_s19  ;;  %p3388_p11 = scmp.lt.u32.totalorder %s3381_s19, %s5005_s2 }
   0x8   : > { %s5027_s13 = scalar_select %p3535_p3, 1, 0 }
   0x9   : > { %p3281_p5 = pneg %p3535_p3 }
   0xb   : > { %p3544_p6 = pnand %p5013_p4, %p3281_p5 }
   0xd   : > { %p3383_p8 = pneg %p3544_p6 }
   0xf   : > { %p3384_p9 = pnand %p3383_p8, %p3382_p7 }
  0x11   : > { %p3385_p10 = pneg %p3384_p9 }
  0x13   : > { %p3390_p12 = pnand %p3388_p11, %p3385_p10 }
  0x15   : > { %3393 = shalt.err (!%p3390_p12)
}
  0x16   : > { %s3394_s24 = scalar_lea.vmem %s257_s11, 6144  ;;  %p3402_p5 = scmp.lt.s32.totalorder %s257_s11, %s257_s11 }
  0x17   : > { %p3395_p13 = scmp.ne.s32.totalorder %s257_s11, %s3394_s24  ;;  %p3403_p2 = scmp.lt.s32.totalorder %s3394_s24, %s3394_s24 }
  0x19   : > { %p3397_p0 = pnand %p3395_p13, %p3383_p8  ;;  %p3404_p4 = por %p3403_p2, %p3402_p5 }
  0x1b   : > { %p3398_p1 = pneg %p3397_p0 }
  0x1d   : > { %p3405_p3 = pnand %p3404_p4, %p3398_p1 }
  0x1f   : > { %3408 = shalt.err (!%p3405_p3)
}
  0x20   : > { %s3455_s25 = smov 384   ;;  %s3456_s26 = smov 24  }
  0x21   : > { %3284 = dma.hbm_to_vmem [thread:$0]  (!%p3544_p6), %s5005_s2, 6144, %s257_s11, [#allocation5], %s3455_s25, %s3455_s25, %s3456_s26  }
  0x22   : > { %s3409_s14 = scalar_lea.hbm %s5008_s5, 24576 }
  0x23   : > { %p3410_p7 = scmp.ne.s32.totalorder %s5008_s5, %s3409_s14  ;;  %p3416_p4 = scmp.lt.u32.totalorder %s3409_s14, %s5008_s5 }
  0x25   : > { %p3412_p2 = pnand %p3410_p7, %p3383_p8 }
  0x27   : > { %p3413_p3 = pneg %p3412_p2 }
  0x29   : > { %p3418_p9 = pnand %p3416_p4, %p3413_p3 }
  0x2b   : > { %3421 = shalt.err (!%p3418_p9)
}
  0x2c   : > { %s3422_s11 = scalar_lea.vmem %s3548_s15, 24576  ;;  %p3430_p13 = scmp.lt.s32.totalorder %s3548_s15, %s3548_s15 }
  0x2d   : > { %p3423_p10 = scmp.ne.s32.totalorder %s3548_s15, %s3422_s11  ;;  %p3431_p0 = scmp.lt.s32.totalorder %s3422_s11, %s3422_s11 }
  0x2f   : > { %p3425_p11 = pnand %p3423_p10, %p3383_p8  ;;  %p3432_p1 = por %p3431_p0, %p3430_p13 }
  0x31   : > { %p3426_p12 = pneg %p3425_p11 }
  0x33   : > { %p3433_p5 = pnand %p3432_p1, %p3426_p12 }
  0x35   : > { %3436 = shalt.err (!%p3433_p5)
}
  0x36   : > { %s3457_s21 = smov 768   ;;  %s3458_s22 = smov 48  }
  0x37   : > { %3287 = dma.hbm_to_vmem [thread:$0]  (!%p3544_p6), %s5008_s5, 24576, %s3548_s15, [#allocation7], %s3457_s21, %s3457_s21, %s3458_s22  }
  0x38   : > { %p5029_p7 = scmp.ne.s32.totalorder %s5027_s13, 0 }
  0x3a   : > { %309 = sbr.rel (%p5029_p7) target bundleno = 2390 (0x956), region = 56 }
  0x41   : > { %p5030_p8 = scmp.eq.s32.totalorder %s3530_s12, 0 }
  0x43   : > { %3442 = dma.done.wait (%p5030_p8), [#allocation5], 6144   ;;  %p5031_p2 = pmov %p5030_p8 }
  0x45   : > { %3444 = vsyncadd (%p5031_p2), [#allocation5], 4294961152  ;;  %p5032_p3 = pmov %p5031_p2 }
  0x46   : > { %p5033_p4 = pmov %p5031_p2 }
  0x47   : > { %3446 = dma.done.wait (%p5032_p3), [#allocation7], 24576  }
  0x48   : > { %3448 = vsyncadd (%p5033_p4), [#allocation7], 4294942720  ;;  %s3608_s16 = smul.u32 3, %s3530_s12  ;;  %p5034_p9 = scmp.ne.s32.totalorder %s3530_s12, 0 }
  0x49   : > { %v3459_v0 = vmov (!%p5034_p9), 0.0  }
  0x4a   : > { %p345_p6 = scmp.lt.s32.totalorder %s3608_s16, 8  ;;  %353 = sbr.rel (%p5034_p9) target bundleno = 81 (0x51), region = 68  ;;  %354 = vst [vmem:[#allocation3] sm:$0xff] (!%p5034_p9), %v3459_v0  ;;  %355 = vst [vmem:[#allocation3 + $0x8] sm:$0xff] (!%p5034_p9), %v3459_v0 }
  0x4c   : > { %s346_s13 = scalar_select %p345_p6, %s3608_s16, 8 }
  0x4e   : > { %s2251_s15 = sshll.u32 %s346_s13, 3 }
  0x4f   : > { %s348_s27 = scalar_lea.vmem %s5003_s0, %s2251_s15 }
  0x51 PF: > { %v360_v1 = vld [vmem:[%s5004_s1 + $0x8] sm:$0x1f]  ;;  %vm372_vm0 = vcmask 1044480   ;;  %v359_v2 = vld [vmem:[%s5004_s1] sm:$0x1f]  ;;  %v3460_v3 = vmov 0.0   ;;  %v556_v8 = vlaneseq }
  0x52   : > { %2253 = vmatprep.subr.msk.mxu0 %vm372_vm0, %v360_v1  ;;  %2354 = vmatprep.subr.mxu1 %v3460_v3  ;;  %v361_v4 = vld [vmem:[%s5004_s1 + $0x10] sm:$0x1f]  ;;  %v356_v5 = vld [vmem:[%s348_s27] sm:$0xff]  ;;  %vm362_vm1 = vcmask 39936   ;;  %vm3461_vm2 = vmmov 0   ;;  %v357_v6 = vld [vmem:[%s348_s27 + $0x8] sm:$0xff] }
  0x53   : > { %2254 = vmatpush1.msk.msra.mxu0 %vm372_vm0, %v359_v2  ;;  %446 = vmatprep.mubr.f32.mxu0 %v3460_v3  ;;  %v358_v7 = vld [vmem:[%s348_s27 + $0x10] sm:$0xff]  ;;  %v557_v9 = vshrl.u32 %v556_v8, 7  ;;  %v554_v14 = vld [vmem:[%s5006_s3] sm:$0x7]  ;;  %v3651_v23 = vld [vmem:[#allocation4] sm:$0xff]  ;;  %p2263_p10 = scmp.ge.s32.totalorder %s3608_s16, 8 }
  0x54   : > { %2355 = vmatpush3.msk.msra.mxu1 %vm372_vm0, %v361_v4  ;;  %2356 = vmatprep.mubr.msk.f32.mxu1 %vm3461_vm2, %v3460_v3  ;;  %v578_v15 = vld [vmem:[%s5009_s6] sm:$0x3f]  ;;  %v3663_v29 = vld [vmem:[#allocation4 + $0x10] sm:$0xff]  ;;  %v3665_v30 = vld [vmem:[#allocation4 + $0x18] sm:$0xff]  ;;  %vm3464_vm3 = vmmov (!%p2263_p10), 0  }
  0x55   : > { %2255 = vmatmul.mubr.msk.f32.vlgmr.msra.gmra.mrb[0].mxu0 %vm362_vm1, %v356_v5  ;;  %2357 = vmatmul.mubr.msk.f32.vlgmr.msra.gmra.mrb[0].mxu1 %vm362_vm1, %v356_v5  ;;  %v558_v10 = vsub.s32 0, %v557_v9  ;;  %v562_v11 = vsub.s32 1, %v557_v9  ;;  %v566_v12 = vsub.s32 2, %v557_v9  ;;  %v594_v13 = vsub.s32 3, %v557_v9  ;;  %v3647_v21 = vld [vmem:[%s5007_s4] ss:$0 sm:$0xff] }
  0x56   : > { %452 = vmatprep.mubr.f32.mxu0 %v3460_v3  ;;  %2359 = vmatprep.mubr.msk.f32.mxu1 %vm3461_vm2, %v3460_v3  ;;  %v598_v16 = vsub.s32 4, %v557_v9  ;;  %v602_v17 = vsub.s32 5, %v557_v9  ;;  %5038 = vst [vmem:[#allocation13_spill] sm:$0xff] %v3647_v21  ;;  %v3653_v24 = vld [vmem:[#allocation4 + $0x8] sm:$0xff]  ;;  %v3667_v31 = vld [vmem:[#allocation4 + $0x20] sm:$0xff]  ;;  %v3673_v34 = vld [vmem:[#allocation4 + $0x30] sm:$0xff] }
  0x57   : > { %v3638_v18 = vrot.slane %v554_v14, %v558_v10  ;;  %v3640_v19 = vrot.slane %v554_v14, %v562_v11  ;;  %v3642_v20 = vrot.slane %v554_v14, %v566_v12  ;;  %v3649_v22 = vrot.slane %v578_v15, %v558_v10  ;;  %v3671_v33 = vld [vmem:[#allocation4 + $0x28] sm:$0xff]  ;;  %v3675_v35 = vld [vmem:[#allocation4 + $0x38] sm:$0xff]  ;;  %v3677_v36 = vld [vmem:[#allocation4 + $0x40] sm:$0xff] }
  0x58   : > { %v3655_v25 = vrot.slane %v578_v15, %v562_v11  ;;  %v3657_v26 = vrot.slane %v578_v15, %v566_v12  ;;  %v3659_v27 = vrot.slane %v578_v15, %v594_v13  ;;  %v3661_v28 = vrot.slane %v578_v15, %v598_v16  ;;  %v3679_v37 = vld [vmem:[#allocation4 + $0x48] sm:$0xff]  ;;  %v3681_v38 = vld [vmem:[#allocation4 + $0x50] sm:$0xff]  ;;  %v3683_v39 = vld [vmem:[#allocation4 + $0x58] sm:$0xff] }
  0x59   : > { %2256 = vmatmul.mubr.msk.f32.gmra.mrb[2].mxu0 %vm362_vm1, %v357_v6  ;;  %2360 = vmatmul.mubr.msk.f32.gmra.mrb[2].mxu1 %vm362_vm1, %v357_v6  ;;  %5035 = vst [vmem:[#allocation10_spill] sm:$0xff] %v3638_v18  ;;  %5036 = vst [vmem:[#allocation11_spill] sm:$0xff] %v3640_v19  ;;  %v3669_v32 = vrot.slane %v578_v15, %v602_v17  ;;  %v3685_v40 = vld [vmem:[#allocation4 + $0x60] sm:$0xff]  ;;  %v3687_v41 = vld [vmem:[#allocation4 + $0x68] sm:$0xff] }
  0x5a   : > { %458 = vmatprep.mubr.f32.mxu0 %v3460_v3  ;;  %2362 = vmatprep.mubr.msk.f32.mxu1 %vm3461_vm2, %v3460_v3  ;;  %5037 = vst [vmem:[#allocation12_spill] sm:$0xff] %v3642_v20  ;;  %5039 = vst [vmem:[#allocation14_spill] sm:$0xff] %v3649_v22  ;;  %v3689_v42 = vld [vmem:[#allocation4 + $0x70] sm:$0xff]  ;;  %v3691_v43 = vld [vmem:[#allocation4 + $0x78] sm:$0xff] }
  0x5b   : > { %5040 = vst [vmem:[#allocation15_spill] sm:$0xff] %v3655_v25  ;;  %5041 = vst [vmem:[#allocation16_spill] sm:$0xff] %v3657_v26  ;;  %v3693_v44 = vld [vmem:[#allocation4 + $0x80] sm:$0xff]  ;;  %v3695_v45 = vld [vmem:[#allocation4 + $0x88] sm:$0xff] }
  0x5c   : > { %5042 = vst [vmem:[#allocation17_spill] sm:$0xff] %v3659_v27  ;;  %5043 = vst [vmem:[#allocation18_spill] sm:$0xff] %v3661_v28  ;;  %v3697_v46 = vld [vmem:[#allocation4 + $0x90] sm:$0xff]  ;;  %v3699_v47 = vld [vmem:[#allocation4 + $0x98] sm:$0xff] }
  0x5d   : > { %2257 = vmatmul.mubr.msk.f32.gmra.mrb[4].mxu0 %vm362_vm1, %v358_v7  ;;  %2363 = vmatmul.mubr.msk.f32.gmra.mrb[4].mxu1 %vm362_vm1, %v358_v7  ;;  %5044 = vst [vmem:[#allocation19_spill] sm:$0xff] %v3669_v32  ;;  %5045 = vst [vmem:[#allocation20_spill] sm:$0xff] %v3689_v42  ;;  %v3701_v48 = vld [vmem:[#allocation4 + $0xa0] sm:$0xff]  ;;  %v3703_v49 = vld [vmem:[#allocation4 + $0xa8] sm:$0xff] }
  0x5e   : > { %5046 = vst [vmem:[#allocation21_spill] sm:$0xff] %v3695_v45  ;;  %5047 = vst [vmem:[#allocation22_spill] sm:$0xff] %v3701_v48  ;;  %v3705_v50 = vld [vmem:[#allocation4 + $0xb0] sm:$0xff]  ;;  %v3707_v51 = vld [vmem:[#allocation4 + $0xb8] sm:$0xff] }
  0x5f   : > { %5048 = vst [vmem:[#allocation23_spill] sm:$0xff] %v3707_v51  ;;  %v3709_v52 = vld [vmem:[#allocation4 + $0xc0] sm:$0xff]  ;;  %v3711_v53 = vld [vmem:[#allocation4 + $0xc8] sm:$0xff]  ;;  %v3713_v54 = vld [vmem:[#allocation4 + $0xd0] sm:$0xff] }
  0x60   : > { %5049 = vst [vmem:[#allocation24_spill] sm:$0xff] %v3713_v54  ;;  %v3715_v55 = vld [vmem:[#allocation4 + $0xd8] sm:$0xff]  ;;  %v3717_v56 = vld [vmem:[#allocation4 + $0xe0] sm:$0xff]  ;;  %v3719_v57 = vld [vmem:[#allocation4 + $0xe8] sm:$0xff] }
  0x61   : > { %5050 = vst [vmem:[#allocation25_spill] sm:$0xff] %v3719_v57  ;;  %v3721_v58 = vld [vmem:[#allocation4 + $0xf0] sm:$0xff]  ;;  %v3723_v59 = vld [vmem:[#allocation4 + $0xf8] sm:$0xff]  ;;  %v3725_v60 = vld [vmem:[#allocation4 + $0x100] sm:$0xff] }
  0x62   : > { %5051 = vst [vmem:[#allocation26_spill] sm:$0xff] %v3725_v60  ;;  %v3727_v61 = vld [vmem:[#allocation4 + $0x108] sm:$0xff]  ;;  %v3729_v62 = vld [vmem:[#allocation4 + $0x110] sm:$0xff]  ;;  %v3731_v63 = vld [vmem:[#allocation4 + $0x118] sm:$0xff] }
  0x63   : > { %5052 = vst [vmem:[#allocation27_spill] sm:$0xff] %v3731_v63  ;;  %v3733_v0 = vld [vmem:[#allocation4 + $0x120] sm:$0xff]  ;;  %v3735_v1 = vld [vmem:[#allocation4 + $0x128] sm:$0xff]  ;;  %v3737_v2 = vld [vmem:[#allocation4 + $0x130] sm:$0xff] }
  0x64   : > { %5053 = vst [vmem:[#allocation28_spill] sm:$0xff] %v3737_v2  ;;  %v3739_v3 = vld [vmem:[#allocation4 + $0x138] sm:$0xff]  ;;  %v3741_v4 = vld [vmem:[#allocation4 + $0x140] sm:$0xff]  ;;  %v3743_v5 = vld [vmem:[#allocation4 + $0x148] sm:$0xff] }
  0x65   : > { %5054 = vst [vmem:[#allocation29_spill] sm:$0xff] %v3743_v5  ;;  %v3745_v6 = vld [vmem:[#allocation4 + $0x150] sm:$0xff]  ;;  %v3747_v7 = vld [vmem:[#allocation4 + $0x158] sm:$0xff]  ;;  %v3749_v8 = vld [vmem:[#allocation4 + $0x160] sm:$0xff] }
  0x66   : > { %5055 = vst [vmem:[#allocation30_spill] sm:$0xff] %v3749_v8  ;;  %v3751_v9 = vld [vmem:[#allocation4 + $0x168] sm:$0xff]  ;;  %v3753_v10 = vld [vmem:[#allocation4 + $0x170] sm:$0xff]  ;;  %v3755_v11 = vld [vmem:[#allocation4 + $0x178] sm:$0xff] }
  0x67   : > { %5056 = vst [vmem:[#allocation31_spill] sm:$0xff] %v3755_v11  ;;  %v3757_v12 = vld [vmem:[#allocation6] sm:$0xff]  ;;  %v3759_v13 = vld [vmem:[#allocation6 + $0x8] sm:$0xff]  ;;  %v3761_v14 = vld [vmem:[#allocation6 + $0x10] sm:$0xff] }
  0x68   : > { %5057 = vst [vmem:[#allocation32_spill] sm:$0xff] %v3761_v14  ;;  %v3763_v15 = vld [vmem:[#allocation6 + $0x18] sm:$0xff]  ;;  %v3765_v16 = vld [vmem:[#allocation6 + $0x20] sm:$0xff]  ;;  %v3767_v17 = vld [vmem:[#allocation6 + $0x28] sm:$0xff] }
  0x69   : > { %5058 = vst [vmem:[#allocation33_spill] sm:$0xff] %v3763_v15  ;;  %5059 = vst [vmem:[#allocation34_spill] sm:$0xff] %v3765_v16  ;;  %v3769_v26 = vld [vmem:[#allocation6 + $0x30] sm:$0xff]  ;;  %v3771_v32 = vld [vmem:[#allocation6 + $0x38] sm:$0xff] }
  0x6a   : > { %5060 = vst [vmem:[#allocation35_spill] sm:$0xff] %v3767_v17  ;;  %v3773_v28 = vld [vmem:[#allocation6 + $0x40] sm:$0xff]  ;;  %v3775_v25 = vld [vmem:[#allocation6 + $0x48] sm:$0xff]  ;;  %v3777_v27 = vld [vmem:[#allocation6 + $0x50] sm:$0xff] }
  0x6b   : > { %5061 = vst [vmem:[#allocation36_spill] sm:$0xff] %v3773_v28  ;;  %5062 = vst [vmem:[#allocation37_spill] sm:$0xff] %v3775_v25  ;;  %v3779_v22 = vld [vmem:[#allocation6 + $0x58] sm:$0xff]  ;;  %v3781_v21 = vld [vmem:[#allocation6 + $0x60] sm:$0xff] }
  0x6c   : > { %5063 = vst [vmem:[#allocation38_spill] sm:$0xff] %v3777_v27  ;;  %5064 = vst [vmem:[#allocation39_spill] sm:$0xff] %v3779_v22  ;;  %v3783_v20 = vld [vmem:[#allocation6 + $0x68] sm:$0xff]  ;;  %v3785_v19 = vld [vmem:[#allocation6 + $0x70] sm:$0xff] }
  0x6d   : > { %5065 = vst [vmem:[#allocation40_spill] sm:$0xff] %v3781_v21  ;;  %5066 = vst [vmem:[#allocation41_spill] sm:$0xff] %v3783_v20  ;;  %v3787_v16 = vld [vmem:[#allocation6 + $0x78] sm:$0xff]  ;;  %v3789_v18 = vld [vmem:[#allocation6 + $0x80] sm:$0xff] }
  0x6e   : > { %5067 = vst [vmem:[#allocation42_spill] sm:$0xff] %v3785_v19  ;;  %5068 = vst [vmem:[#allocation43_spill] sm:$0xff] %v3787_v16  ;;  %v3791_v17 = vld [vmem:[#allocation6 + $0x88] sm:$0xff]  ;;  %v3793_v14 = vld [vmem:[#allocation6 + $0x90] sm:$0xff] }
  0x6f   : > { %5069 = vst [vmem:[#allocation44_spill] sm:$0xff] %v3789_v18  ;;  %5070 = vst [vmem:[#allocation45_spill] sm:$0xff] %v3791_v17  ;;  %v3795_v28 = vld [vmem:[#allocation6 + $0x98] sm:$0xff]  ;;  %v3797_v25 = vld [vmem:[#allocation6 + $0xa0] sm:$0xff] }
  0x70   : > { %5071 = vst [vmem:[#allocation46_spill] sm:$0xff] %v3793_v14  ;;  %5072 = vst [vmem:[#allocation47_spill] sm:$0xff] %v3795_v28  ;;  %v3799_v27 = vld [vmem:[#allocation6 + $0xa8] sm:$0xff]  ;;  %v3801_v22 = vld [vmem:[#allocation6 + $0xb0] sm:$0xff] }
  0x71   : > { %5073 = vst [vmem:[#allocation48_spill] sm:$0xff] %v3797_v25  ;;  %5074 = vst [vmem:[#allocation49_spill] sm:$0xff] %v3799_v27  ;;  %v3803_v21 = vld [vmem:[#allocation6 + $0xb8] sm:$0xff]  ;;  %v3805_v20 = vld [vmem:[#allocation6 + $0xc0] sm:$0xff] }
  0x72   : > { %5075 = vst [vmem:[#allocation50_spill] sm:$0xff] %v3801_v22  ;;  %5076 = vst [vmem:[#allocation51_spill] sm:$0xff] %v3803_v21  ;;  %v3807_v19 = vld [vmem:[#allocation6 + $0xc8] sm:$0xff]  ;;  %v3809_v16 = vld [vmem:[#allocation6 + $0xd0] sm:$0xff] }
  0x73   : > { %5077 = vst [vmem:[#allocation52_spill] sm:$0xff] %v3805_v20  ;;  %5078 = vst [vmem:[#allocation53_spill] sm:$0xff] %v3807_v19  ;;  %v3811_v18 = vld [vmem:[#allocation6 + $0xd8] sm:$0xff]  ;;  %v3813_v17 = vld [vmem:[#allocation6 + $0xe0] sm:$0xff] }
  0x74   : > { %5079 = vst [vmem:[#allocation54_spill] sm:$0xff] %v3809_v16  ;;  %5080 = vst [vmem:[#allocation55_spill] sm:$0xff] %v3811_v18  ;;  %v3815_v14 = vld [vmem:[#allocation6 + $0xe8] sm:$0xff]  ;;  %v3817_v28 = vld [vmem:[#allocation6 + $0xf0] sm:$0xff] }
  0x75   : > { %5081 = vst [vmem:[#allocation56_spill] sm:$0xff] %v3813_v17  ;;  %5082 = vst [vmem:[#allocation57_spill] sm:$0xff] %v3815_v14  ;;  %v3819_v25 = vld [vmem:[#allocation6 + $0xf8] sm:$0xff]  ;;  %v3821_v27 = vld [vmem:[#allocation6 + $0x100] sm:$0xff] }
  0x76   : > { %5083 = vst [vmem:[#allocation58_spill] sm:$0xff] %v3817_v28  ;;  %5084 = vst [vmem:[#allocation59_spill] sm:$0xff] %v3819_v25  ;;  %v3823_v22 = vld [vmem:[#allocation6 + $0x108] sm:$0xff]  ;;  %v3825_v21 = vld [vmem:[#allocation6 + $0x110] sm:$0xff] }
  0x77   : > { %5085 = vst [vmem:[#allocation60_spill] sm:$0xff] %v3821_v27  ;;  %5086 = vst [vmem:[#allocation61_spill] sm:$0xff] %v3823_v22  ;;  %v3827_v20 = vld [vmem:[#allocation6 + $0x118] sm:$0xff]  ;;  %v3829_v19 = vld [vmem:[#allocation6 + $0x120] sm:$0xff] }
  0x78   : > { %5087 = vst [vmem:[#allocation62_spill] sm:$0xff] %v3825_v21  ;;  %5088 = vst [vmem:[#allocation63_spill] sm:$0xff] %v3827_v20  ;;  %v3831_v16 = vld [vmem:[#allocation6 + $0x128] sm:$0xff]  ;;  %v3833_v18 = vld [vmem:[#allocation6 + $0x130] sm:$0xff] }
  0x79   : > { %5089 = vst [vmem:[#allocation64_spill] sm:$0xff] %v3829_v19  ;;  %5090 = vst [vmem:[#allocation65_spill] sm:$0xff] %v3831_v16  ;;  %v3835_v17 = vld [vmem:[#allocation6 + $0x138] sm:$0xff]  ;;  %v3837_v14 = vld [vmem:[#allocation6 + $0x140] sm:$0xff] }
  0x7a   : > { %5091 = vst [vmem:[#allocation66_spill] sm:$0xff] %v3833_v18  ;;  %5092 = vst [vmem:[#allocation67_spill] sm:$0xff] %v3835_v17  ;;  %v3839_v28 = vld [vmem:[#allocation6 + $0x148] sm:$0xff]  ;;  %v3841_v25 = vld [vmem:[#allocation6 + $0x150] sm:$0xff] }
  0x7b   : > { %5093 = vst [vmem:[#allocation68_spill] sm:$0xff] %v3837_v14  ;;  %5094 = vst [vmem:[#allocation69_spill] sm:$0xff] %v3839_v28  ;;  %v3843_v27 = vld [vmem:[#allocation6 + $0x158] sm:$0xff]  ;;  %v3845_v22 = vld [vmem:[#allocation6 + $0x160] sm:$0xff] }
  0x7c   : > { %5095 = vst [vmem:[#allocation70_spill] sm:$0xff] %v3841_v25  ;;  %5096 = vst [vmem:[#allocation71_spill] sm:$0xff] %v3843_v27  ;;  %v3847_v21 = vld [vmem:[#allocation6 + $0x168] sm:$0xff]  ;;  %v3849_v20 = vld [vmem:[#allocation6 + $0x170] sm:$0xff] }
  0x7d   : > { %5097 = vst [vmem:[#allocation72_spill] sm:$0xff] %v3845_v22  ;;  %5098 = vst [vmem:[#allocation73_spill] sm:$0xff] %v3847_v21  ;;  %v3851_v19 = vld [vmem:[#allocation6 + $0x178] sm:$0xff]  ;;  %v3853_v16 = vld [vmem:[#allocation6 + $0x180] sm:$0xff] }
  0x7e   : > { %5099 = vst [vmem:[#allocation74_spill] sm:$0xff] %v3849_v20  ;;  %5100 = vst [vmem:[#allocation75_spill] sm:$0xff] %v3851_v19  ;;  %v3855_v18 = vld [vmem:[#allocation6 + $0x188] sm:$0xff]  ;;  %v3857_v17 = vld [vmem:[#allocation6 + $0x190] sm:$0xff] }
  0x7f   : > { %5101 = vst [vmem:[#allocation76_spill] sm:$0xff] %v3853_v16  ;;  %5102 = vst [vmem:[#allocation77_spill] sm:$0xff] %v3855_v18  ;;  %v3859_v14 = vld [vmem:[#allocation6 + $0x198] sm:$0xff]  ;;  %v3861_v28 = vld [vmem:[#allocation6 + $0x1a0] sm:$0xff] }
  0x80   : > { %5103 = vst [vmem:[#allocation78_spill] sm:$0xff] %v3857_v17  ;;  %5104 = vst [vmem:[#allocation79_spill] sm:$0xff] %v3859_v14  ;;  %v3863_v25 = vld [vmem:[#allocation6 + $0x1a8] sm:$0xff]  ;;  %v3865_v27 = vld [vmem:[#allocation6 + $0x1b0] sm:$0xff] }
  0x81   : > { %5105 = vst [vmem:[#allocation80_spill] sm:$0xff] %v3861_v28  ;;  %5106 = vst [vmem:[#allocation81_spill] sm:$0xff] %v3863_v25  ;;  %v3867_v22 = vld [vmem:[#allocation6 + $0x1b8] sm:$0xff]  ;;  %v3869_v21 = vld [vmem:[#allocation6 + $0x1c0] sm:$0xff] }
  0x82   : > { %5107 = vst [vmem:[#allocation82_spill] sm:$0xff] %v3865_v27  ;;  %5108 = vst [vmem:[#allocation83_spill] sm:$0xff] %v3867_v22  ;;  %v3871_v20 = vld [vmem:[#allocation6 + $0x1c8] sm:$0xff]  ;;  %v3873_v19 = vld [vmem:[#allocation6 + $0x1d0] sm:$0xff] }
  0x83   : > { %5109 = vst [vmem:[#allocation84_spill] sm:$0xff] %v3869_v21  ;;  %5110 = vst [vmem:[#allocation85_spill] sm:$0xff] %v3871_v20  ;;  %v3875_v16 = vld [vmem:[#allocation6 + $0x1d8] sm:$0xff]  ;;  %v3877_v18 = vld [vmem:[#allocation6 + $0x1e0] sm:$0xff] }
  0x84   : > { %5111 = vst [vmem:[#allocation86_spill] sm:$0xff] %v3873_v19  ;;  %5112 = vst [vmem:[#allocation87_spill] sm:$0xff] %v3875_v16  ;;  %v3879_v17 = vld [vmem:[#allocation6 + $0x1e8] sm:$0xff]  ;;  %v3881_v14 = vld [vmem:[#allocation6 + $0x1f0] sm:$0xff] }
  0x85   : > { %5113 = vst [vmem:[#allocation88_spill] sm:$0xff] %v3877_v18  ;;  %5114 = vst [vmem:[#allocation89_spill] sm:$0xff] %v3879_v17  ;;  %v3883_v28 = vld [vmem:[#allocation6 + $0x1f8] sm:$0xff]  ;;  %v3885_v25 = vld [vmem:[#allocation6 + $0x200] sm:$0xff] }
  0x86   : > { %5115 = vst [vmem:[#allocation90_spill] sm:$0xff] %v3881_v14  ;;  %5116 = vst [vmem:[#allocation91_spill] sm:$0xff] %v3883_v28  ;;  %v3887_v27 = vld [vmem:[#allocation6 + $0x208] sm:$0xff]  ;;  %v3889_v22 = vld [vmem:[#allocation6 + $0x210] sm:$0xff] }
  0x87   : > { %5117 = vst [vmem:[#allocation92_spill] sm:$0xff] %v3885_v25  ;;  %5118 = vst [vmem:[#allocation93_spill] sm:$0xff] %v3887_v27  ;;  %v3891_v21 = vld [vmem:[#allocation6 + $0x218] sm:$0xff]  ;;  %v3893_v20 = vld [vmem:[#allocation6 + $0x220] sm:$0xff] }
  0x88   : > { %5119 = vst [vmem:[#allocation94_spill] sm:$0xff] %v3889_v22  ;;  %5120 = vst [vmem:[#allocation95_spill] sm:$0xff] %v3891_v21  ;;  %v3895_v19 = vld [vmem:[#allocation6 + $0x228] sm:$0xff]  ;;  %v3897_v16 = vld [vmem:[#allocation6 + $0x230] sm:$0xff] }
  0x89   : > { %5121 = vst [vmem:[#allocation96_spill] sm:$0xff] %v3893_v20  ;;  %5122 = vst [vmem:[#allocation97_spill] sm:$0xff] %v3895_v19  ;;  %v3899_v18 = vld [vmem:[#allocation6 + $0x238] sm:$0xff]  ;;  %v3901_v17 = vld [vmem:[#allocation6 + $0x240] sm:$0xff] }
  0x8a   : > { %5123 = vst [vmem:[#allocation98_spill] sm:$0xff] %v3897_v16  ;;  %5124 = vst [vmem:[#allocation99_spill] sm:$0xff] %v3899_v18  ;;  %v3903_v14 = vld [vmem:[#allocation6 + $0x248] sm:$0xff]  ;;  %v3905_v28 = vld [vmem:[#allocation6 + $0x250] sm:$0xff] }
  0x8b   : > { %5125 = vst [vmem:[#allocation100_spill] sm:$0xff] %v3901_v17  ;;  %5126 = vst [vmem:[#allocation101_spill] sm:$0xff] %v3903_v14  ;;  %v3907_v25 = vld [vmem:[#allocation6 + $0x258] sm:$0xff]  ;;  %v3909_v27 = vld [vmem:[#allocation6 + $0x260] sm:$0xff] }
  0x8c   : > { %5127 = vst [vmem:[#allocation102_spill] sm:$0xff] %v3905_v28  ;;  %5128 = vst [vmem:[#allocation103_spill] sm:$0xff] %v3907_v25  ;;  %v3911_v22 = vld [vmem:[#allocation6 + $0x268] sm:$0xff]  ;;  %v3913_v21 = vld [vmem:[#allocation6 + $0x270] sm:$0xff] }
  0x8d   : > { %5129 = vst [vmem:[#allocation104_spill] sm:$0xff] %v3909_v27  ;;  %5130 = vst [vmem:[#allocation105_spill] sm:$0xff] %v3911_v22  ;;  %v3915_v20 = vld [vmem:[#allocation6 + $0x278] sm:$0xff]  ;;  %v3917_v19 = vld [vmem:[#allocation6 + $0x280] sm:$0xff] }
  0x8e   : > { %5131 = vst [vmem:[#allocation106_spill] sm:$0xff] %v3913_v21  ;;  %5132 = vst [vmem:[#allocation107_spill] sm:$0xff] %v3915_v20  ;;  %v3919_v16 = vld [vmem:[#allocation6 + $0x288] sm:$0xff]  ;;  %v3921_v18 = vld [vmem:[#allocation6 + $0x290] sm:$0xff] }
  0x8f   : > { %5133 = vst [vmem:[#allocation108_spill] sm:$0xff] %v3917_v19  ;;  %5134 = vst [vmem:[#allocation109_spill] sm:$0xff] %v3919_v16  ;;  %v3923_v17 = vld [vmem:[#allocation6 + $0x298] sm:$0xff]  ;;  %v3925_v14 = vld [vmem:[#allocation6 + $0x2a0] sm:$0xff] }
  0x90   : > { %5135 = vst [vmem:[#allocation110_spill] sm:$0xff] %v3921_v18  ;;  %5136 = vst [vmem:[#allocation111_spill] sm:$0xff] %v3923_v17  ;;  %v3927_v28 = vld [vmem:[#allocation6 + $0x2a8] sm:$0xff]  ;;  %v3929_v25 = vld [vmem:[#allocation6 + $0x2b0] sm:$0xff] }
  0x91   : > { %5137 = vst [vmem:[#allocation112_spill] sm:$0xff] %v3925_v14  ;;  %5138 = vst [vmem:[#allocation113_spill] sm:$0xff] %v3927_v28  ;;  %v3931_v27 = vld [vmem:[#allocation6 + $0x2b8] sm:$0xff]  ;;  %v3933_v22 = vld [vmem:[#allocation6 + $0x2c0] sm:$0xff] }
  0x92   : > { %5139 = vst [vmem:[#allocation114_spill] sm:$0xff] %v3929_v25  ;;  %5140 = vst [vmem:[#allocation115_spill] sm:$0xff] %v3931_v27  ;;  %v3935_v21 = vld [vmem:[#allocation6 + $0x2c8] sm:$0xff]  ;;  %v3937_v20 = vld [vmem:[#allocation6 + $0x2d0] sm:$0xff] }
  0x93   : > { %5141 = vst [vmem:[#allocation116_spill] sm:$0xff] %v3933_v22  ;;  %5142 = vst [vmem:[#allocation117_spill] sm:$0xff] %v3935_v21  ;;  %v3939_v19 = vld [vmem:[#allocation6 + $0x2d8] sm:$0xff]  ;;  %v3941_v16 = vld [vmem:[#allocation6 + $0x2e0] sm:$0xff] }
  0x94   : > { %5143 = vst [vmem:[#allocation118_spill] sm:$0xff] %v3937_v20  ;;  %5144 = vst [vmem:[#allocation119_spill] sm:$0xff] %v3939_v19  ;;  %v3943_v18 = vld [vmem:[#allocation6 + $0x2e8] sm:$0xff]  ;;  %v3945_v17 = vld [vmem:[#allocation6 + $0x2f0] sm:$0xff] }
  0x95   : > { %5145 = vst [vmem:[#allocation120_spill] sm:$0xff] %v3941_v16  ;;  %5146 = vst [vmem:[#allocation121_spill] sm:$0xff] %v3943_v18  ;;  %v3947_v14 = vld [vmem:[#allocation6 + $0x2f8] sm:$0xff]  ;;  %v3949_v28 = vld [vmem:[#allocation6 + $0x300] sm:$0xff] }
  0x96   : > { %5147 = vst [vmem:[#allocation122_spill] sm:$0xff] %v3945_v17  ;;  %5148 = vst [vmem:[#allocation123_spill] sm:$0xff] %v3947_v14  ;;  %v3951_v25 = vld [vmem:[#allocation6 + $0x308] sm:$0xff]  ;;  %v3953_v27 = vld [vmem:[#allocation6 + $0x310] sm:$0xff] }
  0x97   : > { %5149 = vst [vmem:[#allocation124_spill] sm:$0xff] %v3949_v28  ;;  %5150 = vst [vmem:[#allocation125_spill] sm:$0xff] %v3951_v25  ;;  %v3955_v22 = vld [vmem:[#allocation6 + $0x318] sm:$0xff]  ;;  %v3957_v21 = vld [vmem:[#allocation6 + $0x320] sm:$0xff] }
  0x98   : > { %5151 = vst [vmem:[#allocation126_spill] sm:$0xff] %v3953_v27  ;;  %5152 = vst [vmem:[#allocation127_spill] sm:$0xff] %v3955_v22  ;;  %v3959_v20 = vld [vmem:[#allocation6 + $0x328] sm:$0xff]  ;;  %v3961_v19 = vld [vmem:[#allocation6 + $0x330] sm:$0xff] }
  0x99   : > { %5153 = vst [vmem:[#allocation128_spill] sm:$0xff] %v3957_v21  ;;  %5154 = vst [vmem:[#allocation129_spill] sm:$0xff] %v3959_v20  ;;  %v3963_v16 = vld [vmem:[#allocation6 + $0x338] sm:$0xff]  ;;  %v3965_v18 = vld [vmem:[#allocation6 + $0x340] sm:$0xff] }
  0x9a   : > { %5155 = vst [vmem:[#allocation130_spill] sm:$0xff] %v3961_v19  ;;  %5156 = vst [vmem:[#allocation131_spill] sm:$0xff] %v3963_v16  ;;  %v3967_v17 = vld [vmem:[#allocation6 + $0x348] sm:$0xff]  ;;  %v3969_v14 = vld [vmem:[#allocation6 + $0x350] sm:$0xff] }
  0x9b   : > { %5157 = vst [vmem:[#allocation132_spill] sm:$0xff] %v3965_v18  ;;  %5158 = vst [vmem:[#allocation133_spill] sm:$0xff] %v3967_v17  ;;  %v3971_v28 = vld [vmem:[#allocation6 + $0x358] sm:$0xff]  ;;  %v3973_v25 = vld [vmem:[#allocation6 + $0x360] sm:$0xff] }
  0x9c   : > { %5159 = vst [vmem:[#allocation134_spill] sm:$0xff] %v3969_v14  ;;  %5160 = vst [vmem:[#allocation135_spill] sm:$0xff] %v3971_v28  ;;  %v3975_v27 = vld [vmem:[#allocation6 + $0x368] sm:$0xff]  ;;  %v3977_v22 = vld [vmem:[#allocation6 + $0x370] sm:$0xff] }
  0x9d   : > { %5161 = vst [vmem:[#allocation136_spill] sm:$0xff] %v3973_v25  ;;  %5162 = vst [vmem:[#allocation137_spill] sm:$0xff] %v3975_v27  ;;  %v3979_v21 = vld [vmem:[#allocation6 + $0x378] sm:$0xff]  ;;  %v3981_v20 = vld [vmem:[#allocation6 + $0x380] sm:$0xff] }
  0x9e   : > { %5163 = vst [vmem:[#allocation138_spill] sm:$0xff] %v3977_v22  ;;  %5164 = vst [vmem:[#allocation139_spill] sm:$0xff] %v3979_v21  ;;  %v3983_v19 = vld [vmem:[#allocation6 + $0x388] sm:$0xff]  ;;  %v3985_v16 = vld [vmem:[#allocation6 + $0x390] sm:$0xff] }
  0x9f   : > { %5165 = vst [vmem:[#allocation140_spill] sm:$0xff] %v3981_v20  ;;  %5166 = vst [vmem:[#allocation141_spill] sm:$0xff] %v3983_v19  ;;  %v3987_v18 = vld [vmem:[#allocation6 + $0x398] sm:$0xff]  ;;  %v3989_v17 = vld [vmem:[#allocation6 + $0x3a0] sm:$0xff] }
  0xa0   : > { %5167 = vst [vmem:[#allocation142_spill] sm:$0xff] %v3985_v16  ;;  %5168 = vst [vmem:[#allocation143_spill] sm:$0xff] %v3987_v18  ;;  %v3991_v14 = vld [vmem:[#allocation6 + $0x3a8] sm:$0xff]  ;;  %v3993_v28 = vld [vmem:[#allocation6 + $0x3b0] sm:$0xff] }
  0xa1   : > { %5169 = vst [vmem:[#allocation144_spill] sm:$0xff] %v3989_v17  ;;  %5170 = vst [vmem:[#allocation145_spill] sm:$0xff] %v3991_v14  ;;  %v3995_v25 = vld [vmem:[#allocation6 + $0x3b8] sm:$0xff]  ;;  %v3997_v27 = vld [vmem:[#allocation6 + $0x3c0] sm:$0xff] }
  0xa2   : > { %5171 = vst [vmem:[#allocation146_spill] sm:$0xff] %v3993_v28  ;;  %5172 = vst [vmem:[#allocation147_spill] sm:$0xff] %v3995_v25  ;;  %v3999_v22 = vld [vmem:[#allocation6 + $0x3c8] sm:$0xff]  ;;  %v4001_v21 = vld [vmem:[#allocation6 + $0x3d0] sm:$0xff] }
  0xa3   : > { %5173 = vst [vmem:[#allocation148_spill] sm:$0xff] %v3997_v27  ;;  %5174 = vst [vmem:[#allocation149_spill] sm:$0xff] %v3999_v22  ;;  %v4003_v20 = vld [vmem:[#allocation6 + $0x3d8] sm:$0xff]  ;;  %v4005_v19 = vld [vmem:[#allocation6 + $0x3e0] sm:$0xff] }
  0xa4   : > { %5175 = vst [vmem:[#allocation150_spill] sm:$0xff] %v4001_v21  ;;  %5176 = vst [vmem:[#allocation151_spill] sm:$0xff] %v4003_v20  ;;  %v4007_v16 = vld [vmem:[#allocation6 + $0x3e8] sm:$0xff]  ;;  %v4009_v18 = vld [vmem:[#allocation6 + $0x3f0] sm:$0xff] }
  0xa5   : > { %5177 = vst [vmem:[#allocation152_spill] sm:$0xff] %v4005_v19  ;;  %5178 = vst [vmem:[#allocation153_spill] sm:$0xff] %v4007_v16  ;;  %v4011_v17 = vld [vmem:[#allocation6 + $0x3f8] sm:$0xff]  ;;  %v4013_v14 = vld [vmem:[#allocation6 + $0x400] sm:$0xff] }
  0xa6   : > { %5179 = vst [vmem:[#allocation154_spill] sm:$0xff] %v4009_v18  ;;  %5180 = vst [vmem:[#allocation155_spill] sm:$0xff] %v4011_v17  ;;  %v4015_v28 = vld [vmem:[#allocation6 + $0x408] sm:$0xff]  ;;  %v4017_v25 = vld [vmem:[#allocation6 + $0x410] sm:$0xff] }
  0xa7   : > { %5181 = vst [vmem:[#allocation156_spill] sm:$0xff] %v4013_v14  ;;  %5182 = vst [vmem:[#allocation157_spill] sm:$0xff] %v4015_v28  ;;  %v4019_v27 = vld [vmem:[#allocation6 + $0x418] sm:$0xff]  ;;  %v4021_v22 = vld [vmem:[#allocation6 + $0x420] sm:$0xff] }
  0xa8   : > { %5183 = vst [vmem:[#allocation158_spill] sm:$0xff] %v4017_v25  ;;  %5184 = vst [vmem:[#allocation159_spill] sm:$0xff] %v4019_v27  ;;  %v4023_v21 = vld [vmem:[#allocation6 + $0x428] sm:$0xff]  ;;  %v4025_v20 = vld [vmem:[#allocation6 + $0x430] sm:$0xff] }
  0xa9   : > { %5185 = vst [vmem:[#allocation160_spill] sm:$0xff] %v4021_v22  ;;  %5186 = vst [vmem:[#allocation161_spill] sm:$0xff] %v4023_v21  ;;  %v4027_v19 = vld [vmem:[#allocation6 + $0x438] sm:$0xff]  ;;  %v4029_v16 = vld [vmem:[#allocation6 + $0x440] sm:$0xff] }
  0xaa   : > { %5187 = vst [vmem:[#allocation162_spill] sm:$0xff] %v4025_v20  ;;  %5188 = vst [vmem:[#allocation163_spill] sm:$0xff] %v4027_v19  ;;  %v4031_v18 = vld [vmem:[#allocation6 + $0x448] sm:$0xff]  ;;  %v4033_v17 = vld [vmem:[#allocation6 + $0x450] sm:$0xff] }
  0xab   : > { %5189 = vst [vmem:[#allocation164_spill] sm:$0xff] %v4029_v16  ;;  %5190 = vst [vmem:[#allocation165_spill] sm:$0xff] %v4031_v18  ;;  %v4035_v14 = vld [vmem:[#allocation6 + $0x458] sm:$0xff]  ;;  %v4037_v28 = vld [vmem:[#allocation6 + $0x460] sm:$0xff] }
  0xac   : > { %5191 = vst [vmem:[#allocation166_spill] sm:$0xff] %v4033_v17  ;;  %5192 = vst [vmem:[#allocation167_spill] sm:$0xff] %v4035_v14  ;;  %v4039_v25 = vld [vmem:[#allocation6 + $0x468] sm:$0xff]  ;;  %v4041_v27 = vld [vmem:[#allocation6 + $0x470] sm:$0xff] }
  0xad   : > { %5193 = vst [vmem:[#allocation168_spill] sm:$0xff] %v4037_v28  ;;  %5194 = vst [vmem:[#allocation169_spill] sm:$0xff] %v4039_v25  ;;  %v4043_v22 = vld [vmem:[#allocation6 + $0x478] sm:$0xff]  ;;  %v4045_v21 = vld [vmem:[#allocation6 + $0x480] sm:$0xff] }
  0xae   : > { %5195 = vst [vmem:[#allocation170_spill] sm:$0xff] %v4041_v27  ;;  %5196 = vst [vmem:[#allocation171_spill] sm:$0xff] %v4043_v22  ;;  %v4047_v20 = vld [vmem:[#allocation6 + $0x488] sm:$0xff]  ;;  %v4049_v19 = vld [vmem:[#allocation6 + $0x490] sm:$0xff] }
  0xaf   : > { %5197 = vst [vmem:[#allocation172_spill] sm:$0xff] %v4045_v21  ;;  %5198 = vst [vmem:[#allocation173_spill] sm:$0xff] %v4047_v20  ;;  %v4051_v16 = vld [vmem:[#allocation6 + $0x498] sm:$0xff]  ;;  %v4053_v18 = vld [vmem:[#allocation6 + $0x4a0] sm:$0xff] }
  0xb0   : > { %5199 = vst [vmem:[#allocation174_spill] sm:$0xff] %v4049_v19  ;;  %5200 = vst [vmem:[#allocation175_spill] sm:$0xff] %v4051_v16  ;;  %v4055_v17 = vld [vmem:[#allocation6 + $0x4a8] sm:$0xff]  ;;  %v4057_v14 = vld [vmem:[#allocation6 + $0x4b0] sm:$0xff] }
  0xb1   : > { %5201 = vst [vmem:[#allocation176_spill] sm:$0xff] %v4053_v18  ;;  %5202 = vst [vmem:[#allocation177_spill] sm:$0xff] %v4055_v17  ;;  %v4059_v28 = vld [vmem:[#allocation6 + $0x4b8] sm:$0xff]  ;;  %v4061_v25 = vld [vmem:[#allocation6 + $0x4c0] sm:$0xff] }
  0xb2   : > { %5203 = vst [vmem:[#allocation178_spill] sm:$0xff] %v4057_v14  ;;  %5204 = vst [vmem:[#allocation179_spill] sm:$0xff] %v4059_v28  ;;  %v4063_v27 = vld [vmem:[#allocation6 + $0x4c8] sm:$0xff]  ;;  %v4065_v22 = vld [vmem:[#allocation6 + $0x4d0] sm:$0xff] }
  0xb3   : > { %5205 = vst [vmem:[#allocation180_spill] sm:$0xff] %v4061_v25  ;;  %5206 = vst [vmem:[#allocation181_spill] sm:$0xff] %v4063_v27  ;;  %v4067_v21 = vld [vmem:[#allocation6 + $0x4d8] sm:$0xff]  ;;  %v4069_v20 = vld [vmem:[#allocation6 + $0x4e0] sm:$0xff] }
  0xb4   : > { %5207 = vst [vmem:[#allocation182_spill] sm:$0xff] %v4065_v22  ;;  %5208 = vst [vmem:[#allocation183_spill] sm:$0xff] %v4067_v21  ;;  %v4071_v19 = vld [vmem:[#allocation6 + $0x4e8] sm:$0xff]  ;;  %v4073_v16 = vld [vmem:[#allocation6 + $0x4f0] sm:$0xff] }
  0xb5   : > { %5209 = vst [vmem:[#allocation184_spill] sm:$0xff] %v4069_v20  ;;  %5210 = vst [vmem:[#allocation185_spill] sm:$0xff] %v4071_v19  ;;  %v4075_v18 = vld [vmem:[#allocation6 + $0x4f8] sm:$0xff]  ;;  %v4077_v17 = vld [vmem:[#allocation6 + $0x500] sm:$0xff] }
  0xb6   : > { %5211 = vst [vmem:[#allocation186_spill] sm:$0xff] %v4073_v16  ;;  %5212 = vst [vmem:[#allocation187_spill] sm:$0xff] %v4075_v18  ;;  %v4079_v14 = vld [vmem:[#allocation6 + $0x508] sm:$0xff]  ;;  %v4081_v28 = vld [vmem:[#allocation6 + $0x510] sm:$0xff] }
  0xb7   : > { %5213 = vst [vmem:[#allocation188_spill] sm:$0xff] %v4077_v17  ;;  %5214 = vst [vmem:[#allocation189_spill] sm:$0xff] %v4079_v14  ;;  %v4083_v25 = vld [vmem:[#allocation6 + $0x518] sm:$0xff]  ;;  %v4085_v27 = vld [vmem:[#allocation6 + $0x520] sm:$0xff] }
  0xb8   : > { %5215 = vst [vmem:[#allocation190_spill] sm:$0xff] %v4081_v28  ;;  %5216 = vst [vmem:[#allocation191_spill] sm:$0xff] %v4083_v25  ;;  %v4087_v22 = vld [vmem:[#allocation6 + $0x528] sm:$0xff]  ;;  %v4089_v21 = vld [vmem:[#allocation6 + $0x530] sm:$0xff] }
  0xb9   : > { %5217 = vst [vmem:[#allocation192_spill] sm:$0xff] %v4085_v27  ;;  %5218 = vst [vmem:[#allocation193_spill] sm:$0xff] %v4087_v22  ;;  %v4091_v20 = vld [vmem:[#allocation6 + $0x538] sm:$0xff]  ;;  %v4093_v19 = vld [vmem:[#allocation6 + $0x540] sm:$0xff] }
  0xba   : > { %5219 = vst [vmem:[#allocation194_spill] sm:$0xff] %v4089_v21  ;;  %5220 = vst [vmem:[#allocation195_spill] sm:$0xff] %v4091_v20  ;;  %v4095_v16 = vld [vmem:[#allocation6 + $0x548] sm:$0xff]  ;;  %v4097_v18 = vld [vmem:[#allocation6 + $0x550] sm:$0xff] }
  0xbb   : > { %5221 = vst [vmem:[#allocation196_spill] sm:$0xff] %v4093_v19  ;;  %5222 = vst [vmem:[#allocation197_spill] sm:$0xff] %v4095_v16  ;;  %v4099_v17 = vld [vmem:[#allocation6 + $0x558] sm:$0xff]  ;;  %v4101_v14 = vld [vmem:[#allocation6 + $0x560] sm:$0xff] }
  0xbc   : > { %5223 = vst [vmem:[#allocation198_spill] sm:$0xff] %v4097_v18  ;;  %5224 = vst [vmem:[#allocation199_spill] sm:$0xff] %v4099_v17  ;;  %v4103_v28 = vld [vmem:[#allocation6 + $0x568] sm:$0xff]  ;;  %v4105_v25 = vld [vmem:[#allocation6 + $0x570] sm:$0xff] }
  0xbd   : > { %5225 = vst [vmem:[#allocation200_spill] sm:$0xff] %v4101_v14  ;;  %5226 = vst [vmem:[#allocation201_spill] sm:$0xff] %v4103_v28  ;;  %v4107_v27 = vld [vmem:[#allocation6 + $0x578] sm:$0xff]  ;;  %v4109_v22 = vld [vmem:[#allocation6 + $0x580] sm:$0xff] }
  0xbe   : > { %5227 = vst [vmem:[#allocation202_spill] sm:$0xff] %v4105_v25  ;;  %5228 = vst [vmem:[#allocation203_spill] sm:$0xff] %v4107_v27  ;;  %v4111_v21 = vld [vmem:[#allocation6 + $0x588] sm:$0xff]  ;;  %v4113_v20 = vld [vmem:[#allocation6 + $0x590] sm:$0xff] }
  0xbf   : > { %5229 = vst [vmem:[#allocation204_spill] sm:$0xff] %v4109_v22  ;;  %5230 = vst [vmem:[#allocation205_spill] sm:$0xff] %v4111_v21  ;;  %v4115_v19 = vld [vmem:[#allocation6 + $0x598] sm:$0xff]  ;;  %v4117_v16 = vld [vmem:[#allocation6 + $0x5a0] sm:$0xff] }
  0xc0   : > { %5231 = vst [vmem:[#allocation206_spill] sm:$0xff] %v4113_v20  ;;  %5232 = vst [vmem:[#allocation207_spill] sm:$0xff] %v4115_v19  ;;  %v4119_v18 = vld [vmem:[#allocation6 + $0x5a8] sm:$0xff]  ;;  %v4121_v17 = vld [vmem:[#allocation6 + $0x5b0] sm:$0xff] }
  0xc1   : > { %5233 = vst [vmem:[#allocation208_spill] sm:$0xff] %v4117_v16  ;;  %5234 = vst [vmem:[#allocation209_spill] sm:$0xff] %v4119_v18  ;;  %v4123_v14 = vld [vmem:[#allocation6 + $0x5b8] sm:$0xff]  ;;  %v4125_v28 = vld [vmem:[#allocation6 + $0x5c0] sm:$0xff] }
  0xc2   : > { %5235 = vst [vmem:[#allocation210_spill] sm:$0xff] %v4121_v17  ;;  %5236 = vst [vmem:[#allocation211_spill] sm:$0xff] %v4123_v14  ;;  %v4127_v25 = vld [vmem:[#allocation6 + $0x5c8] sm:$0xff]  ;;  %v4129_v27 = vld [vmem:[#allocation6 + $0x5d0] sm:$0xff] }
  0xc3   : > { %5237 = vst [vmem:[#allocation212_spill] sm:$0xff] %v4125_v28  ;;  %5238 = vst [vmem:[#allocation213_spill] sm:$0xff] %v4127_v25  ;;  %v4131_v22 = vld [vmem:[#allocation6 + $0x5d8] sm:$0xff]  ;;  %v4133_v21 = vld [vmem:[#allocation6 + $0x5e0] sm:$0xff] }
  0xc4   : > { %5239 = vst [vmem:[#allocation214_spill] sm:$0xff] %v4129_v27  ;;  %5240 = vst [vmem:[#allocation215_spill] sm:$0xff] %v4131_v22  ;;  %v4135_v20 = vld [vmem:[#allocation6 + $0x5e8] sm:$0xff]  ;;  %v4137_v19 = vld [vmem:[#allocation6 + $0x5f0] sm:$0xff] }
  0xc5   : > { %5241 = vst [vmem:[#allocation216_spill] sm:$0xff] %v4133_v21  ;;  %5242 = vst [vmem:[#allocation217_spill] sm:$0xff] %v4135_v20  ;;  %v4139_v16 = vld [vmem:[#allocation6 + $0x5f8] sm:$0xff] }
  0xc6   : > { %5243 = vst [vmem:[#allocation218_spill] sm:$0xff] %v4137_v19  ;;  %5244 = vst [vmem:[#allocation219_spill] sm:$0xff] %v4139_v16 }
 0x128   : > { %v448_v18 = vpop.f32.mrb[0].mxu0  ;;  %v531_v17 = vpop.f32.mrb[0].mxu1 }
 0x129   : > { %545 = vst [vmem:[#allocation2] sm:$0xff] %v448_v18  ;;  %547 = vst [vmem:[#allocation2 + $0x10] sm:$0xff] %v531_v17  ;;  %v450_v14 = vpop.f32.mrb[1].mxu0  ;;  %v2358_v28 = vpop.f32.mrb[1].mxu1  ;;  %v2505_v18 = vpack.c.bf16 (!%p2263_p10), %v3667_v31, %v3653_v24  ;;  %v2521_v17 = vpack.c.bf16 (!%p2263_p10), %v3717_v56, %v3711_v53 }
 0x12a   : > { %546 = vst [vmem:[#allocation2 + $0x8] sm:$0xff] %v450_v14  ;;  %v2515_v28 = vpack.c.bf16 (!%p2263_p10), %v3691_v43, %v3685_v40  ;;  %v2563_v14 = vpack.c.bf16 (!%p2263_p10), %v3769_v26, %v3757_v12 }
 0x12b   : > { %2506 = vmatprep.subr.bf16.mxu1 (!%p2263_p10), %v2505_v18  ;;  %v2523_v18 = vpack.c.bf16 (!%p2263_p10), %v3715_v55, %v3709_v52 }
 0x12c   : > { %v454_v25 = vpop.f32.mrb[2].mxu0  ;;  %v536_v15 = vpop.f32.mrb[2].mxu1  ;;  %854 = sbr.rel (%p2263_p10) target bundleno = 912 (0x390), region = 72 }
 0x12d   : > { %548 = vst [vmem:[#allocation2 + $0x18] sm:$0xff] %v454_v25  ;;  %550 = vst [vmem:[#allocation2 + $0x28] sm:$0xff] %v536_v15  ;;  %v456_v27 = vpop.f32.mrb[3].mxu0  ;;  %v2361_v22 = vpop.f32.mrb[3].mxu1  ;;  %v2507_v25 = vpack.c.bf16 (!%p2263_p10), %v3665_v30, %v3651_v23  ;;  %v2517_v15 = vpack.c.bf16 (!%p2263_p10), %v3705_v50, %v3699_v47 }
 0x12e   : > { %549 = vst [vmem:[#allocation2 + $0x20] sm:$0xff] %v456_v27  ;;  %v2509_v22 = vpack.c.bf16 (!%p2263_p10), %v3681_v38, %v3675_v35  ;;  %v2561_v27 = vpack.c.bf16 (!%p2263_p10), %v3771_v32, %v3759_v13 }
 0x12f   : > { %2508 = vmatpush1.bf16.msra.mxu1 (!%p2263_p10), %v2507_v25  ;;  %v2525_v25 = vpack.c.bf16 (!%p2263_p10), %v3729_v62, %v3723_v59 }
 0x130   : > { %v460_v21 = vpop.f32.mrb[4].mxu0  ;;  %v541_v20 = vpop.f32.mrb[4].mxu1  ;;  %2510 = vmatprep.subr.bf16.mxu1 (!%p2263_p10), %v2509_v22  ;;  %2562 = vmatprep.subr.bf16.mxu0 (!%p2263_p10), %v2561_v27  ;;  %v2527_v22 = vpack.c.bf16 (!%p2263_p10), %v3727_v61, %v3721_v58  ;;  %v2533_v27 = vpack.c.bf16 (!%p2263_p10), %v3753_v10, %v3747_v7 }
 0x131   : > { %551 = vst [vmem:[#allocation2 + $0x30] sm:$0xff] %v460_v21  ;;  %553 = vst [vmem:[#allocation2 + $0x40] sm:$0xff] %v541_v20  ;;  %v462_v19 = vpop.f32.mrb[5].mxu0  ;;  %v2364_v16 = vpop.f32.mrb[5].mxu1  ;;  %v2511_v20 = vpack.c.bf16 (!%p2263_p10), %v3679_v37, %v3673_v34  ;;  %v3462_v21 = vmov (!%p2263_p10), 0.0   ;;  %2564 = vmatpush1.bf16.msra.mxu0 (!%p2263_p10), %v2563_v14  ;;  %v4178_v14 = vld [vmem:[#allocation3] sm:$0xff] (!%p2263_p10) }
 0x132   : > { %552 = vst [vmem:[#allocation2 + $0x38] sm:$0xff] %v462_v19  ;;  %v2513_v19 = vpack.c.bf16 (!%p2263_p10), %v3693_v44, %v3687_v41  ;;  %927 = vmatprep.mubr.f32.mxu1 (!%p2263_p10), %v3462_v21  ;;  %v2519_v16 = vpack.c.bf16 (!%p2263_p10), %v3703_v49, %v3697_v46 }
 0x133   : > { %2512 = vmatpush1.bf16.msra.mxu1 %v2511_v20  ;;  %v2529_v20 = vpack.c.bf16 %v3741_v4, %v3735_v1 }
 0x134   : > { %2514 = vmatprep.subr.bf16.mxu1 %v2513_v19  ;;  %v2531_v19 = vpack.c.bf16 %v3739_v3, %v3733_v0 }
 0x137   : > { %2516 = vmatpush1.bf16.msra.mxu1 %v2515_v28  ;;  %v2535_v28 = vpack.c.bf16 %v3751_v9, %v3745_v6 }
 0x138   : > { %2518 = vmatprep.subr.bf16.mxu1 %v2517_v15  ;;  %v2538_v15 = vpack.c.bf16 %v3671_v33, %v3663_v29 }
 0x13b   : > { %2520 = vmatpush1.bf16.msra.mxu1 %v2519_v16  ;;  %v3463_v16 = vmov 0.0|0.0  }
 0x13c   : > { %2522 = vmatprep.subr.bf16.mxu1 %v2521_v17  ;;  %v2541_v17 = vpack.c.bf16 %v3683_v39, %v3677_v36 }
 0x13f   : > { %2524 = vmatpush1.bf16.msra.mxu1 %v2523_v18  ;;  %v2544_v18 = vpack.c.bf16 %v3695_v45, %v3689_v42 }
 0x140   : > { %2526 = vmatprep.subr.bf16.mxu1 %v2525_v25  ;;  %v2547_v25 = vpack.c.bf16 %v3707_v51, %v3701_v48  ;;  %v5373_v51 = vld [vmem:[#allocation12_spill] sm:$0xff] }
 0x143   : > { %2528 = vmatpush1.bf16.msra.mxu1 %v2527_v22  ;;  %v2550_v22 = vpack.c.bf16 %v3719_v57, %v3713_v54 }
 0x144   : > { %2530 = vmatprep.subr.bf16.mxu1 %v2529_v20  ;;  %v2556_v20 = vpack.c.bf16 %v3743_v5, %v3737_v2  ;;  %v5251_v2 = vld [vmem:[#allocation40_spill] sm:$0xff] }
 0x147   : > { %2532 = vmatpush1.bf16.msra.mxu1 %v2531_v19  ;;  %v2559_v19 = vpack.c.bf16 %v3755_v11, %v3749_v8  ;;  %v5254_v11 = vld [vmem:[#allocation49_spill] sm:$0xff]  ;;  %v5255_v8 = vld [vmem:[#allocation42_spill] sm:$0xff] }
 0x148   : > { %2534 = vmatprep.subr.bf16.mxu1 %v2533_v27  ;;  %v5245_v27 = vld [vmem:[#allocation33_spill] sm:$0xff] }
 0x14b   : > { %2536 = vmatpush1.bf16.msra.mxu1 %v2535_v28  ;;  %v5246_v28 = vld [vmem:[#allocation37_spill] sm:$0xff] }
 0x14c   : > { %2537 = vmatprep.subr.bf16.mxu1 %v3463_v16 }
 0x14e   : > { %928 = vmatmul.mubr.f32.vlgmr.msra.gmra.mrb[0].mxu1 %v4178_v14 }
 0x14f   : > { %2539 = vmatpush3.bf16.msra.mxu1 %v2538_v15  ;;  %2397 = vmatprep.mubr.msk.f32.mxu1 %vm3464_vm3, %v3462_v21  ;;  %v2553_v21 = vpack.c.bf16 %v3731_v63, %v3725_v60  ;;  %v2625_v15 = vpack.c.bf16 %v5246_v28, %v5245_v27  ;;  %v5253_v60 = vld [vmem:[#allocation43_spill] sm:$0xff]  ;;  %v5256_v27 = vld [vmem:[#allocation48_spill] sm:$0xff]  ;;  %v5257_v28 = vld [vmem:[#allocation53_spill] sm:$0xff] }
 0x150   : > { %2540 = vmatprep.subr.bf16.mxu1 %v3463_v16 }
 0x153   : > { %2542 = vmatpush3.bf16.msra.mxu1 %v2541_v17  ;;  %v5247_v17 = vld [vmem:[#allocation32_spill] sm:$0xff] }
 0x154   : > { %2543 = vmatprep.subr.bf16.mxu1 %v3463_v16 }
 0x157   : > { %2545 = vmatpush3.bf16.msra.mxu1 %v2544_v18  ;;  %v5248_v18 = vld [vmem:[#allocation36_spill] sm:$0xff] }
 0x158   : > { %2546 = vmatprep.subr.bf16.mxu1 %v3463_v16 }
 0x15b   : > { %2548 = vmatpush3.bf16.msra.mxu1 %v2547_v25  ;;  %v2627_v25 = vpack.c.bf16 %v5248_v18, %v5247_v17  ;;  %v5259_v18 = vld [vmem:[#allocation52_spill] sm:$0xff] }
 0x15c   : > { %2549 = vmatprep.subr.bf16.mxu1 %v3463_v16 }
 0x15f   : > { %2551 = vmatpush3.bf16.msra.mxu1 %v2550_v22  ;;  %v5249_v22 = vld [vmem:[#allocation41_spill] sm:$0xff] }
 0x160   : > { %2552 = vmatprep.subr.bf16.mxu1 %v3463_v16 }
 0x163   : > { %2554 = vmatpush3.bf16.msra.mxu1 %v2553_v21  ;;  %v5250_v21 = vld [vmem:[#allocation47_spill] sm:$0xff] }
 0x164   : > { %2555 = vmatprep.subr.bf16.mxu1 %v3463_v16  ;;  %v2565_v5 = vpack.c.bf16 %v5250_v21, %v5249_v22  ;;  %v5261_v22 = vld [vmem:[#allocation55_spill] sm:$0xff]  ;;  %v5262_v21 = vld [vmem:[#allocation61_spill] sm:$0xff] }
 0x165   : > { %v2633_v54 = vpack.c.bf16 %v5262_v21, %v5261_v22  ;;  %v5275_v21 = vld [vmem:[#allocation76_spill] sm:$0xff] }
 0x166   : > { %2566 = vmatprep.subr.bf16.mxu0 %v2565_v5  ;;  %v5265_v5 = vld [vmem:[#allocation65_spill] sm:$0xff] }
 0x167   : > { %2557 = vmatpush3.bf16.msra.mxu1 %v2556_v20  ;;  %v5252_v20 = vld [vmem:[#allocation46_spill] sm:$0xff] }
 0x168   : > { %2558 = vmatprep.subr.bf16.mxu1 %v3463_v16  ;;  %v2567_v63 = vpack.c.bf16 %v5252_v20, %v5251_v2  ;;  %v2629_v16 = vpack.c.bf16 %v5254_v11, %v5253_v60  ;;  %v5263_v2 = vld [vmem:[#allocation54_spill] sm:$0xff]  ;;  %v5264_v20 = vld [vmem:[#allocation60_spill] sm:$0xff] }
 0x169   : > { %v2635_v60 = vpack.c.bf16 %v5264_v20, %v5263_v2  ;;  %v5267_v11 = vld [vmem:[#allocation64_spill] sm:$0xff]  ;;  %v5276_v2 = vld [vmem:[#allocation82_spill] sm:$0xff] }
 0x16a   : > { %2568 = vmatpush1.bf16.msra.mxu0 %v2567_v63  ;;  %v5266_v63 = vld [vmem:[#allocation71_spill] sm:$0xff]  ;;  %v2579_v20 = vpack.c.bf16 %v5276_v2, %v5275_v21  ;;  %v5287_v21 = vld [vmem:[#allocation90_spill] sm:$0xff]  ;;  %v5288_v2 = vld [vmem:[#allocation96_spill] sm:$0xff] }
 0x16b   : > { %2560 = vmatpush3.bf16.msra.mxu1 %v2559_v19  ;;  %v2631_v19 = vpack.c.bf16 %v5256_v27, %v5255_v8  ;;  %v2573_v8 = vpack.c.bf16 %v5266_v63, %v5265_v5  ;;  %v5278_v5 = vld [vmem:[#allocation85_spill] sm:$0xff] }
 0x16c   : > { %2626 = vmatprep.subr.bf16.mxu1 %v2625_v15  ;;  %v5258_v15 = vld [vmem:[#allocation59_spill] sm:$0xff] }
 0x16d   : > { %v2569_v17 = vpack.c.bf16 %v5258_v15, %v5257_v28  ;;  %v5270_v28 = vld [vmem:[#allocation73_spill] sm:$0xff] }
 0x16e   : > { %2398 = vmatmul.mubr.f32.vlgmr.msra.gmra.mrb[2].mxu1 %v4178_v14 }
 0x16f   : > { %2628 = vmatpush1.bf16.msra.mxu1 %v2627_v25  ;;  %v5260_v25 = vld [vmem:[#allocation58_spill] sm:$0xff]  ;;  %2570 = vmatprep.subr.bf16.mxu0 %v2569_v17  ;;  %v5273_v17 = vld [vmem:[#allocation77_spill] sm:$0xff] }
 0x170   : > { %2630 = vmatprep.subr.bf16.mxu1 %v2629_v16  ;;  %v2571_v57 = vpack.c.bf16 %v5260_v25, %v5259_v18  ;;  %v5268_v16 = vld [vmem:[#allocation70_spill] sm:$0xff]  ;;  %v5272_v25 = vld [vmem:[#allocation72_spill] sm:$0xff] }
 0x171   : > { %v2575_v27 = vpack.c.bf16 %v5268_v16, %v5267_v11  ;;  %v5271_v18 = vld [vmem:[#allocation66_spill] sm:$0xff]  ;;  %v5280_v16 = vld [vmem:[#allocation84_spill] sm:$0xff] }
 0x172   : > { %2572 = vmatpush1.bf16.msra.mxu0 %v2571_v57  ;;  %v2639_v22 = vpack.c.bf16 %v5272_v25, %v5271_v18  ;;  %v5274_v57 = vld [vmem:[#allocation83_spill] sm:$0xff]  ;;  %v5279_v11 = vld [vmem:[#allocation78_spill] sm:$0xff] }
 0x173   : > { %2632 = vmatpush1.bf16.msra.mxu1 %v2631_v19  ;;  %v5269_v19 = vld [vmem:[#allocation67_spill] sm:$0xff]  ;;  %2574 = vmatprep.subr.bf16.mxu0 %v2573_v8  ;;  %v5281_v8 = vld [vmem:[#allocation89_spill] sm:$0xff]  ;;  %v5284_v18 = vld [vmem:[#allocation94_spill] sm:$0xff] }
 0x174   : > { %2634 = vmatprep.subr.bf16.mxu1 %v2633_v54  ;;  %v2637_v15 = vpack.c.bf16 %v5270_v28, %v5269_v19  ;;  %v2577_v54 = vpack.c.bf16 %v5274_v57, %v5273_v17  ;;  %v2643_v19 = vpack.c.bf16 %v5280_v16, %v5279_v11  ;;  %v5286_v17 = vld [vmem:[#allocation97_spill] sm:$0xff]  ;;  %v5292_v11 = vld [vmem:[#allocation106_spill] sm:$0xff] }
 0x176   : > { %2576 = vmatpush1.bf16.msra.mxu0 %v2575_v27  ;;  %v5282_v27 = vld [vmem:[#allocation95_spill] sm:$0xff] }
 0x177   : > { %2636 = vmatpush1.bf16.msra.mxu1 %v2635_v60  ;;  %v5277_v60 = vld [vmem:[#allocation79_spill] sm:$0xff]  ;;  %2578 = vmatprep.subr.bf16.mxu0 %v2577_v54  ;;  %v2581_v28 = vpack.c.bf16 %v5282_v27, %v5281_v8  ;;  %v5289_v54 = vld [vmem:[#allocation101_spill] sm:$0xff] }
 0x178   : > { %2638 = vmatprep.subr.bf16.mxu1 %v2637_v15  ;;  %v2641_v63 = vpack.c.bf16 %v5278_v5, %v5277_v60  ;;  %v5283_v15 = vld [vmem:[#allocation88_spill] sm:$0xff]  ;;  %v2647_v60 = vpack.c.bf16 %v5288_v2, %v5287_v21  ;;  %v5294_v8 = vld [vmem:[#allocation109_spill] sm:$0xff]  ;;  %v5300_v21 = vld [vmem:[#allocation118_spill] sm:$0xff] }
 0x179   : > { %v2583_v25 = vpack.c.bf16 %v5284_v18, %v5283_v15  ;;  %v5295_v15 = vld [vmem:[#allocation102_spill] sm:$0xff]  ;;  %v5296_v18 = vld [vmem:[#allocation108_spill] sm:$0xff] }
 0x17a   : > { %2580 = vmatpush1.bf16.msra.mxu0 %v2579_v20  ;;  %v5290_v20 = vld [vmem:[#allocation107_spill] sm:$0xff] }
 0x17b   : > { %2640 = vmatpush1.bf16.msra.mxu1 %v2639_v22  ;;  %v5285_v22 = vld [vmem:[#allocation91_spill] sm:$0xff]  ;;  %2582 = vmatprep.subr.bf16.mxu0 %v2581_v28  ;;  %v2585_v5 = vpack.c.bf16 %v5290_v20, %v5289_v54  ;;  %v5297_v28 = vld [vmem:[#allocation113_spill] sm:$0xff] }
 0x17c   : > { %2642 = vmatprep.subr.bf16.mxu1 %v2641_v63  ;;  %v2645_v57 = vpack.c.bf16 %v5286_v17, %v5285_v22  ;;  %v5291_v63 = vld [vmem:[#allocation100_spill] sm:$0xff]  ;;  %v2651_v22 = vpack.c.bf16 %v5296_v18, %v5295_v15  ;;  %v5302_v54 = vld [vmem:[#allocation121_spill] sm:$0xff]  ;;  %v5308_v15 = vld [vmem:[#allocation130_spill] sm:$0xff] }
 0x17d   : > { %v2587_v16 = vpack.c.bf16 %v5292_v11, %v5291_v63  ;;  %v5303_v63 = vld [vmem:[#allocation114_spill] sm:$0xff]  ;;  %v5304_v11 = vld [vmem:[#allocation120_spill] sm:$0xff] }
 0x17e   : > { %2584 = vmatpush1.bf16.msra.mxu0 %v2583_v25  ;;  %v5298_v25 = vld [vmem:[#allocation119_spill] sm:$0xff] }
 0x17f   : > { %2644 = vmatpush1.bf16.msra.mxu1 %v2643_v19  ;;  %v5293_v19 = vld [vmem:[#allocation103_spill] sm:$0xff]  ;;  %2586 = vmatprep.subr.bf16.mxu0 %v2585_v5  ;;  %v2589_v17 = vpack.c.bf16 %v5298_v25, %v5297_v28  ;;  %v5305_v5 = vld [vmem:[#allocation125_spill] sm:$0xff] }
 0x180   : > { %2646 = vmatprep.subr.bf16.mxu1 %v2645_v57  ;;  %v2649_v27 = vpack.c.bf16 %v5294_v8, %v5293_v19  ;;  %v5299_v57 = vld [vmem:[#allocation112_spill] sm:$0xff]  ;;  %v2655_v19 = vpack.c.bf16 %v5304_v11, %v5303_v63  ;;  %v5310_v28 = vld [vmem:[#allocation133_spill] sm:$0xff]  ;;  %v5316_v63 = vld [vmem:[#allocation142_spill] sm:$0xff] }
 0x181   : > { %v2591_v2 = vpack.c.bf16 %v5300_v21, %v5299_v57  ;;  %v5311_v57 = vld [vmem:[#allocation126_spill] sm:$0xff]  ;;  %v5312_v21 = vld [vmem:[#allocation132_spill] sm:$0xff] }
 0x182   : > { %2588 = vmatpush1.bf16.msra.mxu0 %v2587_v16  ;;  %v5306_v16 = vld [vmem:[#allocation131_spill] sm:$0xff] }
 0x183   : > { %2648 = vmatpush1.bf16.msra.mxu1 %v2647_v60  ;;  %v5301_v60 = vld [vmem:[#allocation115_spill] sm:$0xff]  ;;  %2590 = vmatprep.subr.bf16.mxu0 %v2589_v17  ;;  %v2593_v8 = vpack.c.bf16 %v5306_v16, %v5305_v5  ;;  %v5313_v17 = vld [vmem:[#allocation137_spill] sm:$0xff] }
 0x184   : > { %2650 = vmatprep.subr.bf16.mxu1 %v2649_v27  ;;  %v2653_v20 = vpack.c.bf16 %v5302_v54, %v5301_v60  ;;  %v5307_v27 = vld [vmem:[#allocation124_spill] sm:$0xff]  ;;  %v2659_v60 = vpack.c.bf16 %v5312_v21, %v5311_v57  ;;  %v5318_v5 = vld [vmem:[#allocation145_spill] sm:$0xff]  ;;  %v5324_v57 = vld [vmem:[#allocation154_spill] sm:$0xff] }
 0x185   : > { %v2595_v18 = vpack.c.bf16 %v5308_v15, %v5307_v27  ;;  %v5319_v27 = vld [vmem:[#allocation138_spill] sm:$0xff]  ;;  %v5320_v15 = vld [vmem:[#allocation144_spill] sm:$0xff] }
 0x186   : > { %2592 = vmatpush1.bf16.msra.mxu0 %v2591_v2  ;;  %v5314_v2 = vld [vmem:[#allocation143_spill] sm:$0xff] }
 0x187   : > { %2652 = vmatpush1.bf16.msra.mxu1 %v2651_v22  ;;  %v5309_v22 = vld [vmem:[#allocation127_spill] sm:$0xff]  ;;  %2594 = vmatprep.subr.bf16.mxu0 %v2593_v8  ;;  %v2597_v54 = vpack.c.bf16 %v5314_v2, %v5313_v17  ;;  %v5321_v8 = vld [vmem:[#allocation149_spill] sm:$0xff] }
 0x188   : > { %2654 = vmatprep.subr.bf16.mxu1 %v2653_v20  ;;  %v2657_v25 = vpack.c.bf16 %v5310_v28, %v5309_v22  ;;  %v5315_v20 = vld [vmem:[#allocation136_spill] sm:$0xff]  ;;  %v2663_v22 = vpack.c.bf16 %v5320_v15, %v5319_v27  ;;  %v5326_v17 = vld [vmem:[#allocation157_spill] sm:$0xff]  ;;  %v5332_v27 = vld [vmem:[#allocation166_spill] sm:$0xff] }
 0x189   : > { %v2599_v11 = vpack.c.bf16 %v5316_v63, %v5315_v20  ;;  %v5327_v20 = vld [vmem:[#allocation150_spill] sm:$0xff]  ;;  %v5328_v63 = vld [vmem:[#allocation156_spill] sm:$0xff] }
 0x18a   : > { %2596 = vmatpush1.bf16.msra.mxu0 %v2595_v18  ;;  %v5322_v18 = vld [vmem:[#allocation155_spill] sm:$0xff] }
 0x18b   : > { %2656 = vmatpush1.bf16.msra.mxu1 %v2655_v19  ;;  %v5317_v19 = vld [vmem:[#allocation139_spill] sm:$0xff]  ;;  %2598 = vmatprep.subr.bf16.mxu0 %v2597_v54  ;;  %v2601_v28 = vpack.c.bf16 %v5322_v18, %v5321_v8  ;;  %v5329_v54 = vld [vmem:[#allocation161_spill] sm:$0xff] }
 0x18c   : > { %2658 = vmatprep.subr.bf16.mxu1 %v2657_v25  ;;  %v2661_v16 = vpack.c.bf16 %v5318_v5, %v5317_v19  ;;  %v5323_v25 = vld [vmem:[#allocation148_spill] sm:$0xff]  ;;  %v2667_v19 = vpack.c.bf16 %v5328_v63, %v5327_v20  ;;  %v5334_v8 = vld [vmem:[#allocation169_spill] sm:$0xff]  ;;  %v5340_v20 = vld [vmem:[#allocation178_spill] sm:$0xff] }
 0x18d   : > { %v2603_v21 = vpack.c.bf16 %v5324_v57, %v5323_v25  ;;  %v5335_v25 = vld [vmem:[#allocation162_spill] sm:$0xff]  ;;  %v5336_v57 = vld [vmem:[#allocation168_spill] sm:$0xff] }
 0x18e   : > { %2600 = vmatpush1.bf16.msra.mxu0 %v2599_v11  ;;  %v5330_v11 = vld [vmem:[#allocation167_spill] sm:$0xff] }
 0x18f   : > { %2660 = vmatpush1.bf16.msra.mxu1 %v2659_v60  ;;  %v5325_v60 = vld [vmem:[#allocation151_spill] sm:$0xff]  ;;  %2602 = vmatprep.subr.bf16.mxu0 %v2601_v28  ;;  %v2605_v5 = vpack.c.bf16 %v5330_v11, %v5329_v54  ;;  %v5337_v28 = vld [vmem:[#allocation173_spill] sm:$0xff] }
 0x190   : > { %2662 = vmatprep.subr.bf16.mxu1 %v2661_v16  ;;  %v2665_v2 = vpack.c.bf16 %v5326_v17, %v5325_v60  ;;  %v5331_v16 = vld [vmem:[#allocation160_spill] sm:$0xff]  ;;  %v2671_v60 = vpack.c.bf16 %v5336_v57, %v5335_v25  ;;  %v5342_v54 = vld [vmem:[#allocation181_spill] sm:$0xff]  ;;  %v5348_v25 = vld [vmem:[#allocation190_spill] sm:$0xff] }
 0x191   : > { %v2607_v15 = vpack.c.bf16 %v5332_v27, %v5331_v16  ;;  %v5343_v16 = vld [vmem:[#allocation174_spill] sm:$0xff]  ;;  %v5344_v27 = vld [vmem:[#allocation180_spill] sm:$0xff] }
 0x192   : > { %2604 = vmatpush1.bf16.msra.mxu0 %v2603_v21  ;;  %v5338_v21 = vld [vmem:[#allocation179_spill] sm:$0xff] }
 0x193   : > { %2664 = vmatpush1.bf16.msra.mxu1 %v2663_v22  ;;  %v5333_v22 = vld [vmem:[#allocation163_spill] sm:$0xff]  ;;  %2606 = vmatprep.subr.bf16.mxu0 %v2605_v5  ;;  %v2609_v17 = vpack.c.bf16 %v5338_v21, %v5337_v28  ;;  %v5345_v5 = vld [vmem:[#allocation185_spill] sm:$0xff] }
 0x194   : > { %2666 = vmatprep.subr.bf16.mxu1 %v2665_v2  ;;  %v2669_v18 = vpack.c.bf16 %v5334_v8, %v5333_v22  ;;  %v5339_v2 = vld [vmem:[#allocation172_spill] sm:$0xff]  ;;  %v2675_v22 = vpack.c.bf16 %v5344_v27, %v5343_v16  ;;  %v5350_v28 = vld [vmem:[#allocation193_spill] sm:$0xff]  ;;  %v5356_v16 = vld [vmem:[#allocation202_spill] sm:$0xff] }
 0x195   : > { %v2611_v63 = vpack.c.bf16 %v5340_v20, %v5339_v2  ;;  %v5351_v2 = vld [vmem:[#allocation186_spill] sm:$0xff]  ;;  %v5352_v20 = vld [vmem:[#allocation192_spill] sm:$0xff] }
 0x196   : > { %2608 = vmatpush1.bf16.msra.mxu0 %v2607_v15  ;;  %v5346_v15 = vld [vmem:[#allocation191_spill] sm:$0xff] }
 0x197   : > { %2668 = vmatpush1.bf16.msra.mxu1 %v2667_v19  ;;  %v5341_v19 = vld [vmem:[#allocation175_spill] sm:$0xff]  ;;  %2610 = vmatprep.subr.bf16.mxu0 %v2609_v17  ;;  %v2613_v8 = vpack.c.bf16 %v5346_v15, %v5345_v5  ;;  %v5353_v17 = vld [vmem:[#allocation197_spill] sm:$0xff] }
 0x198   : > { %2670 = vmatprep.subr.bf16.mxu1 %v2669_v18  ;;  %v2673_v11 = vpack.c.bf16 %v5342_v54, %v5341_v19  ;;  %v5347_v18 = vld [vmem:[#allocation184_spill] sm:$0xff]  ;;  %v2679_v19 = vpack.c.bf16 %v5352_v20, %v5351_v2  ;;  %v5358_v5 = vld [vmem:[#allocation205_spill] sm:$0xff]  ;;  %v5364_v2 = vld [vmem:[#allocation214_spill] sm:$0xff] }
 0x199   : > { %v2615_v57 = vpack.c.bf16 %v5348_v25, %v5347_v18  ;;  %v5359_v18 = vld [vmem:[#allocation198_spill] sm:$0xff]  ;;  %v5360_v25 = vld [vmem:[#allocation204_spill] sm:$0xff] }
 0x19a   : > { %2612 = vmatpush1.bf16.msra.mxu0 %v2611_v63  ;;  %v5354_v63 = vld [vmem:[#allocation203_spill] sm:$0xff] }
 0x19b   : > { %2672 = vmatpush1.bf16.msra.mxu1 %v2671_v60  ;;  %v5349_v60 = vld [vmem:[#allocation187_spill] sm:$0xff]  ;;  %2614 = vmatprep.subr.bf16.mxu0 %v2613_v8  ;;  %v2617_v54 = vpack.c.bf16 %v5354_v63, %v5353_v17  ;;  %v5361_v8 = vld [vmem:[#allocation209_spill] sm:$0xff] }
 0x19c   : > { %2674 = vmatprep.subr.bf16.mxu1 %v2673_v11  ;;  %v2677_v21 = vpack.c.bf16 %v5350_v28, %v5349_v60  ;;  %v5355_v11 = vld [vmem:[#allocation196_spill] sm:$0xff]  ;;  %v2683_v60 = vpack.c.bf16 %v5360_v25, %v5359_v18  ;;  %v5366_v17 = vld [vmem:[#allocation217_spill] sm:$0xff]  ;;  %v858_v18 = vld [vmem:[#allocation2] sm:$0xff] }
 0x19d   : > { %v2619_v27 = vpack.c.bf16 %v5356_v16, %v5355_v11  ;;  %v5367_v11 = vld [vmem:[#allocation210_spill] sm:$0xff]  ;;  %v5368_v16 = vld [vmem:[#allocation216_spill] sm:$0xff] }
 0x19e   : > { %2616 = vmatpush1.bf16.msra.mxu0 %v2615_v57  ;;  %v5362_v57 = vld [vmem:[#allocation215_spill] sm:$0xff] }
 0x19f   : > { %2676 = vmatpush1.bf16.msra.mxu1 %v2675_v22  ;;  %v5357_v22 = vld [vmem:[#allocation199_spill] sm:$0xff]  ;;  %2618 = vmatprep.subr.bf16.mxu0 %v2617_v54  ;;  %v2621_v28 = vpack.c.bf16 %v5362_v57, %v5361_v8 }
 0x1a0   : > { %2678 = vmatprep.subr.bf16.mxu1 %v2677_v21  ;;  %v2681_v15 = vpack.c.bf16 %v5358_v5, %v5357_v22  ;;  %v5363_v21 = vld [vmem:[#allocation208_spill] sm:$0xff]  ;;  %v2687_v22 = vpack.c.bf16 %v5368_v16, %v5367_v11  ;;  %v5369_v54 = vld [vmem:[#allocation35_spill] sm:$0xff] }
 0x1a1   : > { %v2623_v20 = vpack.c.bf16 %v5364_v2, %v5363_v21  ;;  %v5372_v2 = vld [vmem:[#allocation11_spill] sm:$0xff] }
 0x1a2   : > { %2620 = vmatpush1.bf16.msra.mxu0 %v2619_v27  ;;  %v5370_v27 = vld [vmem:[#allocation39_spill] sm:$0xff] }
 0x1a3   : > { %2680 = vmatpush1.bf16.msra.mxu1 %v2679_v19  ;;  %v5365_v19 = vld [vmem:[#allocation211_spill] sm:$0xff]  ;;  %2622 = vmatprep.subr.bf16.mxu0 %v2621_v28  ;;  %v2689_v5 = vpack.c.bf16 %v5370_v27, %v5369_v54  ;;  %v860_v54 = vld [vmem:[#allocation2 + $0x10] sm:$0xff] }
 0x1a4   : > { %2682 = vmatprep.subr.bf16.mxu1 %v2681_v15  ;;  %v2685_v63 = vpack.c.bf16 %v5366_v17, %v5365_v19  ;;  %v4324_v15 = vld [vmem:[#allocation3 + $0x8] sm:$0xff]  ;;  %v859_v19 = vld [vmem:[#allocation2 + $0x8] sm:$0xff] }
 0x1a5   : > { %1093 = vmatprep.mubr.f32.mxu0 %v4324_v15  ;;  %1164 = vmatprep.mubr.f32.mxu1 %v4324_v15 }
 0x1a6   : > { %2624 = vmatpush1.bf16.msra.mxu0 %v2623_v20 }
 0x1a7   : > { %2684 = vmatpush1.bf16.msra.mxu1 %v2683_v60  ;;  %2690 = vmatprep.subr.bf16.mxu0 %v2689_v5  ;;  %v5371_v60 = vld [vmem:[#allocation10_spill] sm:$0xff] }
 0x1a8   : > { %2686 = vmatprep.subr.bf16.mxu1 %v2685_v63 }
 0x1ab   : > { %2688 = vmatpush1.bf16.msra.mxu1 %v2687_v22 }
 0x221   : > { %v929_v25 = vpop.f32.mrb[0].mxu1 }
 0x222   : > { %v930_v8 = vadd.f32 %v929_v25, %v5371_v60  ;;  %v931_v57 = vpop.f32.mrb[1].mxu1  ;;  %v5374_v25 = vld [vmem:[#allocation13_spill] sm:$0xff] }
 0x223   : > { %v932_v20 = vadd.f32 %v931_v57, %v5372_v2  ;;  %v1018_v60 = vadd.f32 %v5374_v25, %v860_v54 }
 0x224   : > { %v1004_v28 = vadd.f32 %v930_v8, %v858_v18 }
 0x225   : > { %v1011_v17 = vadd.f32 %v932_v20, %v859_v19 }
 0x226   : > { %v2264_v21 = vmul.f32 -1.442695, %v1004_v28 }
 0x227   : > { %v2265_v63 = vmul.f32 -1.442695, %v1011_v17 }
 0x228   : > { %3321 = vpow2.f32 %v2264_v21 }
 0x229   : > { %3323 = vpow2.f32 %v2265_v63  ;;  %v5375_v63 = vld [vmem:[#allocation34_spill] sm:$0xff] }
 0x232   : > { %v3322_v11 = vpop.eup %3321 }
 0x233   : > { %v1008_v16 = vadd.f32 1.0, %v3322_v11  ;;  %v3324_v22 = vpop.eup %3323  ;;  %v5376_v11 = vld [vmem:[#allocation38_spill] sm:$0xff] }
 0x234   : > { %v1015_v27 = vadd.f32 1.0, %v3324_v22 }
 0x235   : > { %3325 = vrcp.f32 %v1008_v16  ;;  %v2691_v16 = vpack.c.bf16 %v5376_v11, %v5375_v63  ;;  %v5389_v11 = vld [vmem:[#allocation81_spill] sm:$0xff] }
 0x236   : > { %3327 = vrcp.f32 %v1015_v27  ;;  %v5380_v27 = vld [vmem:[#allocation50_spill] sm:$0xff] }
 0x23f   : > { %v3326_v8 = vpop.eup %3325 }
 0x240   : > { %v3328_v21 = vpop.eup %3327 }
 0x241   : > { %v1000_v5 = vpop.f32.mrb[2].mxu1  ;;  %v1022_v2 = vsub.f32 1.0, %v3328_v21  ;;  %v1024_v19 = vmul.f32 %v3328_v21, %v4178_v14  ;;  %v5381_v14 = vld [vmem:[#allocation57_spill] sm:$0xff] }
 0x242   : > { %v1001_v48 = vadd.f32 %v1000_v5, %v5373_v51  ;;  %v2399_v18 = vpop.f32.mrb[3].mxu1  ;;  %v5377_v51 = vld [vmem:[#allocation45_spill] sm:$0xff]  ;;  %v5378_v5 = vld [vmem:[#allocation51_spill] sm:$0xff] }
 0x243   : > { %v2693_v54 = vpack.c.bf16 %v5378_v5, %v5377_v51  ;;  %v5385_v21 = vld [vmem:[#allocation69_spill] sm:$0xff]  ;;  %v5391_v5 = vld [vmem:[#allocation80_spill] sm:$0xff] }
 0x244   : > { %v1019_v57 = vmul.f32 %v3326_v8, %v1001_v48  ;;  %v5379_v48 = vld [vmem:[#allocation44_spill] sm:$0xff] }
 0x245   : > { %v2695_v25 = vpack.c.bf16 %v5380_v27, %v5379_v48  ;;  %v5383_v8 = vld [vmem:[#allocation56_spill] sm:$0xff]  ;;  %v5393_v27 = vld [vmem:[#allocation93_spill] sm:$0xff] }
 0x246   : > { %v1020_v28 = vadd.f32 %v1019_v57, %v1018_v60  ;;  %v5382_v60 = vld [vmem:[#allocation63_spill] sm:$0xff]  ;;  %v5384_v57 = vld [vmem:[#allocation62_spill] sm:$0xff] }
 0x247   : > { %v2697_v18 = vpack.c.bf16 %v5382_v60, %v5381_v14  ;;  %v5395_v60 = vld [vmem:[#allocation92_spill] sm:$0xff] }
 0x248   : > { %3329 = vtanh.f32 %v1020_v28  ;;  %v2699_v28 = vpack.c.bf16 %v5384_v57, %v5383_v8  ;;  %v5397_v57 = vld [vmem:[#allocation105_spill] sm:$0xff] }
 0x252   : > { %v3330_v20 = vpop.eup %3329 }
 0x253   : > { %v1023_v17 = vmul.f32 %v3330_v20, %v1022_v2  ;;  %v5386_v2 = vld [vmem:[#allocation75_spill] sm:$0xff] }
 0x254   : > { %v2701_v20 = vpack.c.bf16 %v5386_v2, %v5385_v21  ;;  %v5399_v2 = vld [vmem:[#allocation104_spill] sm:$0xff] }
 0x255   : > { %v4335_v22 = vadd.f32 %v1024_v19, %v1023_v17  ;;  %v5387_v19 = vld [vmem:[#allocation68_spill] sm:$0xff]  ;;  %v5388_v17 = vld [vmem:[#allocation74_spill] sm:$0xff] }
 0x256   : > { %v2703_v63 = vpack.c.bf16 %v5388_v17, %v5387_v19  ;;  %v5401_v17 = vld [vmem:[#allocation117_spill] sm:$0xff] }
 0x257   : > { %1026 = vst [vmem:[#allocation3] sm:$0xff] %v4335_v22  ;;  %1094 = vmatmul.mubr.f32.vlgmr.msra.gmra.mrb[0].mxu0 %v4335_v22  ;;  %1165 = vmatmul.mubr.f32.vlgmr.msra.gmra.mrb[4].mxu1 %v4335_v22 }
 0x258   : > { %2692 = vmatpush1.bf16.msra.mxu0 %v2691_v16  ;;  %1235 = vmatprep.mubr.f32.mxu0 %v4324_v15  ;;  %v5390_v16 = vld [vmem:[#allocation87_spill] sm:$0xff] }
 0x259   : > { %2694 = vmatprep.subr.bf16.mxu0 %v2693_v54  ;;  %v2705_v51 = vpack.c.bf16 %v5390_v16, %v5389_v11  ;;  %v5392_v54 = vld [vmem:[#allocation86_spill] sm:$0xff]  ;;  %v5403_v16 = vld [vmem:[#allocation116_spill] sm:$0xff] }
 0x25a   : > { %v2707_v48 = vpack.c.bf16 %v5392_v54, %v5391_v5  ;;  %v5405_v54 = vld [vmem:[#allocation129_spill] sm:$0xff] }
 0x25c   : > { %2696 = vmatpush1.bf16.msra.mxu0 %v2695_v25  ;;  %v5394_v25 = vld [vmem:[#allocation99_spill] sm:$0xff] }
 0x25d   : > { %2698 = vmatprep.subr.bf16.mxu0 %v2697_v18  ;;  %v2709_v14 = vpack.c.bf16 %v5394_v25, %v5393_v27  ;;  %v5396_v18 = vld [vmem:[#allocation98_spill] sm:$0xff]  ;;  %v5407_v25 = vld [vmem:[#allocation128_spill] sm:$0xff] }
 0x25e   : > { %v2711_v8 = vpack.c.bf16 %v5396_v18, %v5395_v60  ;;  %v5409_v18 = vld [vmem:[#allocation141_spill] sm:$0xff] }
 0x260   : > { %2700 = vmatpush1.bf16.msra.mxu0 %v2699_v28  ;;  %v5398_v28 = vld [vmem:[#allocation111_spill] sm:$0xff] }
 0x261   : > { %2702 = vmatprep.subr.bf16.mxu0 %v2701_v20  ;;  %v2713_v21 = vpack.c.bf16 %v5398_v28, %v5397_v57  ;;  %v5400_v20 = vld [vmem:[#allocation110_spill] sm:$0xff]  ;;  %v5411_v28 = vld [vmem:[#allocation140_spill] sm:$0xff] }
 0x262   : > { %v2715_v19 = vpack.c.bf16 %v5400_v20, %v5399_v2  ;;  %v5413_v20 = vld [vmem:[#allocation153_spill] sm:$0xff] }
 0x264   : > { %2704 = vmatpush1.bf16.msra.mxu0 %v2703_v63  ;;  %v5402_v63 = vld [vmem:[#allocation123_spill] sm:$0xff] }
 0x265   : > { %2706 = vmatprep.subr.bf16.mxu0 %v2705_v51  ;;  %v2717_v11 = vpack.c.bf16 %v5402_v63, %v5401_v17  ;;  %v5404_v51 = vld [vmem:[#allocation122_spill] sm:$0xff]  ;;  %v5415_v63 = vld [vmem:[#allocation152_spill] sm:$0xff] }
 0x266   : > { %v2719_v5 = vpack.c.bf16 %v5404_v51, %v5403_v16  ;;  %v5417_v51 = vld [vmem:[#allocation165_spill] sm:$0xff] }
 0x268   : > { %2708 = vmatpush1.bf16.msra.mxu0 %v2707_v48  ;;  %v5406_v48 = vld [vmem:[#allocation135_spill] sm:$0xff] }
 0x269   : > { %2710 = vmatprep.subr.bf16.mxu0 %v2709_v14  ;;  %v2721_v27 = vpack.c.bf16 %v5406_v48, %v5405_v54  ;;  %v5408_v14 = vld [vmem:[#allocation134_spill] sm:$0xff]  ;;  %v5419_v48 = vld [vmem:[#allocation164_spill] sm:$0xff] }
 0x26a   : > { %v2723_v60 = vpack.c.bf16 %v5408_v14, %v5407_v25  ;;  %v5421_v14 = vld [vmem:[#allocation177_spill] sm:$0xff] }
 0x26c   : > { %2712 = vmatpush1.bf16.msra.mxu0 %v2711_v8  ;;  %v5410_v8 = vld [vmem:[#allocation147_spill] sm:$0xff] }
 0x26d   : > { %2714 = vmatprep.subr.bf16.mxu0 %v2713_v21  ;;  %v2725_v57 = vpack.c.bf16 %v5410_v8, %v5409_v18  ;;  %v5412_v21 = vld [vmem:[#allocation146_spill] sm:$0xff]  ;;  %v5423_v8 = vld [vmem:[#allocation176_spill] sm:$0xff] }
 0x26e   : > { %v2727_v2 = vpack.c.bf16 %v5412_v21, %v5411_v28  ;;  %v5425_v21 = vld [vmem:[#allocation189_spill] sm:$0xff] }
 0x270   : > { %2716 = vmatpush1.bf16.msra.mxu0 %v2715_v19  ;;  %v5414_v19 = vld [vmem:[#allocation159_spill] sm:$0xff] }
 0x271   : > { %2718 = vmatprep.subr.bf16.mxu0 %v2717_v11  ;;  %v2729_v17 = vpack.c.bf16 %v5414_v19, %v5413_v20  ;;  %v5416_v11 = vld [vmem:[#allocation158_spill] sm:$0xff]  ;;  %v5427_v19 = vld [vmem:[#allocation188_spill] sm:$0xff] }
 0x272   : > { %v2731_v16 = vpack.c.bf16 %v5416_v11, %v5415_v63  ;;  %v5429_v11 = vld [vmem:[#allocation201_spill] sm:$0xff] }
 0x274   : > { %2720 = vmatpush1.bf16.msra.mxu0 %v2719_v5  ;;  %v5418_v5 = vld [vmem:[#allocation171_spill] sm:$0xff] }
 0x275   : > { %2722 = vmatprep.subr.bf16.mxu0 %v2721_v27  ;;  %v2733_v54 = vpack.c.bf16 %v5418_v5, %v5417_v51  ;;  %v5420_v27 = vld [vmem:[#allocation170_spill] sm:$0xff]  ;;  %v5431_v5 = vld [vmem:[#allocation200_spill] sm:$0xff] }
 0x276   : > { %v2735_v25 = vpack.c.bf16 %v5420_v27, %v5419_v48  ;;  %v5433_v27 = vld [vmem:[#allocation213_spill] sm:$0xff] }
 0x278   : > { %2724 = vmatpush1.bf16.msra.mxu0 %v2723_v60  ;;  %v5422_v60 = vld [vmem:[#allocation183_spill] sm:$0xff] }
 0x279   : > { %2726 = vmatprep.subr.bf16.mxu0 %v2725_v57  ;;  %v2737_v18 = vpack.c.bf16 %v5422_v60, %v5421_v14  ;;  %v5424_v57 = vld [vmem:[#allocation182_spill] sm:$0xff]  ;;  %v5435_v60 = vld [vmem:[#allocation212_spill] sm:$0xff] }
 0x27a   : > { %v2739_v28 = vpack.c.bf16 %v5424_v57, %v5423_v8 }
 0x27c   : > { %2728 = vmatpush1.bf16.msra.mxu0 %v2727_v2  ;;  %v5426_v2 = vld [vmem:[#allocation195_spill] sm:$0xff] }
 0x27d   : > { %2730 = vmatprep.subr.bf16.mxu0 %v2729_v17  ;;  %v2741_v20 = vpack.c.bf16 %v5426_v2, %v5425_v21  ;;  %v5428_v17 = vld [vmem:[#allocation194_spill] sm:$0xff] }
 0x27e   : > { %v2743_v63 = vpack.c.bf16 %v5428_v17, %v5427_v19  ;;  %v5437_v21 = vld [vmem:[#allocation14_spill] sm:$0xff]  ;;  %v5438_v17 = vld [vmem:[#allocation17_spill] sm:$0xff] }
 0x280   : > { %2732 = vmatpush1.bf16.msra.mxu0 %v2731_v16  ;;  %v5430_v16 = vld [vmem:[#allocation207_spill] sm:$0xff] }
 0x281   : > { %2734 = vmatprep.subr.bf16.mxu0 %v2733_v54  ;;  %v2745_v51 = vpack.c.bf16 %v5430_v16, %v5429_v11  ;;  %v5432_v54 = vld [vmem:[#allocation206_spill] sm:$0xff] }
 0x282   : > { %v2747_v48 = vpack.c.bf16 %v5432_v54, %v5431_v5 }
 0x284   : > { %2736 = vmatpush1.bf16.msra.mxu0 %v2735_v25  ;;  %v5434_v25 = vld [vmem:[#allocation219_spill] sm:$0xff] }
 0x285   : > { %2738 = vmatprep.subr.bf16.mxu0 %v2737_v18  ;;  %v2749_v14 = vpack.c.bf16 %v5434_v25, %v5433_v27  ;;  %v5436_v18 = vld [vmem:[#allocation218_spill] sm:$0xff] }
 0x286   : > { %v2751_v8 = vpack.c.bf16 %v5436_v18, %v5435_v60  ;;  %v5440_v25 = vld [vmem:[#allocation18_spill] sm:$0xff]  ;;  %v5441_v60 = vld [vmem:[#allocation19_spill] sm:$0xff] }
 0x288   : > { %2740 = vmatpush1.bf16.msra.mxu0 %v2739_v28 }
 0x289   : > { %2742 = vmatprep.subr.bf16.mxu0 %v2741_v20 }
 0x28c   : > { %2744 = vmatpush1.bf16.msra.mxu0 %v2743_v63 }
 0x28d   : > { %2746 = vmatprep.subr.bf16.mxu0 %v2745_v51 }
 0x290   : > { %2748 = vmatpush1.bf16.msra.mxu0 %v2747_v48  ;;  %v5439_v48 = vld [vmem:[#allocation15_spill] sm:$0xff] }
 0x291   : > { %2750 = vmatprep.subr.bf16.mxu0 %v2749_v14 }
 0x294   : > { %2752 = vmatpush1.bf16.msra.mxu0 %v2751_v8 }
 0x297   : > { %1236 = vmatmul.mubr.f32.vlgmr.msra.gmra.mrb[2].mxu0 %v4335_v22 }
 0x32a   : > { %v1095_v57 = vpop.f32.mrb[0].mxu0  ;;  %v1166_v28 = vpop.f32.mrb[4].mxu1 }
 0x32b   : > { %v1096_v2 = vadd.f32 %v1095_v57, %v5437_v21  ;;  %v1097_v20 = vpop.f32.mrb[1].mxu0  ;;  %v1168_v19 = vpop.f32.mrb[5].mxu1  ;;  %v5442_v21 = vld [vmem:[#allocation16_spill] sm:$0xff] }
 0x32c   : > { %v1169_v63 = vadd.f32 %v1168_v19, %v5438_v17  ;;  %v1098_v27 = vadd.f32 %v1097_v20, %v5439_v48  ;;  %v1167_v45 = vadd.f32 %v1166_v28, %v5442_v21 }
 0x32e   : > { %v1242_v11 = vadd.f32 %v1169_v63, %v1096_v2 }
 0x330   : > { %v2266_v16 = vmul.f32 -1.442695, %v1242_v11 }
 0x332   : > { %3331 = vpow2.f32 %v2266_v16 }
 0x33c   : > { %v3332_v51 = vpop.eup %3331 }
 0x33d   : > { %v1246_v5 = vadd.f32 1.0, %v3332_v51 }
 0x33f   : > { %3333 = vrcp.f32 %v1246_v5 }
 0x349   : > { %v3334_v8 = vpop.eup %3333 }
 0x36a   : > { %v1237_v54 = vpop.f32.mrb[2].mxu0 }
 0x36b   : > { %v1238_v14 = vadd.f32 %v1237_v54, %v5440_v25  ;;  %v1239_v22 = vpop.f32.mrb[3].mxu0 }
 0x36c   : > { %v1240_v18 = vadd.f32 %v1239_v22, %v5441_v60 }
 0x36d   : > { %v1249_v57 = vadd.f32 %v1238_v14, %v1098_v27 }
 0x36e   : > { %v1256_v42 = vmul.f32 %v3334_v8, %v1240_v18 }
 0x36f   : > { %v2267_v19 = vmul.f32 -1.442695, %v1249_v57 }
 0x370   : > { %v1257_v2 = vadd.f32 %v1256_v42, %v1167_v45 }
 0x371   : > { %3335 = vpow2.f32 %v2267_v19 }
 0x37b   : > { %v3336_v17 = vpop.eup %3335 }
 0x37c   : > { %v1253_v63 = vadd.f32 1.0, %v3336_v17 }
 0x37e   : > { %3337 = vrcp.f32 %v1253_v63 }
 0x37f   : > { %3339 = vtanh.f32 %v1257_v2 }
 0x388   : > { %v3338_v11 = vpop.eup %3337 }
 0x389   : > { %v1259_v16 = vsub.f32 1.0, %v3338_v11  ;;  %v3340_v20 = vpop.eup %3339  ;;  %v1261_v51 = vmul.f32 %v3338_v11, %v4324_v15 }
 0x38b   : > { %v1260_v5 = vmul.f32 %v3340_v20, %v1259_v16 }
 0x38d   : > { %v1262_v54 = vadd.f32 %v1261_v51, %v1260_v5 }
 0x38f   : > { %1263 = vst [vmem:[#allocation3 + $0x8] sm:$0xff] %v1262_v54 }
 0x390 PF: > { %s1264_s24 = sadd.s32 1, %s3608_s16 }
 0x391   : > { %p2268_p11 = scmp.ge.s32.totalorder %s1264_s24, 8 }
 0x392   : > { %v2753_v42 = vpack.c.bf16 (!%p2268_p11), %v3667_v31, %v3653_v24  ;;  %v2755_v45 = vpack.c.bf16 (!%p2268_p11), %v3665_v30, %v3651_v23  ;;  %v2757_v28 = vpack.c.bf16 (!%p2268_p11), %v3681_v38, %v3675_v35  ;;  %v2759_v15 = vpack.c.bf16 (!%p2268_p11), %v3679_v37, %v3673_v34  ;;  %v4446_v16 = vld [vmem:[#allocation3] sm:$0xff] (!%p2268_p11) }
 0x393   : > { %1268 = sbr.rel (%p2268_p11) target bundleno = 1526 (0x5f6), region = 76  ;;  %v2761_v48 = vpack.c.bf16 (!%p2268_p11), %v3693_v44, %v3687_v41  ;;  %v3465_v27 = vmov (!%p2268_p11), 0.0   ;;  %v2809_v25 = vpack.c.bf16 (!%p2268_p11), %v3771_v32, %v3759_v13  ;;  %v2763_v14 = vpack.c.bf16 (!%p2268_p11), %v3691_v43, %v3685_v40  ;;  %v5443_v54 = vld [vmem:[#allocation20_spill] sm:$0xff] (!%p2268_p11) }
 0x394   : > { %2754 = vmatprep.subr.bf16.mxu1 (!%p2268_p11), %v2753_v42  ;;  %1341 = vmatprep.mubr.f32.mxu1 (!%p2268_p11), %v3465_v27  ;;  %v2811_v22 = vpack.c.bf16 (!%p2268_p11), %v3769_v26, %v3757_v12  ;;  %v2765_v60 = vpack.c.bf16 (!%p2268_p11), %v3705_v50, %v3699_v47  ;;  %v2767_v18 = vpack.c.bf16 (!%p2268_p11), %v3703_v49, %v3697_v46  ;;  %v3466_v51 = vmov (!%p2268_p11), 0.0|0.0   ;;  %v5444_v42 = vld [vmem:[#allocation21_spill] sm:$0xff] (!%p2268_p11) }
 0x395   : > { %2756 = vmatpush1.bf16.msra.mxu1 (!%p2268_p11), %v2755_v45  ;;  %2810 = vmatprep.subr.bf16.mxu0 (!%p2268_p11), %v2809_v25  ;;  %v2769_v8 = vpack.c.bf16 (!%p2268_p11), %v3717_v56, %v3711_v53  ;;  %v2771_v57 = vpack.c.bf16 (!%p2268_p11), %v3715_v55, %v3709_v52  ;;  %v2773_v21 = vpack.c.bf16 (!%p2268_p11), %v3729_v62, %v3723_v59  ;;  %vm3467_vm4 = vmmov (!%p2268_p11), 0   ;;  %v5447_v25 = vld [vmem:[#allocation24_spill] sm:$0xff] (!%p2268_p11) }
 0x396   : > { %2758 = vmatprep.subr.bf16.mxu1 (!%p2268_p11), %v2757_v28  ;;  %2812 = vmatpush1.bf16.msra.mxu0 (!%p2268_p11), %v2811_v22  ;;  %v2775_v19 = vpack.c.bf16 (!%p2268_p11), %v3727_v61, %v3721_v58  ;;  %v2777_v2 = vpack.c.bf16 (!%p2268_p11), %v3741_v4, %v3735_v1  ;;  %v2779_v17 = vpack.c.bf16 (!%p2268_p11), %v3739_v3, %v3733_v0  ;;  %v5445_v28 = vld [vmem:[#allocation22_spill] sm:$0xff] (!%p2268_p11) }
 0x397   : > { %v2781_v63 = vpack.c.bf16 (!%p2268_p11), %v3753_v10, %v3747_v7  ;;  %v2783_v11 = vpack.c.bf16 (!%p2268_p11), %v3751_v9, %v3745_v6  ;;  %v2786_v20 = vpack.c.bf16 (!%p2268_p11), %v3671_v33, %v3663_v29  ;;  %v2789_v5 = vpack.c.bf16 (!%p2268_p11), %v3683_v39, %v3677_v36 }
 0x398   : > { %v2792_v45 = vpack.c.bf16 (!%p2268_p11), %v5444_v42, %v5443_v54  ;;  %v5458_v54 = vld [vmem:[#allocation36_spill] sm:$0xff] (!%p2268_p11) }
 0x399   : > { %2760 = vmatpush1.bf16.msra.mxu1 (!%p2268_p11), %v2759_v15  ;;  %v5446_v15 = vld [vmem:[#allocation23_spill] sm:$0xff] (!%p2268_p11) }
 0x39a   : > { %2762 = vmatprep.subr.bf16.mxu1 %v2761_v48  ;;  %v2795_v48 = vpack.c.bf16 %v5446_v15, %v5445_v28  ;;  %v5460_v28 = vld [vmem:[#allocation47_spill] sm:$0xff] }
 0x39d   : > { %2764 = vmatpush1.bf16.msra.mxu1 %v2763_v14  ;;  %v5448_v14 = vld [vmem:[#allocation25_spill] sm:$0xff] }
 0x39e   : > { %2766 = vmatprep.subr.bf16.mxu1 %v2765_v60  ;;  %v2798_v22 = vpack.c.bf16 %v5448_v14, %v5447_v25  ;;  %v5449_v60 = vld [vmem:[#allocation26_spill] sm:$0xff] }
 0x39f   : > { %v5462_v25 = vld [vmem:[#allocation46_spill] sm:$0xff] }
 0x3a1   : > { %2768 = vmatpush1.bf16.msra.mxu1 %v2767_v18  ;;  %v5450_v18 = vld [vmem:[#allocation27_spill] sm:$0xff] }
 0x3a2   : > { %2770 = vmatprep.subr.bf16.mxu1 %v2769_v8  ;;  %v5451_v8 = vld [vmem:[#allocation28_spill] sm:$0xff] }
 0x3a5   : > { %2772 = vmatpush1.bf16.msra.mxu1 %v2771_v57  ;;  %v5452_v57 = vld [vmem:[#allocation29_spill] sm:$0xff] }
 0x3a6   : > { %2774 = vmatprep.subr.bf16.mxu1 %v2773_v21  ;;  %v2804_v21 = vpack.c.bf16 %v5452_v57, %v5451_v8  ;;  %v5467_v57 = vld [vmem:[#allocation53_spill] sm:$0xff] }
 0x3a9   : > { %2776 = vmatpush1.bf16.msra.mxu1 %v2775_v19  ;;  %v5453_v19 = vld [vmem:[#allocation30_spill] sm:$0xff] }
 0x3aa   : > { %2778 = vmatprep.subr.bf16.mxu1 %v2777_v2  ;;  %v5454_v2 = vld [vmem:[#allocation31_spill] sm:$0xff] }
 0x3ad   : > { %2780 = vmatpush1.bf16.msra.mxu1 %v2779_v17  ;;  %v2807_v17 = vpack.c.bf16 %v5454_v2, %v5453_v19  ;;  %v5469_v2 = vld [vmem:[#allocation52_spill] sm:$0xff] }
 0x3ae   : > { %2782 = vmatprep.subr.bf16.mxu1 %v2781_v63  ;;  %v5455_v63 = vld [vmem:[#allocation33_spill] sm:$0xff] }
 0x3b1   : > { %2784 = vmatpush1.bf16.msra.mxu1 %v2783_v11  ;;  %v5456_v11 = vld [vmem:[#allocation37_spill] sm:$0xff] }
 0x3b2   : > { %2785 = vmatprep.subr.bf16.mxu1 %v3466_v51 }
 0x3b4   : > { %1342 = vmatmul.mubr.f32.vlgmr.msra.gmra.mrb[0].mxu1 %v4446_v16 }
 0x3b5   : > { %2787 = vmatpush3.bf16.msra.mxu1 %v2786_v20  ;;  %2432 = vmatprep.mubr.msk.f32.mxu1 %vm3467_vm4, %v3465_v27  ;;  %v2801_v27 = vpack.c.bf16 %v5450_v18, %v5449_v60  ;;  %v2873_v20 = vpack.c.bf16 %v5456_v11, %v5455_v63  ;;  %v5464_v60 = vld [vmem:[#allocation49_spill] sm:$0xff]  ;;  %v5465_v18 = vld [vmem:[#allocation42_spill] sm:$0xff]  ;;  %v5471_v11 = vld [vmem:[#allocation55_spill] sm:$0xff] }
 0x3b6   : > { %2788 = vmatprep.subr.bf16.mxu1 %v3466_v51 }
 0x3b9   : > { %2790 = vmatpush3.bf16.msra.mxu1 %v2789_v5  ;;  %v5457_v5 = vld [vmem:[#allocation32_spill] sm:$0xff] }
 0x3ba   : > { %2791 = vmatprep.subr.bf16.mxu1 %v3466_v51  ;;  %v2875_v42 = vpack.c.bf16 %v5458_v54, %v5457_v5  ;;  %v5473_v54 = vld [vmem:[#allocation54_spill] sm:$0xff] }
 0x3bd   : > { %2793 = vmatpush3.bf16.msra.mxu1 %v2792_v45  ;;  %v5459_v45 = vld [vmem:[#allocation41_spill] sm:$0xff] }
 0x3be   : > { %2794 = vmatprep.subr.bf16.mxu1 %v3466_v51  ;;  %v2813_v15 = vpack.c.bf16 %v5460_v28, %v5459_v45  ;;  %v5475_v28 = vld [vmem:[#allocation65_spill] sm:$0xff] }
 0x3c0   : > { %2814 = vmatprep.subr.bf16.mxu0 %v2813_v15  ;;  %v5476_v15 = vld [vmem:[#allocation71_spill] sm:$0xff] }
 0x3c1   : > { %2796 = vmatpush3.bf16.msra.mxu1 %v2795_v48  ;;  %v5461_v48 = vld [vmem:[#allocation40_spill] sm:$0xff] }
 0x3c2   : > { %2797 = vmatprep.subr.bf16.mxu1 %v3466_v51  ;;  %v2815_v14 = vpack.c.bf16 %v5462_v25, %v5461_v48  ;;  %v2821_v48 = vpack.c.bf16 %v5476_v15, %v5475_v28  ;;  %v5477_v25 = vld [vmem:[#allocation64_spill] sm:$0xff]  ;;  %v5491_v15 = vld [vmem:[#allocation89_spill] sm:$0xff] }
 0x3c4   : > { %2816 = vmatpush1.bf16.msra.mxu0 %v2815_v14  ;;  %v5478_v14 = vld [vmem:[#allocation70_spill] sm:$0xff] }
 0x3c5   : > { %2799 = vmatpush3.bf16.msra.mxu1 %v2798_v22  ;;  %v5463_v22 = vld [vmem:[#allocation43_spill] sm:$0xff] }
 0x3c6   : > { %2800 = vmatprep.subr.bf16.mxu1 %v3466_v51 }
 0x3c9   : > { %2802 = vmatpush3.bf16.msra.mxu1 %v2801_v27  ;;  %v5466_v27 = vld [vmem:[#allocation48_spill] sm:$0xff] }
 0x3ca   : > { %2803 = vmatprep.subr.bf16.mxu1 %v3466_v51  ;;  %v2879_v8 = vpack.c.bf16 %v5466_v27, %v5465_v18  ;;  %v5481_v27 = vld [vmem:[#allocation66_spill] sm:$0xff] }
 0x3cd   : > { %2805 = vmatpush3.bf16.msra.mxu1 %v2804_v21  ;;  %v5468_v21 = vld [vmem:[#allocation59_spill] sm:$0xff] }
 0x3ce   : > { %2806 = vmatprep.subr.bf16.mxu1 %v3466_v51  ;;  %v2877_v51 = vpack.c.bf16 %v5464_v60, %v5463_v22  ;;  %v2817_v19 = vpack.c.bf16 %v5468_v21, %v5467_v57  ;;  %v2823_v22 = vpack.c.bf16 %v5478_v14, %v5477_v25  ;;  %v5479_v60 = vld [vmem:[#allocation67_spill] sm:$0xff]  ;;  %v5483_v21 = vld [vmem:[#allocation77_spill] sm:$0xff]  ;;  %v5493_v14 = vld [vmem:[#allocation88_spill] sm:$0xff] }
 0x3d0   : > { %2818 = vmatprep.subr.bf16.mxu0 %v2817_v19  ;;  %v5484_v19 = vld [vmem:[#allocation83_spill] sm:$0xff] }
 0x3d1   : > { %2808 = vmatpush3.bf16.msra.mxu1 %v2807_v17  ;;  %v5470_v17 = vld [vmem:[#allocation58_spill] sm:$0xff] }
 0x3d2   : > { %2874 = vmatprep.subr.bf16.mxu1 %v2873_v20  ;;  %v2819_v63 = vpack.c.bf16 %v5470_v17, %v5469_v2  ;;  %v5472_v20 = vld [vmem:[#allocation61_spill] sm:$0xff]  ;;  %v2825_v2 = vpack.c.bf16 %v5484_v19, %v5483_v21  ;;  %v5485_v17 = vld [vmem:[#allocation76_spill] sm:$0xff] }
 0x3d3   : > { %v2881_v5 = vpack.c.bf16 %v5472_v20, %v5471_v11  ;;  %v5487_v20 = vld [vmem:[#allocation79_spill] sm:$0xff]  ;;  %v5499_v19 = vld [vmem:[#allocation101_spill] sm:$0xff] }
 0x3d4   : > { %2433 = vmatmul.mubr.f32.vlgmr.msra.gmra.mrb[2].mxu1 %v4446_v16  ;;  %2820 = vmatpush1.bf16.msra.mxu0 %v2819_v63  ;;  %v5486_v63 = vld [vmem:[#allocation82_spill] sm:$0xff] }
 0x3d5   : > { %2876 = vmatpush1.bf16.msra.mxu1 %v2875_v42  ;;  %v5474_v42 = vld [vmem:[#allocation60_spill] sm:$0xff]  ;;  %2822 = vmatprep.subr.bf16.mxu0 %v2821_v48  ;;  %v2827_v11 = vpack.c.bf16 %v5486_v63, %v5485_v17  ;;  %v5492_v48 = vld [vmem:[#allocation95_spill] sm:$0xff] }
 0x3d6   : > { %2878 = vmatprep.subr.bf16.mxu1 %v2877_v51  ;;  %v2883_v45 = vpack.c.bf16 %v5474_v42, %v5473_v54  ;;  %v5480_v51 = vld [vmem:[#allocation73_spill] sm:$0xff]  ;;  %v5489_v42 = vld [vmem:[#allocation78_spill] sm:$0xff]  ;;  %v2829_v25 = vpack.c.bf16 %v5492_v48, %v5491_v15  ;;  %v5501_v63 = vld [vmem:[#allocation100_spill] sm:$0xff] }
 0x3d7   : > { %v2885_v18 = vpack.c.bf16 %v5480_v51, %v5479_v60  ;;  %v5495_v51 = vld [vmem:[#allocation91_spill] sm:$0xff]  ;;  %v5507_v48 = vld [vmem:[#allocation113_spill] sm:$0xff] }
 0x3d8   : > { %2824 = vmatpush1.bf16.msra.mxu0 %v2823_v22  ;;  %v5494_v22 = vld [vmem:[#allocation94_spill] sm:$0xff] }
 0x3d9   : > { %2880 = vmatpush1.bf16.msra.mxu1 %v2879_v8  ;;  %v5482_v8 = vld [vmem:[#allocation72_spill] sm:$0xff]  ;;  %2826 = vmatprep.subr.bf16.mxu0 %v2825_v2  ;;  %v2831_v60 = vpack.c.bf16 %v5494_v22, %v5493_v14  ;;  %v5500_v2 = vld [vmem:[#allocation107_spill] sm:$0xff] }
 0x3da   : > { %2882 = vmatprep.subr.bf16.mxu1 %v2881_v5  ;;  %v2887_v57 = vpack.c.bf16 %v5482_v8, %v5481_v27  ;;  %v5488_v5 = vld [vmem:[#allocation85_spill] sm:$0xff]  ;;  %v5497_v8 = vld [vmem:[#allocation90_spill] sm:$0xff]  ;;  %v2833_v17 = vpack.c.bf16 %v5500_v2, %v5499_v19  ;;  %v5509_v22 = vld [vmem:[#allocation112_spill] sm:$0xff] }
 0x3db   : > { %v2889_v54 = vpack.c.bf16 %v5488_v5, %v5487_v20  ;;  %v5503_v5 = vld [vmem:[#allocation103_spill] sm:$0xff]  ;;  %v5515_v2 = vld [vmem:[#allocation125_spill] sm:$0xff] }
 0x3dc   : > { %2828 = vmatpush1.bf16.msra.mxu0 %v2827_v11  ;;  %v5502_v11 = vld [vmem:[#allocation106_spill] sm:$0xff] }
 0x3dd   : > { %2884 = vmatpush1.bf16.msra.mxu1 %v2883_v45  ;;  %v5490_v45 = vld [vmem:[#allocation84_spill] sm:$0xff]  ;;  %2830 = vmatprep.subr.bf16.mxu0 %v2829_v25  ;;  %v2835_v20 = vpack.c.bf16 %v5502_v11, %v5501_v63  ;;  %v5508_v25 = vld [vmem:[#allocation119_spill] sm:$0xff] }
 0x3de   : > { %2886 = vmatprep.subr.bf16.mxu1 %v2885_v18  ;;  %v2891_v28 = vpack.c.bf16 %v5490_v45, %v5489_v42  ;;  %v5496_v18 = vld [vmem:[#allocation97_spill] sm:$0xff]  ;;  %v5505_v45 = vld [vmem:[#allocation102_spill] sm:$0xff]  ;;  %v2837_v14 = vpack.c.bf16 %v5508_v25, %v5507_v48  ;;  %v5517_v11 = vld [vmem:[#allocation124_spill] sm:$0xff] }
 0x3df   : > { %v2893_v27 = vpack.c.bf16 %v5496_v18, %v5495_v51  ;;  %v5511_v18 = vld [vmem:[#allocation115_spill] sm:$0xff]  ;;  %v5523_v25 = vld [vmem:[#allocation137_spill] sm:$0xff] }
 0x3e0   : > { %2832 = vmatpush1.bf16.msra.mxu0 %v2831_v60  ;;  %v5510_v60 = vld [vmem:[#allocation118_spill] sm:$0xff] }
 0x3e1   : > { %2888 = vmatpush1.bf16.msra.mxu1 %v2887_v57  ;;  %v5498_v57 = vld [vmem:[#allocation96_spill] sm:$0xff]  ;;  %2834 = vmatprep.subr.bf16.mxu0 %v2833_v17  ;;  %v2839_v51 = vpack.c.bf16 %v5510_v60, %v5509_v22  ;;  %v5516_v17 = vld [vmem:[#allocation131_spill] sm:$0xff] }
 0x3e2   : > { %2890 = vmatprep.subr.bf16.mxu1 %v2889_v54  ;;  %v2895_v21 = vpack.c.bf16 %v5498_v57, %v5497_v8  ;;  %v5504_v54 = vld [vmem:[#allocation109_spill] sm:$0xff]  ;;  %v5513_v57 = vld [vmem:[#allocation114_spill] sm:$0xff]  ;;  %v2841_v63 = vpack.c.bf16 %v5516_v17, %v5515_v2  ;;  %v5525_v60 = vld [vmem:[#allocation136_spill] sm:$0xff] }
 0x3e3   : > { %v2897_v42 = vpack.c.bf16 %v5504_v54, %v5503_v5  ;;  %v5519_v54 = vld [vmem:[#allocation127_spill] sm:$0xff]  ;;  %v5531_v17 = vld [vmem:[#allocation149_spill] sm:$0xff] }
 0x3e4   : > { %2836 = vmatpush1.bf16.msra.mxu0 %v2835_v20  ;;  %v5518_v20 = vld [vmem:[#allocation130_spill] sm:$0xff] }
 0x3e5   : > { %2892 = vmatpush1.bf16.msra.mxu1 %v2891_v28  ;;  %v5506_v28 = vld [vmem:[#allocation108_spill] sm:$0xff]  ;;  %2838 = vmatprep.subr.bf16.mxu0 %v2837_v14  ;;  %v2843_v5 = vpack.c.bf16 %v5518_v20, %v5517_v11  ;;  %v5524_v14 = vld [vmem:[#allocation143_spill] sm:$0xff] }
 0x3e6   : > { %2894 = vmatprep.subr.bf16.mxu1 %v2893_v27  ;;  %v2899_v15 = vpack.c.bf16 %v5506_v28, %v5505_v45  ;;  %v5512_v27 = vld [vmem:[#allocation121_spill] sm:$0xff]  ;;  %v5521_v28 = vld [vmem:[#allocation126_spill] sm:$0xff]  ;;  %v2845_v22 = vpack.c.bf16 %v5524_v14, %v5523_v25  ;;  %v5533_v20 = vld [vmem:[#allocation148_spill] sm:$0xff] }
 0x3e7   : > { %v2901_v8 = vpack.c.bf16 %v5512_v27, %v5511_v18  ;;  %v5527_v27 = vld [vmem:[#allocation139_spill] sm:$0xff]  ;;  %v5539_v14 = vld [vmem:[#allocation161_spill] sm:$0xff] }
 0x3e8   : > { %2840 = vmatpush1.bf16.msra.mxu0 %v2839_v51  ;;  %v5526_v51 = vld [vmem:[#allocation142_spill] sm:$0xff] }
 0x3e9   : > { %2896 = vmatpush1.bf16.msra.mxu1 %v2895_v21  ;;  %v5514_v21 = vld [vmem:[#allocation120_spill] sm:$0xff]  ;;  %2842 = vmatprep.subr.bf16.mxu0 %v2841_v63  ;;  %v2847_v18 = vpack.c.bf16 %v5526_v51, %v5525_v60  ;;  %v5532_v63 = vld [vmem:[#allocation155_spill] sm:$0xff] }
 0x3ea   : > { %2898 = vmatprep.subr.bf16.mxu1 %v2897_v42  ;;  %v2903_v19 = vpack.c.bf16 %v5514_v21, %v5513_v57  ;;  %v5520_v42 = vld [vmem:[#allocation133_spill] sm:$0xff]  ;;  %v5529_v21 = vld [vmem:[#allocation138_spill] sm:$0xff]  ;;  %v2849_v11 = vpack.c.bf16 %v5532_v63, %v5531_v17  ;;  %v5541_v51 = vld [vmem:[#allocation160_spill] sm:$0xff] }
 0x3eb   : > { %v2905_v45 = vpack.c.bf16 %v5520_v42, %v5519_v54  ;;  %v5535_v42 = vld [vmem:[#allocation151_spill] sm:$0xff]  ;;  %v5547_v63 = vld [vmem:[#allocation173_spill] sm:$0xff] }
 0x3ec   : > { %2844 = vmatpush1.bf16.msra.mxu0 %v2843_v5  ;;  %v5534_v5 = vld [vmem:[#allocation154_spill] sm:$0xff] }
 0x3ed   : > { %2900 = vmatpush1.bf16.msra.mxu1 %v2899_v15  ;;  %v5522_v15 = vld [vmem:[#allocation132_spill] sm:$0xff]  ;;  %2846 = vmatprep.subr.bf16.mxu0 %v2845_v22  ;;  %v2851_v54 = vpack.c.bf16 %v5534_v5, %v5533_v20  ;;  %v5540_v22 = vld [vmem:[#allocation167_spill] sm:$0xff] }
 0x3ee   : > { %2902 = vmatprep.subr.bf16.mxu1 %v2901_v8  ;;  %v2907_v48 = vpack.c.bf16 %v5522_v15, %v5521_v28  ;;  %v5528_v8 = vld [vmem:[#allocation145_spill] sm:$0xff]  ;;  %v5537_v15 = vld [vmem:[#allocation150_spill] sm:$0xff]  ;;  %v2853_v60 = vpack.c.bf16 %v5540_v22, %v5539_v14  ;;  %v5549_v5 = vld [vmem:[#allocation172_spill] sm:$0xff] }
 0x3ef   : > { %v2909_v57 = vpack.c.bf16 %v5528_v8, %v5527_v27  ;;  %v5543_v8 = vld [vmem:[#allocation163_spill] sm:$0xff]  ;;  %v5555_v22 = vld [vmem:[#allocation185_spill] sm:$0xff] }
 0x3f0   : > { %2848 = vmatpush1.bf16.msra.mxu0 %v2847_v18  ;;  %v5542_v18 = vld [vmem:[#allocation166_spill] sm:$0xff] }
 0x3f1   : > { %2904 = vmatpush1.bf16.msra.mxu1 %v2903_v19  ;;  %v5530_v19 = vld [vmem:[#allocation144_spill] sm:$0xff]  ;;  %2850 = vmatprep.subr.bf16.mxu0 %v2849_v11  ;;  %v2855_v27 = vpack.c.bf16 %v5542_v18, %v5541_v51  ;;  %v5548_v11 = vld [vmem:[#allocation179_spill] sm:$0xff] }
 0x3f2   : > { %2906 = vmatprep.subr.bf16.mxu1 %v2905_v45  ;;  %v2911_v2 = vpack.c.bf16 %v5530_v19, %v5529_v21  ;;  %v5536_v45 = vld [vmem:[#allocation157_spill] sm:$0xff]  ;;  %v5545_v19 = vld [vmem:[#allocation162_spill] sm:$0xff]  ;;  %v2857_v20 = vpack.c.bf16 %v5548_v11, %v5547_v63  ;;  %v5557_v18 = vld [vmem:[#allocation184_spill] sm:$0xff] }
 0x3f3   : > { %v2913_v28 = vpack.c.bf16 %v5536_v45, %v5535_v42  ;;  %v5551_v45 = vld [vmem:[#allocation175_spill] sm:$0xff]  ;;  %v5563_v11 = vld [vmem:[#allocation197_spill] sm:$0xff] }
 0x3f4   : > { %2852 = vmatpush1.bf16.msra.mxu0 %v2851_v54  ;;  %v5550_v54 = vld [vmem:[#allocation178_spill] sm:$0xff] }
 0x3f5   : > { %2908 = vmatpush1.bf16.msra.mxu1 %v2907_v48  ;;  %v5538_v48 = vld [vmem:[#allocation156_spill] sm:$0xff]  ;;  %2854 = vmatprep.subr.bf16.mxu0 %v2853_v60  ;;  %v2859_v42 = vpack.c.bf16 %v5550_v54, %v5549_v5  ;;  %v5556_v60 = vld [vmem:[#allocation191_spill] sm:$0xff] }
 0x3f6   : > { %2910 = vmatprep.subr.bf16.mxu1 %v2909_v57  ;;  %v2915_v25 = vpack.c.bf16 %v5538_v48, %v5537_v15  ;;  %v5544_v57 = vld [vmem:[#allocation169_spill] sm:$0xff]  ;;  %v5553_v48 = vld [vmem:[#allocation174_spill] sm:$0xff]  ;;  %v2861_v51 = vpack.c.bf16 %v5556_v60, %v5555_v22  ;;  %v5565_v54 = vld [vmem:[#allocation196_spill] sm:$0xff] }
 0x3f7   : > { %v2917_v21 = vpack.c.bf16 %v5544_v57, %v5543_v8  ;;  %v5559_v57 = vld [vmem:[#allocation187_spill] sm:$0xff]  ;;  %v5571_v60 = vld [vmem:[#allocation209_spill] sm:$0xff] }
 0x3f8   : > { %2856 = vmatpush1.bf16.msra.mxu0 %v2855_v27  ;;  %v5558_v27 = vld [vmem:[#allocation190_spill] sm:$0xff] }
 0x3f9   : > { %2912 = vmatpush1.bf16.msra.mxu1 %v2911_v2  ;;  %v5546_v2 = vld [vmem:[#allocation168_spill] sm:$0xff]  ;;  %2858 = vmatprep.subr.bf16.mxu0 %v2857_v20  ;;  %v2863_v8 = vpack.c.bf16 %v5558_v27, %v5557_v18  ;;  %v5564_v20 = vld [vmem:[#allocation203_spill] sm:$0xff] }
 0x3fa   : > { %2914 = vmatprep.subr.bf16.mxu1 %v2913_v28  ;;  %v2919_v17 = vpack.c.bf16 %v5546_v2, %v5545_v19  ;;  %v5552_v28 = vld [vmem:[#allocation181_spill] sm:$0xff]  ;;  %v5561_v2 = vld [vmem:[#allocation186_spill] sm:$0xff]  ;;  %v2865_v5 = vpack.c.bf16 %v5564_v20, %v5563_v11  ;;  %v5573_v27 = vld [vmem:[#allocation208_spill] sm:$0xff] }
 0x3fb   : > { %v2921_v15 = vpack.c.bf16 %v5552_v28, %v5551_v45  ;;  %v5567_v28 = vld [vmem:[#allocation199_spill] sm:$0xff] }
 0x3fc   : > { %2860 = vmatpush1.bf16.msra.mxu0 %v2859_v42  ;;  %v5566_v42 = vld [vmem:[#allocation202_spill] sm:$0xff]  ;;  %v5579_v20 = vld [vmem:[#allocation35_spill] sm:$0xff] }
 0x3fd   : > { %2916 = vmatpush1.bf16.msra.mxu1 %v2915_v25  ;;  %v5554_v25 = vld [vmem:[#allocation180_spill] sm:$0xff]  ;;  %2862 = vmatprep.subr.bf16.mxu0 %v2861_v51  ;;  %v2867_v45 = vpack.c.bf16 %v5566_v42, %v5565_v54  ;;  %v5572_v51 = vld [vmem:[#allocation215_spill] sm:$0xff]  ;;  %v4592_v42 = vld [vmem:[#allocation3 + $0x8] sm:$0xff] }
 0x3fe   : > { %2918 = vmatprep.subr.bf16.mxu1 %v2917_v21  ;;  %v2923_v14 = vpack.c.bf16 %v5554_v25, %v5553_v48  ;;  %v5560_v21 = vld [vmem:[#allocation193_spill] sm:$0xff]  ;;  %v5569_v25 = vld [vmem:[#allocation198_spill] sm:$0xff]  ;;  %v2869_v18 = vpack.c.bf16 %v5572_v51, %v5571_v60  ;;  %1507 = vmatprep.mubr.f32.mxu0 %v4592_v42  ;;  %v5582_v60 = vld [vmem:[#allocation11_spill] sm:$0xff] }
 0x3ff   : > { %v2925_v19 = vpack.c.bf16 %v5560_v21, %v5559_v57  ;;  %v5575_v21 = vld [vmem:[#allocation211_spill] sm:$0xff]  ;;  %1578 = vmatprep.mubr.f32.mxu1 %v4592_v42 }
 0x400   : > { %2864 = vmatpush1.bf16.msra.mxu0 %v2863_v8  ;;  %v5574_v8 = vld [vmem:[#allocation214_spill] sm:$0xff] }
 0x401   : > { %2920 = vmatpush1.bf16.msra.mxu1 %v2919_v17  ;;  %v5562_v17 = vld [vmem:[#allocation192_spill] sm:$0xff]  ;;  %2866 = vmatprep.subr.bf16.mxu0 %v2865_v5  ;;  %v2871_v57 = vpack.c.bf16 %v5574_v8, %v5573_v27  ;;  %v5580_v5 = vld [vmem:[#allocation39_spill] sm:$0xff] }
 0x402   : > { %2922 = vmatprep.subr.bf16.mxu1 %v2921_v15  ;;  %v2927_v63 = vpack.c.bf16 %v5562_v17, %v5561_v2  ;;  %v5568_v15 = vld [vmem:[#allocation205_spill] sm:$0xff]  ;;  %v5577_v17 = vld [vmem:[#allocation210_spill] sm:$0xff]  ;;  %v2937_v54 = vpack.c.bf16 %v5580_v5, %v5579_v20 }
 0x403   : > { %v2929_v48 = vpack.c.bf16 %v5568_v15, %v5567_v28  ;;  %v5581_v15 = vld [vmem:[#allocation10_spill] sm:$0xff]  ;;  %v5584_v5 = vld [vmem:[#allocation13_spill] sm:$0xff] }
 0x404   : > { %2868 = vmatpush1.bf16.msra.mxu0 %v2867_v45  ;;  %v1272_v45 = vld [vmem:[#allocation2 + $0x18] sm:$0xff] }
 0x405   : > { %2924 = vmatpush1.bf16.msra.mxu1 %v2923_v14  ;;  %v5570_v14 = vld [vmem:[#allocation204_spill] sm:$0xff]  ;;  %2870 = vmatprep.subr.bf16.mxu0 %v2869_v18  ;;  %v1273_v18 = vld [vmem:[#allocation2 + $0x20] sm:$0xff] }
 0x406   : > { %2926 = vmatprep.subr.bf16.mxu1 %v2925_v19  ;;  %v2931_v22 = vpack.c.bf16 %v5570_v14, %v5569_v25  ;;  %v5576_v19 = vld [vmem:[#allocation217_spill] sm:$0xff] }
 0x407   : > { %v2933_v2 = vpack.c.bf16 %v5576_v19, %v5575_v21 }
 0x408   : > { %2872 = vmatpush1.bf16.msra.mxu0 %v2871_v57 }
 0x409   : > { %2928 = vmatpush1.bf16.msra.mxu1 %v2927_v63  ;;  %v5578_v63 = vld [vmem:[#allocation216_spill] sm:$0xff]  ;;  %2938 = vmatprep.subr.bf16.mxu0 %v2937_v54 }
 0x40a   : > { %2930 = vmatprep.subr.bf16.mxu1 %v2929_v48  ;;  %v2935_v11 = vpack.c.bf16 %v5578_v63, %v5577_v17 }
 0x40d   : > { %2932 = vmatpush1.bf16.msra.mxu1 %v2931_v22 }
 0x40e   : > { %2934 = vmatprep.subr.bf16.mxu1 %v2933_v2  ;;  %v1274_v2 = vld [vmem:[#allocation2 + $0x28] sm:$0xff] }
 0x40f   : > { %v1432_v54 = vadd.f32 %v5584_v5, %v1274_v2 }
 0x411   : > { %2936 = vmatpush1.bf16.msra.mxu1 %v2935_v11  ;;  %v5583_v11 = vld [vmem:[#allocation12_spill] sm:$0xff] }
 0x487   : > { %v1343_v28 = vpop.f32.mrb[0].mxu1 }
 0x488   : > { %v1344_v48 = vadd.f32 %v1343_v28, %v5581_v15  ;;  %v1345_v25 = vpop.f32.mrb[1].mxu1 }
 0x489   : > { %v1346_v51 = vadd.f32 %v1345_v25, %v5582_v60 }
 0x48a   : > { %v1418_v14 = vadd.f32 %v1344_v48, %v1272_v45 }
 0x48b   : > { %v1425_v27 = vadd.f32 %v1346_v51, %v1273_v18  ;;  %v5585_v18 = vld [vmem:[#allocation34_spill] sm:$0xff] }
 0x48c   : > { %v2269_v22 = vmul.f32 -1.442695, %v1418_v14 }
 0x48d   : > { %v2270_v8 = vmul.f32 -1.442695, %v1425_v27  ;;  %v5586_v27 = vld [vmem:[#allocation38_spill] sm:$0xff] }
 0x48e   : > { %3341 = vpow2.f32 %v2269_v22 }
 0x48f   : > { %3343 = vpow2.f32 %v2270_v8  ;;  %v2939_v8 = vpack.c.bf16 %v5586_v27, %v5585_v18  ;;  %v5600_v18 = vld [vmem:[#allocation87_spill] sm:$0xff] }
 0x498   : > { %v3342_v57 = vpop.eup %3341 }
 0x499   : > { %v1422_v21 = vadd.f32 1.0, %v3342_v57  ;;  %v3344_v19 = vpop.eup %3343 }
 0x49a   : > { %v1429_v17 = vadd.f32 1.0, %v3344_v19  ;;  %v5588_v19 = vld [vmem:[#allocation51_spill] sm:$0xff] }
 0x49b   : > { %3345 = vrcp.f32 %v1422_v21  ;;  %v5587_v21 = vld [vmem:[#allocation45_spill] sm:$0xff] }
 0x49c   : > { %3347 = vrcp.f32 %v1429_v17  ;;  %v2941_v2 = vpack.c.bf16 %v5588_v19, %v5587_v21  ;;  %v5589_v17 = vld [vmem:[#allocation44_spill] sm:$0xff]  ;;  %v5602_v21 = vld [vmem:[#allocation86_spill] sm:$0xff] }
 0x4a5   : > { %v3346_v28 = vpop.eup %3345 }
 0x4a6   : > { %v3348_v25 = vpop.eup %3347 }
 0x4a7   : > { %v1414_v63 = vpop.f32.mrb[2].mxu1  ;;  %v1436_v14 = vsub.f32 1.0, %v3348_v25  ;;  %v1438_v60 = vmul.f32 %v3348_v25, %v4446_v16  ;;  %v5591_v16 = vld [vmem:[#allocation57_spill] sm:$0xff] }
 0x4a8   : > { %v1415_v20 = vadd.f32 %v1414_v63, %v5583_v11  ;;  %v2434_v45 = vpop.f32.mrb[3].mxu1  ;;  %v5590_v63 = vld [vmem:[#allocation50_spill] sm:$0xff] }
 0x4a9   : > { %v2943_v11 = vpack.c.bf16 %v5590_v63, %v5589_v17  ;;  %v5594_v45 = vld [vmem:[#allocation62_spill] sm:$0xff]  ;;  %v5604_v17 = vld [vmem:[#allocation99_spill] sm:$0xff] }
 0x4aa   : > { %v1433_v15 = vmul.f32 %v3346_v28, %v1415_v20  ;;  %v5592_v20 = vld [vmem:[#allocation63_spill] sm:$0xff] }
 0x4ab   : > { %v2945_v5 = vpack.c.bf16 %v5592_v20, %v5591_v16  ;;  %v5606_v16 = vld [vmem:[#allocation98_spill] sm:$0xff] }
 0x4ac   : > { %v1434_v48 = vadd.f32 %v1433_v15, %v1432_v54  ;;  %v5593_v54 = vld [vmem:[#allocation56_spill] sm:$0xff]  ;;  %v5595_v15 = vld [vmem:[#allocation69_spill] sm:$0xff] }
 0x4ad   : > { %v2947_v28 = vpack.c.bf16 %v5594_v45, %v5593_v54  ;;  %v5608_v54 = vld [vmem:[#allocation111_spill] sm:$0xff] }
 0x4ae   : > { %3349 = vtanh.f32 %v1434_v48  ;;  %v5596_v48 = vld [vmem:[#allocation75_spill] sm:$0xff] }
 0x4af   : > { %v2949_v25 = vpack.c.bf16 %v5596_v48, %v5595_v15  ;;  %v5610_v15 = vld [vmem:[#allocation110_spill] sm:$0xff] }
 0x4b8   : > { %v3350_v22 = vpop.eup %3349 }
 0x4b9   : > { %v1437_v51 = vmul.f32 %v3350_v22, %v1436_v14  ;;  %v5597_v14 = vld [vmem:[#allocation68_spill] sm:$0xff]  ;;  %v5598_v22 = vld [vmem:[#allocation74_spill] sm:$0xff] }
 0x4bb   : > { %v4603_v57 = vadd.f32 %v1438_v60, %v1437_v51  ;;  %v2951_v60 = vpack.c.bf16 %v5598_v22, %v5597_v14  ;;  %v5599_v51 = vld [vmem:[#allocation81_spill] sm:$0xff]  ;;  %v5612_v14 = vld [vmem:[#allocation123_spill] sm:$0xff] }
 0x4bc   : > { %v2953_v27 = vpack.c.bf16 %v5600_v18, %v5599_v51  ;;  %v5614_v51 = vld [vmem:[#allocation122_spill] sm:$0xff] }
 0x4bd   : > { %1440 = vst [vmem:[#allocation3] sm:$0xff] %v4603_v57  ;;  %1508 = vmatmul.mubr.f32.vlgmr.msra.gmra.mrb[0].mxu0 %v4603_v57  ;;  %1579 = vmatmul.mubr.f32.vlgmr.msra.gmra.mrb[4].mxu1 %v4603_v57 }
 0x4be   : > { %2940 = vmatpush1.bf16.msra.mxu0 %v2939_v8  ;;  %1649 = vmatprep.mubr.f32.mxu0 %v4592_v42  ;;  %v5601_v8 = vld [vmem:[#allocation80_spill] sm:$0xff] }
 0x4bf   : > { %2942 = vmatprep.subr.bf16.mxu0 %v2941_v2  ;;  %v2955_v19 = vpack.c.bf16 %v5602_v21, %v5601_v8  ;;  %v5603_v2 = vld [vmem:[#allocation93_spill] sm:$0xff]  ;;  %v5616_v8 = vld [vmem:[#allocation135_spill] sm:$0xff] }
 0x4c0   : > { %v2957_v63 = vpack.c.bf16 %v5604_v17, %v5603_v2  ;;  %v5618_v2 = vld [vmem:[#allocation134_spill] sm:$0xff] }
 0x4c2   : > { %2944 = vmatpush1.bf16.msra.mxu0 %v2943_v11  ;;  %v5605_v11 = vld [vmem:[#allocation92_spill] sm:$0xff] }
 0x4c3   : > { %2946 = vmatprep.subr.bf16.mxu0 %v2945_v5  ;;  %v2959_v20 = vpack.c.bf16 %v5606_v16, %v5605_v11  ;;  %v5607_v5 = vld [vmem:[#allocation105_spill] sm:$0xff]  ;;  %v5620_v11 = vld [vmem:[#allocation147_spill] sm:$0xff] }
 0x4c4   : > { %v2961_v45 = vpack.c.bf16 %v5608_v54, %v5607_v5  ;;  %v5622_v5 = vld [vmem:[#allocation146_spill] sm:$0xff] }
 0x4c6   : > { %2948 = vmatpush1.bf16.msra.mxu0 %v2947_v28  ;;  %v5609_v28 = vld [vmem:[#allocation104_spill] sm:$0xff] }
 0x4c7   : > { %2950 = vmatprep.subr.bf16.mxu0 %v2949_v25  ;;  %v2963_v48 = vpack.c.bf16 %v5610_v15, %v5609_v28  ;;  %v5611_v25 = vld [vmem:[#allocation117_spill] sm:$0xff]  ;;  %v5624_v28 = vld [vmem:[#allocation159_spill] sm:$0xff] }
 0x4c8   : > { %v2965_v22 = vpack.c.bf16 %v5612_v14, %v5611_v25  ;;  %v5626_v25 = vld [vmem:[#allocation158_spill] sm:$0xff] }
 0x4ca   : > { %2952 = vmatpush1.bf16.msra.mxu0 %v2951_v60  ;;  %v5613_v60 = vld [vmem:[#allocation116_spill] sm:$0xff] }
 0x4cb   : > { %2954 = vmatprep.subr.bf16.mxu0 %v2953_v27  ;;  %v2967_v18 = vpack.c.bf16 %v5614_v51, %v5613_v60  ;;  %v5615_v27 = vld [vmem:[#allocation129_spill] sm:$0xff]  ;;  %v5628_v60 = vld [vmem:[#allocation171_spill] sm:$0xff] }
 0x4cc   : > { %v2969_v21 = vpack.c.bf16 %v5616_v8, %v5615_v27  ;;  %v5630_v27 = vld [vmem:[#allocation170_spill] sm:$0xff] }
 0x4ce   : > { %2956 = vmatpush1.bf16.msra.mxu0 %v2955_v19  ;;  %v5617_v19 = vld [vmem:[#allocation128_spill] sm:$0xff] }
 0x4cf   : > { %2958 = vmatprep.subr.bf16.mxu0 %v2957_v63  ;;  %v2971_v17 = vpack.c.bf16 %v5618_v2, %v5617_v19  ;;  %v5619_v63 = vld [vmem:[#allocation141_spill] sm:$0xff]  ;;  %v5632_v19 = vld [vmem:[#allocation183_spill] sm:$0xff] }
 0x4d0   : > { %v2973_v16 = vpack.c.bf16 %v5620_v11, %v5619_v63  ;;  %v5634_v63 = vld [vmem:[#allocation182_spill] sm:$0xff] }
 0x4d2   : > { %2960 = vmatpush1.bf16.msra.mxu0 %v2959_v20  ;;  %v5621_v20 = vld [vmem:[#allocation140_spill] sm:$0xff] }
 0x4d3   : > { %2962 = vmatprep.subr.bf16.mxu0 %v2961_v45  ;;  %v2975_v54 = vpack.c.bf16 %v5622_v5, %v5621_v20  ;;  %v5623_v45 = vld [vmem:[#allocation153_spill] sm:$0xff]  ;;  %v5636_v20 = vld [vmem:[#allocation195_spill] sm:$0xff] }
 0x4d4   : > { %v2977_v15 = vpack.c.bf16 %v5624_v28, %v5623_v45  ;;  %v5638_v45 = vld [vmem:[#allocation194_spill] sm:$0xff] }
 0x4d6   : > { %2964 = vmatpush1.bf16.msra.mxu0 %v2963_v48  ;;  %v5625_v48 = vld [vmem:[#allocation152_spill] sm:$0xff] }
 0x4d7   : > { %2966 = vmatprep.subr.bf16.mxu0 %v2965_v22  ;;  %v2979_v14 = vpack.c.bf16 %v5626_v25, %v5625_v48  ;;  %v5627_v22 = vld [vmem:[#allocation165_spill] sm:$0xff]  ;;  %v5640_v48 = vld [vmem:[#allocation207_spill] sm:$0xff] }
 0x4d8   : > { %v2981_v51 = vpack.c.bf16 %v5628_v60, %v5627_v22  ;;  %v5642_v22 = vld [vmem:[#allocation206_spill] sm:$0xff] }
 0x4da   : > { %2968 = vmatpush1.bf16.msra.mxu0 %v2967_v18  ;;  %v5629_v18 = vld [vmem:[#allocation164_spill] sm:$0xff] }
 0x4db   : > { %2970 = vmatprep.subr.bf16.mxu0 %v2969_v21  ;;  %v2983_v8 = vpack.c.bf16 %v5630_v27, %v5629_v18  ;;  %v5631_v21 = vld [vmem:[#allocation177_spill] sm:$0xff]  ;;  %v5644_v18 = vld [vmem:[#allocation219_spill] sm:$0xff] }
 0x4dc   : > { %v2985_v2 = vpack.c.bf16 %v5632_v19, %v5631_v21  ;;  %v5646_v21 = vld [vmem:[#allocation218_spill] sm:$0xff] }
 0x4de   : > { %2972 = vmatpush1.bf16.msra.mxu0 %v2971_v17  ;;  %v5633_v17 = vld [vmem:[#allocation176_spill] sm:$0xff] }
 0x4df   : > { %2974 = vmatprep.subr.bf16.mxu0 %v2973_v16  ;;  %v2987_v11 = vpack.c.bf16 %v5634_v63, %v5633_v17  ;;  %v5635_v16 = vld [vmem:[#allocation189_spill] sm:$0xff]  ;;  %v5647_v63 = vld [vmem:[#allocation14_spill] sm:$0xff] }
 0x4e0   : > { %v2989_v5 = vpack.c.bf16 %v5636_v20, %v5635_v16 }
 0x4e2   : > { %2976 = vmatpush1.bf16.msra.mxu0 %v2975_v54  ;;  %v5637_v54 = vld [vmem:[#allocation188_spill] sm:$0xff] }
 0x4e3   : > { %2978 = vmatprep.subr.bf16.mxu0 %v2977_v15  ;;  %v2991_v28 = vpack.c.bf16 %v5638_v45, %v5637_v54  ;;  %v5639_v15 = vld [vmem:[#allocation201_spill] sm:$0xff] }
 0x4e4   : > { %v2993_v25 = vpack.c.bf16 %v5640_v48, %v5639_v15 }
 0x4e6   : > { %2980 = vmatpush1.bf16.msra.mxu0 %v2979_v14  ;;  %v5641_v14 = vld [vmem:[#allocation200_spill] sm:$0xff] }
 0x4e7   : > { %2982 = vmatprep.subr.bf16.mxu0 %v2981_v51  ;;  %v2995_v60 = vpack.c.bf16 %v5642_v22, %v5641_v14  ;;  %v5643_v51 = vld [vmem:[#allocation213_spill] sm:$0xff]  ;;  %v5649_v14 = vld [vmem:[#allocation15_spill] sm:$0xff] }
 0x4e8   : > { %v2997_v27 = vpack.c.bf16 %v5644_v18, %v5643_v51  ;;  %v5651_v18 = vld [vmem:[#allocation19_spill] sm:$0xff] }
 0x4ea   : > { %2984 = vmatpush1.bf16.msra.mxu0 %v2983_v8  ;;  %v5645_v8 = vld [vmem:[#allocation212_spill] sm:$0xff] }
 0x4eb   : > { %2986 = vmatprep.subr.bf16.mxu0 %v2985_v2  ;;  %v2999_v19 = vpack.c.bf16 %v5646_v21, %v5645_v8 }
 0x4ee   : > { %2988 = vmatpush1.bf16.msra.mxu0 %v2987_v11 }
 0x4ef   : > { %2990 = vmatprep.subr.bf16.mxu0 %v2989_v5  ;;  %v5648_v5 = vld [vmem:[#allocation17_spill] sm:$0xff] }
 0x4f2   : > { %2992 = vmatpush1.bf16.msra.mxu0 %v2991_v28 }
 0x4f3   : > { %2994 = vmatprep.subr.bf16.mxu0 %v2993_v25 }
 0x4f6   : > { %2996 = vmatpush1.bf16.msra.mxu0 %v2995_v60  ;;  %v5650_v60 = vld [vmem:[#allocation18_spill] sm:$0xff] }
 0x4f7   : > { %2998 = vmatprep.subr.bf16.mxu0 %v2997_v27 }
 0x4fa   : > { %3000 = vmatpush1.bf16.msra.mxu0 %v2999_v19  ;;  %v5652_v19 = vld [vmem:[#allocation16_spill] sm:$0xff] }
 0x4fd   : > { %1650 = vmatmul.mubr.f32.vlgmr.msra.gmra.mrb[2].mxu0 %v4603_v57 }
 0x590   : > { %v1509_v2 = vpop.f32.mrb[0].mxu0  ;;  %v1580_v17 = vpop.f32.mrb[4].mxu1 }
 0x591   : > { %v1510_v11 = vadd.f32 %v1509_v2, %v5647_v63  ;;  %v1511_v16 = vpop.f32.mrb[1].mxu0  ;;  %v1582_v20 = vpop.f32.mrb[5].mxu1  ;;  %v1581_v2 = vadd.f32 %v1580_v17, %v5652_v19 }
 0x592   : > { %v1583_v54 = vadd.f32 %v1582_v20, %v5648_v5  ;;  %v1512_v22 = vadd.f32 %v1511_v16, %v5649_v14 }
 0x594   : > { %v1656_v45 = vadd.f32 %v1583_v54, %v1510_v11 }
 0x596   : > { %v2271_v28 = vmul.f32 -1.442695, %v1656_v45 }
 0x598   : > { %3351 = vpow2.f32 %v2271_v28 }
 0x5a2   : > { %v3352_v15 = vpop.eup %3351 }
 0x5a3   : > { %v1660_v48 = vadd.f32 1.0, %v3352_v15 }
 0x5a5   : > { %3353 = vrcp.f32 %v1660_v48 }
 0x5af   : > { %v3354_v8 = vpop.eup %3353 }
 0x5d0   : > { %v1651_v25 = vpop.f32.mrb[2].mxu0 }
 0x5d1   : > { %v1652_v51 = vadd.f32 %v1651_v25, %v5650_v60  ;;  %v1653_v57 = vpop.f32.mrb[3].mxu0 }
 0x5d2   : > { %v1654_v27 = vadd.f32 %v1653_v57, %v5651_v18 }
 0x5d3   : > { %v1663_v21 = vadd.f32 %v1652_v51, %v1512_v22 }
 0x5d4   : > { %v1670_v63 = vmul.f32 %v3354_v8, %v1654_v27 }
 0x5d5   : > { %v2272_v20 = vmul.f32 -1.442695, %v1663_v21 }
 0x5d6   : > { %v1671_v11 = vadd.f32 %v1670_v63, %v1581_v2 }
 0x5d7   : > { %3355 = vpow2.f32 %v2272_v20 }
 0x5e1   : > { %v3356_v5 = vpop.eup %3355 }
 0x5e2   : > { %v1667_v54 = vadd.f32 1.0, %v3356_v5 }
 0x5e4   : > { %3357 = vrcp.f32 %v1667_v54 }
 0x5e5   : > { %3359 = vtanh.f32 %v1671_v11 }
 0x5ee   : > { %v3358_v45 = vpop.eup %3357 }
 0x5ef   : > { %v1673_v28 = vsub.f32 1.0, %v3358_v45  ;;  %v3360_v16 = vpop.eup %3359  ;;  %v1675_v15 = vmul.f32 %v3358_v45, %v4592_v42 }
 0x5f1   : > { %v1674_v48 = vmul.f32 %v3360_v16, %v1673_v28 }
 0x5f3   : > { %v1676_v25 = vadd.f32 %v1675_v15, %v1674_v48 }
 0x5f5   : > { %1677 = vst [vmem:[#allocation3 + $0x8] sm:$0xff] %v1676_v25 }
 0x5f6 PF: > { %s1678_s13 = sadd.s32 2, %s3608_s16 }
 0x5f7   : > { %p2273_p12 = scmp.ge.s32.totalorder %s1678_s13, 8 }
 0x5f8   : > { %v3001_v17 = vpack.c.bf16 (!%p2273_p12), %v3667_v31, %v3653_v24  ;;  %v3003_v14 = vpack.c.bf16 (!%p2273_p12), %v3665_v30, %v3651_v23  ;;  %v3005_v22 = vpack.c.bf16 (!%p2273_p12), %v3681_v38, %v3675_v35  ;;  %v3007_v42 = vpack.c.bf16 (!%p2273_p12), %v3679_v37, %v3673_v34  ;;  %v5669_v18 = vld [vmem:[#allocation41_spill] sm:$0xff] (!%p2273_p12)  ;;  %v5670_v27 = vld [vmem:[#allocation47_spill] sm:$0xff] (!%p2273_p12)  ;;  %v5671_v21 = vld [vmem:[#allocation40_spill] sm:$0xff] (!%p2273_p12) }
 0x5f9   : > { %1682 = sbr.rel (%p2273_p12) target bundleno = 2140 (0x85c), region = 80  ;;  %v3009_v60 = vpack.c.bf16 (!%p2273_p12), %v3693_v44, %v3687_v41  ;;  %v3468_v51 = vmov (!%p2273_p12), 0.0   ;;  %v3057_v24 = vpack.c.bf16 (!%p2273_p12), %v3771_v32, %v3759_v13  ;;  %v3011_v23 = vpack.c.bf16 (!%p2273_p12), %v3691_v43, %v3685_v40  ;;  %v4714_v44 = vld [vmem:[#allocation3] sm:$0xff] (!%p2273_p12)  ;;  %v5672_v19 = vld [vmem:[#allocation46_spill] sm:$0xff] (!%p2273_p12)  ;;  %v5673_v63 = vld [vmem:[#allocation43_spill] sm:$0xff] (!%p2273_p12) }
 0x5fa   : > { %3002 = vmatprep.subr.bf16.mxu1 (!%p2273_p12), %v3001_v17  ;;  %1755 = vmatprep.mubr.f32.mxu1 (!%p2273_p12), %v3468_v51  ;;  %v3059_v30 = vpack.c.bf16 (!%p2273_p12), %v3769_v26, %v3757_v12  ;;  %v3013_v31 = vpack.c.bf16 (!%p2273_p12), %v3705_v50, %v3699_v47  ;;  %v3015_v34 = vpack.c.bf16 (!%p2273_p12), %v3703_v49, %v3697_v46  ;;  %v3469_v47 = vmov (!%p2273_p12), 0.0|0.0   ;;  %v5653_v50 = vld [vmem:[#allocation20_spill] sm:$0xff] (!%p2273_p12)  ;;  %v5674_v20 = vld [vmem:[#allocation49_spill] sm:$0xff] (!%p2273_p12)  ;;  %v5675_v5 = vld [vmem:[#allocation42_spill] sm:$0xff] (!%p2273_p12) }
 0x5fb   : > { %3004 = vmatpush1.bf16.msra.mxu1 (!%p2273_p12), %v3003_v14  ;;  %3058 = vmatprep.subr.bf16.mxu0 (!%p2273_p12), %v3057_v24  ;;  %v3017_v32 = vpack.c.bf16 (!%p2273_p12), %v3717_v56, %v3711_v53  ;;  %v3019_v35 = vpack.c.bf16 (!%p2273_p12), %v3715_v55, %v3709_v52  ;;  %v3021_v26 = vpack.c.bf16 (!%p2273_p12), %v3729_v62, %v3723_v59  ;;  %vm3470_vm5 = vmmov (!%p2273_p12), 0   ;;  %v5654_v52 = vld [vmem:[#allocation21_spill] sm:$0xff] (!%p2273_p12)  ;;  %v5655_v55 = vld [vmem:[#allocation22_spill] sm:$0xff] (!%p2273_p12)  ;;  %v5656_v56 = vld [vmem:[#allocation23_spill] sm:$0xff] (!%p2273_p12) }
 0x5fc   : > { %3006 = vmatprep.subr.bf16.mxu1 (!%p2273_p12), %v3005_v22  ;;  %3060 = vmatpush1.bf16.msra.mxu0 (!%p2273_p12), %v3059_v30  ;;  %v3023_v37 = vpack.c.bf16 (!%p2273_p12), %v3727_v61, %v3721_v58  ;;  %v3025_v38 = vpack.c.bf16 (!%p2273_p12), %v3741_v4, %v3735_v1  ;;  %v3027_v40 = vpack.c.bf16 (!%p2273_p12), %v3739_v3, %v3733_v0  ;;  %v5658_v58 = vld [vmem:[#allocation25_spill] sm:$0xff] (!%p2273_p12)  ;;  %v5661_v62 = vld [vmem:[#allocation28_spill] sm:$0xff] (!%p2273_p12)  ;;  %v5663_v3 = vld [vmem:[#allocation30_spill] sm:$0xff] (!%p2273_p12) }
 0x5fd   : > { %v3029_v41 = vpack.c.bf16 (!%p2273_p12), %v3753_v10, %v3747_v7  ;;  %v3031_v43 = vpack.c.bf16 (!%p2273_p12), %v3751_v9, %v3745_v6  ;;  %v3034_v46 = vpack.c.bf16 (!%p2273_p12), %v3671_v33, %v3663_v29  ;;  %v3037_v49 = vpack.c.bf16 (!%p2273_p12), %v3683_v39, %v3677_v36  ;;  %v5657_v33 = vld [vmem:[#allocation24_spill] sm:$0xff] (!%p2273_p12)  ;;  %v5659_v36 = vld [vmem:[#allocation26_spill] sm:$0xff] (!%p2273_p12)  ;;  %v5660_v39 = vld [vmem:[#allocation27_spill] sm:$0xff] (!%p2273_p12) }
 0x5fe   : > { %v3040_v53 = vpack.c.bf16 (!%p2273_p12), %v5654_v52, %v5653_v50  ;;  %v3043_v29 = vpack.c.bf16 (!%p2273_p12), %v5656_v56, %v5655_v55  ;;  %v3046_v59 = vpack.c.bf16 (!%p2273_p12), %v5658_v58, %v5657_v33  ;;  %v3049_v61 = vpack.c.bf16 (!%p2273_p12), %v5660_v39, %v5659_v36  ;;  %v5662_v0 = vld [vmem:[#allocation29_spill] sm:$0xff] (!%p2273_p12)  ;;  %v5664_v4 = vld [vmem:[#allocation31_spill] sm:$0xff] (!%p2273_p12)  ;;  %v5667_v12 = vld [vmem:[#allocation32_spill] sm:$0xff] (!%p2273_p12) }
 0x5ff   : > { %3008 = vmatpush1.bf16.msra.mxu1 (!%p2273_p12), %v3007_v42  ;;  %v3052_v1 = vpack.c.bf16 (!%p2273_p12), %v5662_v0, %v5661_v62  ;;  %v3055_v6 = vpack.c.bf16 (!%p2273_p12), %v5664_v4, %v5663_v3  ;;  %v5665_v7 = vld [vmem:[#allocation33_spill] sm:$0xff] (!%p2273_p12)  ;;  %v5668_v13 = vld [vmem:[#allocation36_spill] sm:$0xff] (!%p2273_p12)  ;;  %v3061_v8 = vpack.c.bf16 (!%p2273_p12), %v5670_v27, %v5669_v18  ;;  %v3063_v2 = vpack.c.bf16 (!%p2273_p12), %v5672_v19, %v5671_v21  ;;  %v5678_v16 = vld [vmem:[#allocation59_spill] sm:$0xff] (!%p2273_p12) }
 0x600   : > { %3010 = vmatprep.subr.bf16.mxu1 %v3009_v60  ;;  %v5666_v9 = vld [vmem:[#allocation37_spill] sm:$0xff]  ;;  %v3123_v57 = vpack.c.bf16 %v5668_v13, %v5667_v12  ;;  %v3125_v11 = vpack.c.bf16 %v5674_v20, %v5673_v63  ;;  %v5676_v54 = vld [vmem:[#allocation48_spill] sm:$0xff]  ;;  %v5680_v25 = vld [vmem:[#allocation58_spill] sm:$0xff] }
 0x601   : > { %v3121_v10 = vpack.c.bf16 %v5666_v9, %v5665_v7  ;;  %3062 = vmatprep.subr.bf16.mxu0 %v3061_v8  ;;  %v3127_v45 = vpack.c.bf16 %v5676_v54, %v5675_v5  ;;  %v5677_v28 = vld [vmem:[#allocation53_spill] sm:$0xff]  ;;  %v5679_v48 = vld [vmem:[#allocation52_spill] sm:$0xff]  ;;  %v5681_v14 = vld [vmem:[#allocation55_spill] sm:$0xff] }
 0x602   : > { %3064 = vmatpush1.bf16.msra.mxu0 %v3063_v2  ;;  %v3065_v15 = vpack.c.bf16 %v5678_v16, %v5677_v28  ;;  %v3067_v17 = vpack.c.bf16 %v5680_v25, %v5679_v48  ;;  %v5682_v22 = vld [vmem:[#allocation61_spill] sm:$0xff]  ;;  %v5683_v60 = vld [vmem:[#allocation54_spill] sm:$0xff]  ;;  %v5686_v30 = vld [vmem:[#allocation71_spill] sm:$0xff] }
 0x603   : > { %3012 = vmatpush1.bf16.msra.mxu1 %v3011_v23  ;;  %v3129_v42 = vpack.c.bf16 %v5682_v22, %v5681_v14  ;;  %v5685_v23 = vld [vmem:[#allocation65_spill] sm:$0xff]  ;;  %v5695_v50 = vld [vmem:[#allocation76_spill] sm:$0xff]  ;;  %v5696_v52 = vld [vmem:[#allocation82_spill] sm:$0xff] }
 0x604   : > { %3014 = vmatprep.subr.bf16.mxu1 %v3013_v31  ;;  %3066 = vmatprep.subr.bf16.mxu0 %v3065_v15  ;;  %v3069_v31 = vpack.c.bf16 %v5686_v30, %v5685_v23  ;;  %v5697_v55 = vld [vmem:[#allocation79_spill] sm:$0xff]  ;;  %v5698_v56 = vld [vmem:[#allocation85_spill] sm:$0xff]  ;;  %v5699_v33 = vld [vmem:[#allocation78_spill] sm:$0xff] }
 0x605   : > { %v5700_v58 = vld [vmem:[#allocation84_spill] sm:$0xff]  ;;  %v5701_v36 = vld [vmem:[#allocation89_spill] sm:$0xff]  ;;  %v5702_v39 = vld [vmem:[#allocation95_spill] sm:$0xff] }
 0x606   : > { %3068 = vmatpush1.bf16.msra.mxu0 %v3067_v17  ;;  %v5703_v62 = vld [vmem:[#allocation88_spill] sm:$0xff]  ;;  %v5704_v0 = vld [vmem:[#allocation94_spill] sm:$0xff]  ;;  %v5705_v3 = vld [vmem:[#allocation91_spill] sm:$0xff] }
 0x607   : > { %3016 = vmatpush1.bf16.msra.mxu1 %v3015_v34  ;;  %v5687_v34 = vld [vmem:[#allocation64_spill] sm:$0xff]  ;;  %3070 = vmatprep.subr.bf16.mxu0 %v3069_v31  ;;  %v5706_v4 = vld [vmem:[#allocation97_spill] sm:$0xff]  ;;  %v5707_v7 = vld [vmem:[#allocation90_spill] sm:$0xff] }
 0x608   : > { %3018 = vmatprep.subr.bf16.mxu1 %v3017_v32  ;;  %v5688_v32 = vld [vmem:[#allocation70_spill] sm:$0xff]  ;;  %v5708_v9 = vld [vmem:[#allocation96_spill] sm:$0xff]  ;;  %v5709_v12 = vld [vmem:[#allocation101_spill] sm:$0xff] }
 0x609   : > { %v5710_v13 = vld [vmem:[#allocation107_spill] sm:$0xff]  ;;  %v5711_v18 = vld [vmem:[#allocation100_spill] sm:$0xff]  ;;  %v5712_v27 = vld [vmem:[#allocation106_spill] sm:$0xff] }
 0x60a   : > { %v3083_v8 = vpack.c.bf16 %v5712_v27, %v5711_v18  ;;  %v5713_v21 = vld [vmem:[#allocation103_spill] sm:$0xff]  ;;  %v5714_v19 = vld [vmem:[#allocation109_spill] sm:$0xff]  ;;  %v5715_v63 = vld [vmem:[#allocation102_spill] sm:$0xff] }
 0x60b   : > { %3020 = vmatpush1.bf16.msra.mxu1 %v3019_v35  ;;  %v3071_v35 = vpack.c.bf16 %v5688_v32, %v5687_v34  ;;  %v3145_v2 = vpack.c.bf16 %v5714_v19, %v5713_v21  ;;  %v5716_v20 = vld [vmem:[#allocation108_spill] sm:$0xff]  ;;  %v5717_v5 = vld [vmem:[#allocation113_spill] sm:$0xff]  ;;  %v5718_v54 = vld [vmem:[#allocation119_spill] sm:$0xff] }
 0x60c   : > { %3022 = vmatprep.subr.bf16.mxu1 %v3021_v26  ;;  %v5689_v26 = vld [vmem:[#allocation67_spill] sm:$0xff]  ;;  %v5719_v28 = vld [vmem:[#allocation112_spill] sm:$0xff]  ;;  %v5720_v16 = vld [vmem:[#allocation118_spill] sm:$0xff] }
 0x60d   : > { %3072 = vmatpush1.bf16.msra.mxu0 %v3071_v35  ;;  %v3087_v15 = vpack.c.bf16 %v5720_v16, %v5719_v28  ;;  %v5721_v48 = vld [vmem:[#allocation115_spill] sm:$0xff]  ;;  %v5722_v25 = vld [vmem:[#allocation121_spill] sm:$0xff]  ;;  %v5723_v14 = vld [vmem:[#allocation114_spill] sm:$0xff] }
 0x60e   : > { %v3149_v17 = vpack.c.bf16 %v5722_v25, %v5721_v48  ;;  %v5724_v22 = vld [vmem:[#allocation120_spill] sm:$0xff]  ;;  %v5728_v30 = vld [vmem:[#allocation130_spill] sm:$0xff]  ;;  %v5729_v34 = vld [vmem:[#allocation127_spill] sm:$0xff] }
 0x60f   : > { %3024 = vmatpush1.bf16.msra.mxu1 %v3023_v37  ;;  %v5690_v37 = vld [vmem:[#allocation73_spill] sm:$0xff]  ;;  %v5727_v23 = vld [vmem:[#allocation124_spill] sm:$0xff]  ;;  %v5753_v18 = vld [vmem:[#allocation163_spill] sm:$0xff] }
 0x610   : > { %3026 = vmatprep.subr.bf16.mxu1 %v3025_v38  ;;  %v3133_v38 = vpack.c.bf16 %v5690_v37, %v5689_v26  ;;  %v3091_v31 = vpack.c.bf16 %v5728_v30, %v5727_v23  ;;  %v5730_v32 = vld [vmem:[#allocation133_spill] sm:$0xff]  ;;  %v5731_v26 = vld [vmem:[#allocation126_spill] sm:$0xff]  ;;  %v5732_v37 = vld [vmem:[#allocation132_spill] sm:$0xff] }
 0x611   : > { %v3153_v35 = vpack.c.bf16 %v5730_v32, %v5729_v34  ;;  %v5754_v27 = vld [vmem:[#allocation169_spill] sm:$0xff]  ;;  %v5755_v21 = vld [vmem:[#allocation162_spill] sm:$0xff]  ;;  %v5756_v19 = vld [vmem:[#allocation168_spill] sm:$0xff] }
 0x612   : > { %v5761_v28 = vld [vmem:[#allocation175_spill] sm:$0xff]  ;;  %v5762_v16 = vld [vmem:[#allocation181_spill] sm:$0xff]  ;;  %v5763_v48 = vld [vmem:[#allocation174_spill] sm:$0xff] }
 0x613   : > { %3028 = vmatpush1.bf16.msra.mxu1 %v3027_v40  ;;  %v5691_v40 = vld [vmem:[#allocation66_spill] sm:$0xff]  ;;  %v5764_v25 = vld [vmem:[#allocation180_spill] sm:$0xff]  ;;  %v5769_v23 = vld [vmem:[#allocation187_spill] sm:$0xff] }
 0x614   : > { %3030 = vmatprep.subr.bf16.mxu1 %v3029_v41  ;;  %v5692_v41 = vld [vmem:[#allocation72_spill] sm:$0xff]  ;;  %v5770_v30 = vld [vmem:[#allocation193_spill] sm:$0xff]  ;;  %v5771_v34 = vld [vmem:[#allocation186_spill] sm:$0xff] }
 0x615   : > { %v5772_v32 = vld [vmem:[#allocation192_spill] sm:$0xff] }
 0x617   : > { %3032 = vmatpush1.bf16.msra.mxu1 %v3031_v43  ;;  %v3135_v43 = vpack.c.bf16 %v5692_v41, %v5691_v40  ;;  %v5733_v40 = vld [vmem:[#allocation137_spill] sm:$0xff]  ;;  %v5734_v41 = vld [vmem:[#allocation143_spill] sm:$0xff] }
 0x618   : > { %3033 = vmatprep.subr.bf16.mxu1 %v3469_v47 }
 0x61a   : > { %1756 = vmatmul.mubr.f32.vlgmr.msra.gmra.mrb[0].mxu1 %v4714_v44 }
 0x61b   : > { %3035 = vmatpush3.bf16.msra.mxu1 %v3034_v46  ;;  %2467 = vmatprep.mubr.msk.f32.mxu1 %vm3470_vm5, %v3468_v51  ;;  %v5684_v51 = vld [vmem:[#allocation60_spill] sm:$0xff]  ;;  %v5693_v46 = vld [vmem:[#allocation77_spill] sm:$0xff] }
 0x61c   : > { %3036 = vmatprep.subr.bf16.mxu1 %v3469_v47  ;;  %v3131_v24 = vpack.c.bf16 %v5684_v51, %v5683_v60  ;;  %v5725_v60 = vld [vmem:[#allocation125_spill] sm:$0xff]  ;;  %v5726_v51 = vld [vmem:[#allocation131_spill] sm:$0xff] }
 0x61f   : > { %3038 = vmatpush3.bf16.msra.mxu1 %v3037_v49 }
 0x620   : > { %3039 = vmatprep.subr.bf16.mxu1 %v3469_v47 }
 0x623   : > { %3041 = vmatpush3.bf16.msra.mxu1 %v3040_v53  ;;  %v3075_v53 = vpack.c.bf16 %v5696_v52, %v5695_v50  ;;  %v5737_v50 = vld [vmem:[#allocation139_spill] sm:$0xff]  ;;  %v5738_v52 = vld [vmem:[#allocation145_spill] sm:$0xff] }
 0x624   : > { %3042 = vmatprep.subr.bf16.mxu1 %v3469_v47 }
 0x627   : > { %3044 = vmatpush3.bf16.msra.mxu1 %v3043_v29  ;;  %v3137_v29 = vpack.c.bf16 %v5698_v56, %v5697_v55  ;;  %v5739_v55 = vld [vmem:[#allocation138_spill] sm:$0xff]  ;;  %v5740_v56 = vld [vmem:[#allocation144_spill] sm:$0xff] }
 0x628   : > { %3045 = vmatprep.subr.bf16.mxu1 %v3469_v47 }
 0x62b   : > { %3047 = vmatpush3.bf16.msra.mxu1 %v3046_v59  ;;  %v3139_v59 = vpack.c.bf16 %v5700_v58, %v5699_v33  ;;  %v5741_v33 = vld [vmem:[#allocation149_spill] sm:$0xff]  ;;  %v5742_v58 = vld [vmem:[#allocation155_spill] sm:$0xff] }
 0x62c   : > { %3048 = vmatprep.subr.bf16.mxu1 %v3469_v47 }
 0x62f   : > { %3050 = vmatpush3.bf16.msra.mxu1 %v3049_v61  ;;  %v3077_v61 = vpack.c.bf16 %v5702_v39, %v5701_v36  ;;  %v5743_v36 = vld [vmem:[#allocation148_spill] sm:$0xff]  ;;  %v5744_v39 = vld [vmem:[#allocation154_spill] sm:$0xff] }
 0x630   : > { %3051 = vmatprep.subr.bf16.mxu1 %v3469_v47 }
 0x633   : > { %3053 = vmatpush3.bf16.msra.mxu1 %v3052_v1  ;;  %v3079_v1 = vpack.c.bf16 %v5704_v0, %v5703_v62  ;;  %v5745_v62 = vld [vmem:[#allocation151_spill] sm:$0xff]  ;;  %v5746_v0 = vld [vmem:[#allocation157_spill] sm:$0xff] }
 0x634   : > { %3054 = vmatprep.subr.bf16.mxu1 %v3469_v47  ;;  %v5694_v47 = vld [vmem:[#allocation83_spill] sm:$0xff] }
 0x635   : > { %v3073_v49 = vpack.c.bf16 %v5694_v47, %v5693_v46  ;;  %v5735_v46 = vld [vmem:[#allocation136_spill] sm:$0xff]  ;;  %v5736_v47 = vld [vmem:[#allocation142_spill] sm:$0xff] }
 0x637   : > { %3056 = vmatpush3.bf16.msra.mxu1 %v3055_v6  ;;  %3074 = vmatprep.subr.bf16.mxu0 %v3073_v49  ;;  %v3141_v6 = vpack.c.bf16 %v5706_v4, %v5705_v3  ;;  %v3095_v49 = vpack.c.bf16 %v5736_v47, %v5735_v46  ;;  %v5747_v3 = vld [vmem:[#allocation150_spill] sm:$0xff]  ;;  %v5748_v4 = vld [vmem:[#allocation156_spill] sm:$0xff]  ;;  %v5777_v46 = vld [vmem:[#allocation199_spill] sm:$0xff] }
 0x638   : > { %3122 = vmatprep.subr.bf16.mxu1 %v3121_v10  ;;  %3076 = vmatpush1.bf16.msra.mxu0 %v3075_v53  ;;  %v3143_v10 = vpack.c.bf16 %v5708_v9, %v5707_v7  ;;  %v3157_v53 = vpack.c.bf16 %v5738_v52, %v5737_v50  ;;  %v5749_v7 = vld [vmem:[#allocation161_spill] sm:$0xff]  ;;  %v5750_v9 = vld [vmem:[#allocation167_spill] sm:$0xff]  ;;  %v5779_v50 = vld [vmem:[#allocation198_spill] sm:$0xff] }
 0x639   : > { %3078 = vmatprep.subr.bf16.mxu0 %v3077_v61  ;;  %v3099_v61 = vpack.c.bf16 %v5744_v39, %v5743_v36  ;;  %v5778_v47 = vld [vmem:[#allocation205_spill] sm:$0xff]  ;;  %v5780_v52 = vld [vmem:[#allocation204_spill] sm:$0xff]  ;;  %v5785_v36 = vld [vmem:[#allocation211_spill] sm:$0xff] }
 0x63a   : > { %2468 = vmatmul.mubr.f32.vlgmr.msra.gmra.mrb[2].mxu1 %v4714_v44  ;;  %v5786_v39 = vld [vmem:[#allocation217_spill] sm:$0xff] }
 0x63b   : > { %3124 = vmatpush1.bf16.msra.mxu1 %v3123_v57  ;;  %v3081_v57 = vpack.c.bf16 %v5710_v13, %v5709_v12  ;;  %v5751_v12 = vld [vmem:[#allocation160_spill] sm:$0xff]  ;;  %v5752_v13 = vld [vmem:[#allocation166_spill] sm:$0xff] }
 0x63c   : > { %3126 = vmatprep.subr.bf16.mxu1 %v3125_v11  ;;  %3080 = vmatpush1.bf16.msra.mxu0 %v3079_v1  ;;  %v3147_v11 = vpack.c.bf16 %v5716_v20, %v5715_v63  ;;  %v3161_v1 = vpack.c.bf16 %v5746_v0, %v5745_v62  ;;  %v5757_v63 = vld [vmem:[#allocation173_spill] sm:$0xff]  ;;  %v5758_v20 = vld [vmem:[#allocation179_spill] sm:$0xff]  ;;  %v5787_v62 = vld [vmem:[#allocation210_spill] sm:$0xff] }
 0x63d   : > { %3082 = vmatprep.subr.bf16.mxu0 %v3081_v57  ;;  %v3103_v57 = vpack.c.bf16 %v5752_v13, %v5751_v12  ;;  %v5788_v0 = vld [vmem:[#allocation216_spill] sm:$0xff]  ;;  %v5791_v12 = vld [vmem:[#allocation10_spill] sm:$0xff] }
 0x63f   : > { %3128 = vmatpush1.bf16.msra.mxu1 %v3127_v45  ;;  %v3085_v45 = vpack.c.bf16 %v5718_v54, %v5717_v5  ;;  %v5759_v5 = vld [vmem:[#allocation172_spill] sm:$0xff]  ;;  %v5760_v54 = vld [vmem:[#allocation178_spill] sm:$0xff] }
 0x640   : > { %3130 = vmatprep.subr.bf16.mxu1 %v3129_v42  ;;  %3084 = vmatpush1.bf16.msra.mxu0 %v3083_v8  ;;  %v3151_v42 = vpack.c.bf16 %v5724_v22, %v5723_v14  ;;  %v3165_v8 = vpack.c.bf16 %v5754_v27, %v5753_v18  ;;  %v5765_v14 = vld [vmem:[#allocation185_spill] sm:$0xff]  ;;  %v5766_v22 = vld [vmem:[#allocation191_spill] sm:$0xff] }
 0x641   : > { %3086 = vmatprep.subr.bf16.mxu0 %v3085_v45  ;;  %v3107_v45 = vpack.c.bf16 %v5760_v54, %v5759_v5  ;;  %v1688_v54 = vld [vmem:[#allocation2 + $0x40] sm:$0xff] }
 0x643   : > { %3132 = vmatpush1.bf16.msra.mxu1 %v3131_v24  ;;  %v3089_v24 = vpack.c.bf16 %v5726_v51, %v5725_v60  ;;  %v5767_v60 = vld [vmem:[#allocation184_spill] sm:$0xff]  ;;  %v5768_v51 = vld [vmem:[#allocation190_spill] sm:$0xff] }
 0x644   : > { %3134 = vmatprep.subr.bf16.mxu1 %v3133_v38  ;;  %3088 = vmatpush1.bf16.msra.mxu0 %v3087_v15  ;;  %v3155_v38 = vpack.c.bf16 %v5732_v37, %v5731_v26  ;;  %v3169_v15 = vpack.c.bf16 %v5762_v16, %v5761_v28  ;;  %v5773_v26 = vld [vmem:[#allocation197_spill] sm:$0xff]  ;;  %v5774_v37 = vld [vmem:[#allocation203_spill] sm:$0xff]  ;;  %v5793_v16 = vld [vmem:[#allocation12_spill] sm:$0xff] }
 0x645   : > { %3090 = vmatprep.subr.bf16.mxu0 %v3089_v24  ;;  %v3111_v24 = vpack.c.bf16 %v5768_v51, %v5767_v60 }
 0x647   : > { %3136 = vmatpush1.bf16.msra.mxu1 %v3135_v43  ;;  %v3093_v43 = vpack.c.bf16 %v5734_v41, %v5733_v40  ;;  %v5775_v40 = vld [vmem:[#allocation196_spill] sm:$0xff]  ;;  %v5776_v41 = vld [vmem:[#allocation202_spill] sm:$0xff] }
 0x648   : > { %3138 = vmatprep.subr.bf16.mxu1 %v3137_v29  ;;  %3092 = vmatpush1.bf16.msra.mxu0 %v3091_v31  ;;  %v3159_v29 = vpack.c.bf16 %v5740_v56, %v5739_v55  ;;  %v3173_v31 = vpack.c.bf16 %v5770_v30, %v5769_v23  ;;  %v5781_v55 = vld [vmem:[#allocation209_spill] sm:$0xff]  ;;  %v5782_v56 = vld [vmem:[#allocation215_spill] sm:$0xff] }
 0x649   : > { %3094 = vmatprep.subr.bf16.mxu0 %v3093_v43  ;;  %v3115_v43 = vpack.c.bf16 %v5776_v41, %v5775_v40  ;;  %v5799_v40 = vld [vmem:[#allocation44_spill] sm:$0xff]  ;;  %v5800_v41 = vld [vmem:[#allocation50_spill] sm:$0xff] }
 0x64b   : > { %3140 = vmatpush1.bf16.msra.mxu1 %v3139_v59  ;;  %v3097_v59 = vpack.c.bf16 %v5742_v58, %v5741_v33  ;;  %v5783_v33 = vld [vmem:[#allocation208_spill] sm:$0xff]  ;;  %v5784_v58 = vld [vmem:[#allocation214_spill] sm:$0xff] }
 0x64c   : > { %3142 = vmatprep.subr.bf16.mxu1 %v3141_v6  ;;  %3096 = vmatpush1.bf16.msra.mxu0 %v3095_v49  ;;  %v3163_v6 = vpack.c.bf16 %v5748_v4, %v5747_v3  ;;  %v3177_v49 = vpack.c.bf16 %v5778_v47, %v5777_v46  ;;  %v5789_v3 = vld [vmem:[#allocation35_spill] sm:$0xff] }
 0x64d   : > { %3098 = vmatprep.subr.bf16.mxu0 %v3097_v59  ;;  %v3119_v59 = vpack.c.bf16 %v5784_v58, %v5783_v33  ;;  %v5790_v4 = vld [vmem:[#allocation39_spill] sm:$0xff]  ;;  %v5808_v33 = vld [vmem:[#allocation74_spill] sm:$0xff] }
 0x64e   : > { %v5802_v46 = vld [vmem:[#allocation63_spill] sm:$0xff] }
 0x64f   : > { %3144 = vmatpush1.bf16.msra.mxu1 %v3143_v10  ;;  %v3101_v10 = vpack.c.bf16 %v5750_v9, %v5749_v7  ;;  %v4860_v7 = vld [vmem:[#allocation3 + $0x8] sm:$0xff] }
 0x650   : > { %3146 = vmatprep.subr.bf16.mxu1 %v3145_v2  ;;  %3100 = vmatpush1.bf16.msra.mxu0 %v3099_v61  ;;  %v3167_v2 = vpack.c.bf16 %v5756_v19, %v5755_v21  ;;  %v3181_v61 = vpack.c.bf16 %v5786_v39, %v5785_v36  ;;  %v1686_v9 = vld [vmem:[#allocation2 + $0x30] sm:$0xff]  ;;  %v1687_v19 = vld [vmem:[#allocation2 + $0x38] sm:$0xff]  ;;  %v5810_v36 = vld [vmem:[#allocation87_spill] sm:$0xff] }
 0x651   : > { %3102 = vmatprep.subr.bf16.mxu0 %v3101_v10  ;;  %1921 = vmatprep.mubr.f32.mxu0 %v4860_v7 }
 0x652   : > { %1992 = vmatprep.mubr.f32.mxu1 %v4860_v7 }
 0x653   : > { %3148 = vmatpush1.bf16.msra.mxu1 %v3147_v11  ;;  %v3105_v11 = vpack.c.bf16 %v5758_v20, %v5757_v63 }
 0x654   : > { %3150 = vmatprep.subr.bf16.mxu1 %v3149_v17  ;;  %3104 = vmatpush1.bf16.msra.mxu0 %v3103_v57  ;;  %v3171_v17 = vpack.c.bf16 %v5764_v25, %v5763_v48  ;;  %v5794_v48 = vld [vmem:[#allocation13_spill] sm:$0xff] }
 0x655   : > { %3106 = vmatprep.subr.bf16.mxu0 %v3105_v11  ;;  %v1846_v25 = vadd.f32 %v5794_v48, %v1688_v54  ;;  %v5826_v54 = vld [vmem:[#allocation135_spill] sm:$0xff]  ;;  %v5829_v48 = vld [vmem:[#allocation141_spill] sm:$0xff] }
 0x657   : > { %3152 = vmatpush1.bf16.msra.mxu1 %v3151_v42  ;;  %v3109_v42 = vpack.c.bf16 %v5766_v22, %v5765_v14 }
 0x658   : > { %3154 = vmatprep.subr.bf16.mxu1 %v3153_v35  ;;  %3108 = vmatpush1.bf16.msra.mxu0 %v3107_v45  ;;  %v3175_v35 = vpack.c.bf16 %v5772_v32, %v5771_v34  ;;  %v5796_v34 = vld [vmem:[#allocation38_spill] sm:$0xff] }
 0x659   : > { %3110 = vmatprep.subr.bf16.mxu0 %v3109_v42 }
 0x65b   : > { %3156 = vmatpush1.bf16.msra.mxu1 %v3155_v38  ;;  %v3113_v38 = vpack.c.bf16 %v5774_v37, %v5773_v26  ;;  %v5797_v26 = vld [vmem:[#allocation45_spill] sm:$0xff]  ;;  %v5798_v37 = vld [vmem:[#allocation51_spill] sm:$0xff] }
 0x65c   : > { %3158 = vmatprep.subr.bf16.mxu1 %v3157_v53  ;;  %3112 = vmatpush1.bf16.msra.mxu0 %v3111_v24  ;;  %v3179_v53 = vpack.c.bf16 %v5780_v52, %v5779_v50  ;;  %v5804_v50 = vld [vmem:[#allocation62_spill] sm:$0xff] }
 0x65d   : > { %3114 = vmatprep.subr.bf16.mxu0 %v3113_v38  ;;  %v3189_v38 = vpack.c.bf16 %v5798_v37, %v5797_v26  ;;  %v5839_v37 = vld [vmem:[#allocation164_spill] sm:$0xff] }
 0x65f   : > { %3160 = vmatpush1.bf16.msra.mxu1 %v3159_v29  ;;  %v3117_v29 = vpack.c.bf16 %v5782_v56, %v5781_v55  ;;  %v5806_v55 = vld [vmem:[#allocation75_spill] sm:$0xff] }
 0x660   : > { %3162 = vmatprep.subr.bf16.mxu1 %v3161_v1  ;;  %3116 = vmatpush1.bf16.msra.mxu0 %v3115_v43  ;;  %v3183_v1 = vpack.c.bf16 %v5788_v0, %v5787_v62  ;;  %v3191_v43 = vpack.c.bf16 %v5800_v41, %v5799_v40  ;;  %v5812_v62 = vld [vmem:[#allocation86_spill] sm:$0xff]  ;;  %v5841_v41 = vld [vmem:[#allocation177_spill] sm:$0xff] }
 0x661   : > { %3118 = vmatprep.subr.bf16.mxu0 %v3117_v29  ;;  %v5807_v29 = vld [vmem:[#allocation68_spill] sm:$0xff] }
 0x662   : > { %v3199_v58 = vpack.c.bf16 %v5808_v33, %v5807_v29  ;;  %v5849_v33 = vld [vmem:[#allocation201_spill] sm:$0xff] }
 0x663   : > { %3164 = vmatpush1.bf16.msra.mxu1 %v3163_v6  ;;  %v3185_v6 = vpack.c.bf16 %v5790_v4, %v5789_v3  ;;  %v5814_v3 = vld [vmem:[#allocation99_spill] sm:$0xff] }
 0x664   : > { %3166 = vmatprep.subr.bf16.mxu1 %v3165_v8  ;;  %3120 = vmatpush1.bf16.msra.mxu0 %v3119_v59  ;;  %v5792_v8 = vld [vmem:[#allocation11_spill] sm:$0xff]  ;;  %v5809_v59 = vld [vmem:[#allocation81_spill] sm:$0xff] }
 0x665   : > { %3186 = vmatprep.subr.bf16.mxu0 %v3185_v6  ;;  %v3201_v39 = vpack.c.bf16 %v5810_v36, %v5809_v59  ;;  %v5815_v6 = vld [vmem:[#allocation92_spill] sm:$0xff] }
 0x666   : > { %v5851_v36 = vld [vmem:[#allocation200_spill] sm:$0xff] }
 0x667   : > { %3168 = vmatpush1.bf16.msra.mxu1 %v3167_v2 }
 0x668   : > { %3170 = vmatprep.subr.bf16.mxu1 %v3169_v15 }
 0x66b   : > { %3172 = vmatpush1.bf16.msra.mxu1 %v3171_v17 }
 0x66c   : > { %3174 = vmatprep.subr.bf16.mxu1 %v3173_v31  ;;  %v5795_v31 = vld [vmem:[#allocation34_spill] sm:$0xff] }
 0x66d   : > { %v3187_v32 = vpack.c.bf16 %v5796_v34, %v5795_v31  ;;  %v5837_v34 = vld [vmem:[#allocation165_spill] sm:$0xff] }
 0x66f   : > { %3176 = vmatpush1.bf16.msra.mxu1 %v3175_v35 }
 0x670   : > { %3178 = vmatprep.subr.bf16.mxu1 %v3177_v49  ;;  %v5803_v49 = vld [vmem:[#allocation56_spill] sm:$0xff] }
 0x671   : > { %v3195_v52 = vpack.c.bf16 %v5804_v50, %v5803_v49  ;;  %v5845_v50 = vld [vmem:[#allocation189_spill] sm:$0xff] }
 0x673   : > { %3180 = vmatpush1.bf16.msra.mxu1 %v3179_v53  ;;  %v5805_v53 = vld [vmem:[#allocation69_spill] sm:$0xff] }
 0x674   : > { %3182 = vmatprep.subr.bf16.mxu1 %v3181_v61  ;;  %v3197_v56 = vpack.c.bf16 %v5806_v55, %v5805_v53  ;;  %v5811_v61 = vld [vmem:[#allocation80_spill] sm:$0xff] }
 0x675   : > { %v3203_v0 = vpack.c.bf16 %v5812_v62, %v5811_v61  ;;  %v5847_v55 = vld [vmem:[#allocation188_spill] sm:$0xff]  ;;  %v5853_v62 = vld [vmem:[#allocation213_spill] sm:$0xff] }
 0x677   : > { %3184 = vmatpush1.bf16.msra.mxu1 %v3183_v1  ;;  %v5813_v1 = vld [vmem:[#allocation93_spill] sm:$0xff] }
 0x678   : > { %v3205_v4 = vpack.c.bf16 %v5814_v3, %v5813_v1  ;;  %v5855_v3 = vld [vmem:[#allocation212_spill] sm:$0xff] }
 0x6ed   : > { %v1757_v10 = vpop.f32.mrb[0].mxu1 }
 0x6ee   : > { %v1758_v13 = vadd.f32 %v1757_v10, %v5791_v12  ;;  %v1759_v57 = vpop.f32.mrb[1].mxu1  ;;  %v5817_v12 = vld [vmem:[#allocation105_spill] sm:$0xff] }
 0x6ef   : > { %v1760_v21 = vadd.f32 %v1759_v57, %v5792_v8 }
 0x6f0   : > { %v1832_v18 = vadd.f32 %v1758_v13, %v1686_v9  ;;  %v5816_v9 = vld [vmem:[#allocation98_spill] sm:$0xff]  ;;  %v5818_v13 = vld [vmem:[#allocation111_spill] sm:$0xff] }
 0x6f1   : > { %v1839_v2 = vadd.f32 %v1760_v21, %v1687_v19  ;;  %v3207_v10 = vpack.c.bf16 %v5816_v9, %v5815_v6  ;;  %v3209_v57 = vpack.c.bf16 %v5818_v13, %v5817_v12  ;;  %v5821_v21 = vld [vmem:[#allocation117_spill] sm:$0xff]  ;;  %v5822_v19 = vld [vmem:[#allocation123_spill] sm:$0xff]  ;;  %v5857_v12 = vld [vmem:[#allocation14_spill] sm:$0xff] }
 0x6f2   : > { %v2274_v27 = vmul.f32 -1.442695, %v1832_v18  ;;  %v5819_v18 = vld [vmem:[#allocation104_spill] sm:$0xff] }
 0x6f3   : > { %v2275_v63 = vmul.f32 -1.442695, %v1839_v2  ;;  %v3213_v2 = vpack.c.bf16 %v5822_v19, %v5821_v21 }
 0x6f4   : > { %3361 = vpow2.f32 %v2274_v27  ;;  %v5820_v27 = vld [vmem:[#allocation110_spill] sm:$0xff] }
 0x6f5   : > { %3363 = vpow2.f32 %v2275_v63  ;;  %v3211_v8 = vpack.c.bf16 %v5820_v27, %v5819_v18  ;;  %v5823_v63 = vld [vmem:[#allocation116_spill] sm:$0xff]  ;;  %v5858_v27 = vld [vmem:[#allocation17_spill] sm:$0xff] }
 0x6fe   : > { %v3362_v20 = vpop.eup %3361 }
 0x6ff   : > { %v1836_v11 = vadd.f32 1.0, %v3362_v20  ;;  %v3364_v5 = vpop.eup %3363  ;;  %v5824_v20 = vld [vmem:[#allocation122_spill] sm:$0xff] }
 0x700   : > { %v1843_v45 = vadd.f32 1.0, %v3364_v5  ;;  %v5825_v5 = vld [vmem:[#allocation129_spill] sm:$0xff] }
 0x701   : > { %3365 = vrcp.f32 %v1836_v11  ;;  %v3215_v11 = vpack.c.bf16 %v5824_v20, %v5823_v63 }
 0x702   : > { %3367 = vrcp.f32 %v1843_v45  ;;  %v3217_v45 = vpack.c.bf16 %v5826_v54, %v5825_v5  ;;  %v5860_v54 = vld [vmem:[#allocation18_spill] sm:$0xff] }
 0x70b   : > { %v3366_v14 = vpop.eup %3365 }
 0x70c   : > { %v3368_v60 = vpop.eup %3367 }
 0x70d   : > { %v1828_v28 = vpop.f32.mrb[2].mxu1  ;;  %v1850_v51 = vsub.f32 1.0, %v3368_v60  ;;  %v1852_v23 = vmul.f32 %v3368_v60, %v4714_v44  ;;  %v5801_v44 = vld [vmem:[#allocation57_spill] sm:$0xff] }
 0x70e   : > { %v1829_v15 = vadd.f32 %v1828_v28, %v5793_v16  ;;  %v2469_v17 = vpop.f32.mrb[3].mxu1  ;;  %v3193_v47 = vpack.c.bf16 %v5802_v46, %v5801_v44  ;;  %v5827_v28 = vld [vmem:[#allocation128_spill] sm:$0xff]  ;;  %v5828_v16 = vld [vmem:[#allocation134_spill] sm:$0xff]  ;;  %v5833_v60 = vld [vmem:[#allocation153_spill] sm:$0xff] }
 0x70f   : > { %v5843_v46 = vld [vmem:[#allocation176_spill] sm:$0xff] }
 0x710   : > { %v1847_v22 = vmul.f32 %v3366_v14, %v1829_v15  ;;  %v3219_v15 = vpack.c.bf16 %v5828_v16, %v5827_v28  ;;  %v5831_v14 = vld [vmem:[#allocation140_spill] sm:$0xff]  ;;  %v5861_v28 = vld [vmem:[#allocation19_spill] sm:$0xff] }
 0x712   : > { %v1848_v42 = vadd.f32 %v1847_v22, %v1846_v25  ;;  %v5830_v25 = vld [vmem:[#allocation147_spill] sm:$0xff]  ;;  %v5832_v22 = vld [vmem:[#allocation146_spill] sm:$0xff] }
 0x713   : > { %v3221_v17 = vpack.c.bf16 %v5830_v25, %v5829_v48  ;;  %v5862_v25 = vld [vmem:[#allocation16_spill] sm:$0xff] }
 0x714   : > { %3369 = vtanh.f32 %v1848_v42  ;;  %v3223_v42 = vpack.c.bf16 %v5832_v22, %v5831_v14 }
 0x71e   : > { %v3370_v24 = vpop.eup %3369 }
 0x71f   : > { %v1851_v30 = vmul.f32 %v3370_v24, %v1850_v51  ;;  %v5834_v51 = vld [vmem:[#allocation159_spill] sm:$0xff] }
 0x720   : > { %v3225_v24 = vpack.c.bf16 %v5834_v51, %v5833_v60 }
 0x721   : > { %v4871_v35 = vadd.f32 %v1852_v23, %v1851_v30  ;;  %v5835_v23 = vld [vmem:[#allocation152_spill] sm:$0xff]  ;;  %v5836_v30 = vld [vmem:[#allocation158_spill] sm:$0xff] }
 0x722   : > { %v3227_v31 = vpack.c.bf16 %v5836_v30, %v5835_v23 }
 0x723   : > { %1854 = vst [vmem:[#allocation3] sm:$0xff] %v4871_v35  ;;  %1922 = vmatmul.mubr.f32.vlgmr.msra.gmra.mrb[0].mxu0 %v4871_v35  ;;  %1993 = vmatmul.mubr.f32.vlgmr.msra.gmra.mrb[4].mxu1 %v4871_v35 }
 0x724   : > { %3188 = vmatpush1.bf16.msra.mxu0 %v3187_v32  ;;  %2063 = vmatprep.mubr.f32.mxu0 %v4860_v7  ;;  %v5838_v32 = vld [vmem:[#allocation171_spill] sm:$0xff] }
 0x725   : > { %3190 = vmatprep.subr.bf16.mxu0 %v3189_v38  ;;  %v3229_v26 = vpack.c.bf16 %v5838_v32, %v5837_v34  ;;  %v5840_v38 = vld [vmem:[#allocation170_spill] sm:$0xff] }
 0x726   : > { %v3231_v40 = vpack.c.bf16 %v5840_v38, %v5839_v37 }
 0x728   : > { %3192 = vmatpush1.bf16.msra.mxu0 %v3191_v43  ;;  %v5842_v43 = vld [vmem:[#allocation183_spill] sm:$0xff] }
 0x729   : > { %3194 = vmatprep.subr.bf16.mxu0 %v3193_v47  ;;  %v3233_v44 = vpack.c.bf16 %v5842_v43, %v5841_v41  ;;  %v5844_v47 = vld [vmem:[#allocation182_spill] sm:$0xff] }
 0x72a   : > { %v3235_v49 = vpack.c.bf16 %v5844_v47, %v5843_v46 }
 0x72c   : > { %3196 = vmatpush1.bf16.msra.mxu0 %v3195_v52  ;;  %v5846_v52 = vld [vmem:[#allocation195_spill] sm:$0xff] }
 0x72d   : > { %3198 = vmatprep.subr.bf16.mxu0 %v3197_v56  ;;  %v3237_v53 = vpack.c.bf16 %v5846_v52, %v5845_v50  ;;  %v5848_v56 = vld [vmem:[#allocation194_spill] sm:$0xff] }
 0x72e   : > { %v3239_v29 = vpack.c.bf16 %v5848_v56, %v5847_v55 }
 0x730   : > { %3200 = vmatpush1.bf16.msra.mxu0 %v3199_v58  ;;  %v5850_v58 = vld [vmem:[#allocation207_spill] sm:$0xff] }
 0x731   : > { %3202 = vmatprep.subr.bf16.mxu0 %v3201_v39  ;;  %v3241_v59 = vpack.c.bf16 %v5850_v58, %v5849_v33  ;;  %v5852_v39 = vld [vmem:[#allocation206_spill] sm:$0xff] }
 0x732   : > { %v3243_v61 = vpack.c.bf16 %v5852_v39, %v5851_v36 }
 0x734   : > { %3204 = vmatpush1.bf16.msra.mxu0 %v3203_v0  ;;  %v5854_v0 = vld [vmem:[#allocation219_spill] sm:$0xff] }
 0x735   : > { %3206 = vmatprep.subr.bf16.mxu0 %v3205_v4  ;;  %v3245_v1 = vpack.c.bf16 %v5854_v0, %v5853_v62  ;;  %v5856_v4 = vld [vmem:[#allocation218_spill] sm:$0xff] }
 0x736   : > { %v3247_v6 = vpack.c.bf16 %v5856_v4, %v5855_v3 }
 0x738   : > { %3208 = vmatpush1.bf16.msra.mxu0 %v3207_v10 }
 0x739   : > { %3210 = vmatprep.subr.bf16.mxu0 %v3209_v57 }
 0x73c   : > { %3212 = vmatpush1.bf16.msra.mxu0 %v3211_v8 }
 0x73d   : > { %3214 = vmatprep.subr.bf16.mxu0 %v3213_v2 }
 0x740   : > { %3216 = vmatpush1.bf16.msra.mxu0 %v3215_v11  ;;  %v5859_v11 = vld [vmem:[#allocation15_spill] sm:$0xff] }
 0x741   : > { %3218 = vmatprep.subr.bf16.mxu0 %v3217_v45 }
 0x744   : > { %3220 = vmatpush1.bf16.msra.mxu0 %v3219_v15 }
 0x745   : > { %3222 = vmatprep.subr.bf16.mxu0 %v3221_v17 }
 0x748   : > { %3224 = vmatpush1.bf16.msra.mxu0 %v3223_v42 }
 0x749   : > { %3226 = vmatprep.subr.bf16.mxu0 %v3225_v24 }
 0x74c   : > { %3228 = vmatpush1.bf16.msra.mxu0 %v3227_v31 }
 0x74d   : > { %3230 = vmatprep.subr.bf16.mxu0 %v3229_v26 }
 0x750   : > { %3232 = vmatpush1.bf16.msra.mxu0 %v3231_v40 }
 0x751   : > { %3234 = vmatprep.subr.bf16.mxu0 %v3233_v44 }
 0x754   : > { %3236 = vmatpush1.bf16.msra.mxu0 %v3235_v49 }
 0x755   : > { %3238 = vmatprep.subr.bf16.mxu0 %v3237_v53 }
 0x758   : > { %3240 = vmatpush1.bf16.msra.mxu0 %v3239_v29 }
 0x759   : > { %3242 = vmatprep.subr.bf16.mxu0 %v3241_v59 }
 0x75c   : > { %3244 = vmatpush1.bf16.msra.mxu0 %v3243_v61 }
 0x75d   : > { %3246 = vmatprep.subr.bf16.mxu0 %v3245_v1 }
 0x760   : > { %3248 = vmatpush1.bf16.msra.mxu0 %v3247_v6 }
 0x763   : > { %2064 = vmatmul.mubr.f32.vlgmr.msra.gmra.mrb[2].mxu0 %v4871_v35 }
 0x7f6   : > { %v1923_v9 = vpop.f32.mrb[0].mxu0  ;;  %v1994_v10 = vpop.f32.mrb[4].mxu1 }
 0x7f7   : > { %v1924_v13 = vadd.f32 %v1923_v9, %v5857_v12  ;;  %v1925_v57 = vpop.f32.mrb[1].mxu0  ;;  %v1996_v18 = vpop.f32.mrb[5].mxu1  ;;  %v1995_v17 = vadd.f32 %v1994_v10, %v5862_v25 }
 0x7f8   : > { %v1997_v8 = vadd.f32 %v1996_v18, %v5858_v27  ;;  %v1926_v5 = vadd.f32 %v1925_v57, %v5859_v11 }
 0x7fa   : > { %v2070_v21 = vadd.f32 %v1997_v8, %v1924_v13 }
 0x7fc   : > { %v2276_v19 = vmul.f32 -1.442695, %v2070_v21 }
 0x7fe   : > { %3371 = vpow2.f32 %v2276_v19 }
 0x808   : > { %v3372_v2 = vpop.eup %3371 }
 0x809   : > { %v2074_v63 = vadd.f32 1.0, %v3372_v2 }
 0x80b   : > { %3373 = vrcp.f32 %v2074_v63 }
 0x815   : > { %v3374_v15 = vpop.eup %3373 }
 0x836   : > { %v2065_v20 = vpop.f32.mrb[2].mxu0 }
 0x837   : > { %v2066_v45 = vadd.f32 %v2065_v20, %v5860_v54  ;;  %v2067_v35 = vpop.f32.mrb[3].mxu0 }
 0x838   : > { %v2068_v16 = vadd.f32 %v2067_v35, %v5861_v28 }
 0x839   : > { %v2077_v48 = vadd.f32 %v2066_v45, %v1926_v5 }
 0x83a   : > { %v2084_v14 = vmul.f32 %v3374_v15, %v2068_v16 }
 0x83b   : > { %v2277_v22 = vmul.f32 -1.442695, %v2077_v48 }
 0x83c   : > { %v2085_v42 = vadd.f32 %v2084_v14, %v1995_v17 }
 0x83d   : > { %3375 = vpow2.f32 %v2277_v22 }
 0x847   : > { %v3376_v60 = vpop.eup %3375 }
 0x848   : > { %v2081_v51 = vadd.f32 1.0, %v3376_v60 }
 0x84a   : > { %3377 = vrcp.f32 %v2081_v51 }
 0x84b   : > { %3379 = vtanh.f32 %v2085_v42 }
 0x854   : > { %v3378_v24 = vpop.eup %3377 }
 0x855   : > { %v2087_v23 = vsub.f32 1.0, %v3378_v24  ;;  %v3380_v30 = vpop.eup %3379  ;;  %v2089_v31 = vmul.f32 %v3378_v24, %v4860_v7 }
 0x857   : > { %v2088_v34 = vmul.f32 %v3380_v30, %v2087_v23 }
 0x859   : > { %v2090_v32 = vadd.f32 %v2089_v31, %v2088_v34 }
 0x85b   : > { %2091 = vst [vmem:[#allocation3 + $0x8] sm:$0xff] %v2090_v32 }
 0x85c PF: > { %p2278_p13 = scmp.ne.s32.totalorder %s3530_s12, 2 }
 0x85d   : > { %v2104_v26 = vld [vmem:[%s5010_s7] sm:$0xff] (!%p2278_p13)  ;;  %v2105_v37 = vld [vmem:[%s5010_s7 + $0x8] sm:$0xff] (!%p2278_p13)  ;;  %v2106_v38 = vld [vmem:[%s5010_s7 + $0x10] sm:$0xff] (!%p2278_p13)  ;;  %v3471_v7 = vmov (!%p2278_p13), 0.0|0.0   ;;  %vm3472_vm6 = vmmov (!%p2278_p13), 0   ;;  %v3473_v43 = vmov (!%p2278_p13), 0.0  }
 0x85e   : > { %2095 = sbr.rel (%p2278_p13) target bundleno = 2390 (0x956), region = 84  ;;  %3249 = vmatprep.subr.bf16.mxu0 (!%p2278_p13), %v3471_v7  ;;  %v3250_v40 = vpack.c.bf16 (!%p2278_p13), %v2105_v37, %v2104_v26  ;;  %v2107_v41 = vld [vmem:[%s5010_s7 + $0x18] sm:$0xff] (!%p2278_p13)  ;;  %2502 = vmatprep.mubr.msk.f32.mxu0 (!%p2278_p13), %vm3472_vm6, %v3473_v43  ;;  %v2108_v46 = vld [vmem:[%s5010_s7 + $0x20] sm:$0xff] (!%p2278_p13)  ;;  %v2109_v47 = vld [vmem:[%s5010_s7 + $0x28] sm:$0xff] (!%p2278_p13) }
 0x85f   : > { %v3253_v44 = vpack.c.bf16 (!%p2278_p13), %v2107_v41, %v2106_v38  ;;  %v3256_v49 = vpack.c.bf16 (!%p2278_p13), %v2109_v47, %v2108_v46  ;;  %v2110_v50 = vld [vmem:[%s5010_s7 + $0x30] sm:$0xff] (!%p2278_p13)  ;;  %v2111_v52 = vld [vmem:[%s5010_s7 + $0x38] sm:$0xff] (!%p2278_p13)  ;;  %v2112_v55 = vld [vmem:[%s5010_s7 + $0x40] sm:$0xff] (!%p2278_p13) }
 0x860   : > { %3251 = vmatpush3.bf16.msra.mxu0 (!%p2278_p13), %v3250_v40  ;;  %v3259_v53 = vpack.c.bf16 (!%p2278_p13), %v2111_v52, %v2110_v50  ;;  %v2113_v56 = vld [vmem:[%s5010_s7 + $0x48] sm:$0xff] (!%p2278_p13)  ;;  %v2114_v33 = vld [vmem:[%s5010_s7 + $0x50] sm:$0xff] (!%p2278_p13)  ;;  %v2115_v58 = vld [vmem:[%s5010_s7 + $0x58] sm:$0xff] (!%p2278_p13) }
 0x861   : > { %3252 = vmatprep.subr.bf16.mxu0 (!%p2278_p13), %v3471_v7  ;;  %v3262_v29 = vpack.c.bf16 (!%p2278_p13), %v2113_v56, %v2112_v55  ;;  %v3265_v59 = vpack.c.bf16 (!%p2278_p13), %v2115_v58, %v2114_v33  ;;  %v2116_v36 = vld [vmem:[%s5010_s7 + $0x60] sm:$0xff] (!%p2278_p13)  ;;  %v2117_v39 = vld [vmem:[%s5010_s7 + $0x68] sm:$0xff] (!%p2278_p13)  ;;  %v2118_v62 = vld [vmem:[%s5010_s7 + $0x70] sm:$0xff] (!%p2278_p13) }
 0x862   : > { %v3268_v61 = vpack.c.bf16 (!%p2278_p13), %v2117_v39, %v2116_v36  ;;  %v2119_v0 = vld [vmem:[%s5010_s7 + $0x78] sm:$0xff] (!%p2278_p13)  ;;  %v2103_v3 = vld [vmem:[#allocation3 + $0x8] sm:$0xff] (!%p2278_p13)  ;;  %v2279_v4 = vld [vmem:[%s5011_s8] ss:$0 sm:$0xff] (!%p2278_p13) }
 0x863   : > { %v3271_v1 = vpack.c.bf16 (!%p2278_p13), %v2119_v0, %v2118_v62 }
 0x864   : > { %3254 = vmatpush3.bf16.msra.mxu0 (!%p2278_p13), %v3253_v44 }
 0x865   : > { %3255 = vmatprep.subr.bf16.mxu0 %v3471_v7 }
 0x868   : > { %3257 = vmatpush3.bf16.msra.mxu0 %v3256_v49 }
 0x869   : > { %3258 = vmatprep.subr.bf16.mxu0 %v3471_v7 }
 0x86c   : > { %3260 = vmatpush3.bf16.msra.mxu0 %v3259_v53 }
 0x86d   : > { %3261 = vmatprep.subr.bf16.mxu0 %v3471_v7 }
 0x870   : > { %3263 = vmatpush3.bf16.msra.mxu0 %v3262_v29 }
 0x871   : > { %3264 = vmatprep.subr.bf16.mxu0 %v3471_v7 }
 0x874   : > { %3266 = vmatpush3.bf16.msra.mxu0 %v3265_v59 }
 0x875   : > { %3267 = vmatprep.subr.bf16.mxu0 %v3471_v7 }
 0x878   : > { %3269 = vmatpush3.bf16.msra.mxu0 %v3268_v61 }
 0x879   : > { %3270 = vmatprep.subr.bf16.mxu0 %v3471_v7 }
 0x87c   : > { %3272 = vmatpush3.bf16.msra.mxu0 %v3271_v1 }
 0x87f   : > { %2503 = vmatmul.mubr.f32.vlgmr.msra.gmra.mrb[0].mxu0 %v2103_v3 }
 0x952   : > { %v2186_v6 = vpop.f32.mrb[0].mxu0 }
 0x953   : > { %v2187_v9 = vadd.f32 %v2279_v4, %v2186_v6  ;;  %v2504_v10 = vpop.f32.mrb[1].mxu0 }
 0x955   : > { %2190 = vst [vmem:[%s5012_s9] sm:$0xff] %v2187_v9 }
 0x956 PF: > { %s21_s30 = sadd.s32 1, %s3451_s30  }
 0x957   : > { %p18_p0 = scmp.ge.s32.totalorder %s21_s30, 5  }
 0x959   :  { %20 = sbr.rel (!%p18_p0) target bundleno = 2 (0x2), region = 114 }
 0x960   :  { %2202 = vsyncpa [#allocation5], 1 }
 0x961   :  { %2204 = vsyncpa [#allocation5 + $0x1], 1 }
 0x962   :  { %2205 = vsyncpa [#allocation7], 1 }

</bundles_post_ra>
